<compile_context>
chip_gen: v7x
topology: tpu7x:2x2x1
jax: 0.10.0
libtpu: 0.0.40
codegen_flags: <defaults>
</compile_context>

<pallas_src>
import jax
import jax.numpy as jnp
from jax import lax
from jax.experimental import pallas as pl
from jax.experimental.pallas import tpu as pltpu


LANE = 128


def _round_up(v, m):
    return ((v + m - 1) // m) * m


def _vmem_capacity_bytes():
    try:
        return int(pltpu.get_tpu_info().vmem_capacity_bytes)
    except Exception:
        return 64 * 1024 * 1024          # conservative default (v7x per-core)


def _tiled_bytes(shape, itemsize, sublane):
    """Approximate VMEM footprint of a block after (sublane, lane) tiling."""
    s = list(shape)
    s[-1] = _round_up(s[-1], LANE)
    if len(s) >= 2:
        s[-2] = _round_up(s[-2], sublane)
    n = 1
    for d in s:
        n *= d
    return n * itemsize


def conv3d_bn_relu(x, weight, bias, gamma, beta, running_mean, running_var,
                   *, stride, padding, eps=1e-5, max_frames_per_step=4):
    """Fused Conv3d + BatchNorm3d(eval) + ReLU.

    x: (N, T, Cin, H, W)  ->  (N, To, Cout, Ho, Wo), matching Conv3D.forward.
    """
    N, T, Cin, H, W = map(int, x.shape)
    Cout, Cin_w, kT, kH, kW = map(int, weight.shape)
    assert Cin == Cin_w
    sT = sH = sW = int(stride)
    pT = pH = pW = int(padding)

    Tp, Hp, Wp = T + 2 * pT, H + 2 * pH, W + 2 * pW
    Do = (Tp - kT) // sT + 1
    Ho = (Hp - kH) // sH + 1
    Wo = (Wp - kW) // sW + 1
    HW = Ho * Wo
    kvol = kT * kH * kW
    # Lane-dense output columns (unmasked vst).  For Cout >= 128 on v6e/v7x a
    # 256-multiple could be considered to match the 2x256^2 MXU tile.
    CoutP = _round_up(Cout, LANE)

    # ---------------- wrapper-side layout (no full kvol im2col in HBM) ------
    # channels-last, spatially padded, bf16 (halves HBM traffic, feeds the MXU)
    xcl = jnp.transpose(x, (0, 1, 3, 4, 2)).astype(jnp.bfloat16)   # (N,T,H,W,Cin)
    xcl = jnp.pad(xcl, ((0, 0), (pT, pT), (pH, pH), (pW, pW), (0, 0)))

    idx_w = (jnp.arange(Wo) * sW)[:, None] + jnp.arange(kW)[None, :]   # (Wo,kW)

    if sH == 1:
        # Fast path: unfold kW only (HBM grows ~kW*Wo/Wp ~ 2.7x, not kvol x).
        # Rows are h*Wo + wo, so the (kd, kh) operand is a contiguous row
        # window of the resident block; contraction K = kW*Cin.
        x_unf = xcl[:, :, :, idx_w, :]                     # (N,Tp,Hp,Wo,kW,Cin)
        x_unf = x_unf.reshape(N, Tp, Hp * Wo, kW * Cin)
        R_in = Hp * Wo
        K = kW * Cin
        wk = jnp.transpose(weight, (2, 3, 4, 1, 0)).reshape(kT * kH, kW * Cin, Cout)
        taps = [(kd, kh * Wo) for kd in range(kT) for kh in range(kH)]
    else:
        # Strided-H fallback: unfold kH*kW so rows are exactly the output
        # positions; contraction K = kH*kW*Cin, only kT matmuls per frame.
        idx_h = (jnp.arange(Ho) * sH)[:, None] + jnp.arange(kH)[None, :]
        x_unf = xcl[:, :, idx_h, :, :]                     # (N,Tp,Ho,kH,Wp,Cin)
        x_unf = x_unf[:, :, :, :, idx_w, :]                # (N,Tp,Ho,kH,Wo,kW,Cin)
        x_unf = jnp.transpose(x_unf, (0, 1, 2, 4, 3, 5, 6))
        x_unf = x_unf.reshape(N, Tp, Ho * Wo, kH * kW * Cin)
        R_in = Ho * Wo
        K = kH * kW * Cin
        wk = jnp.transpose(weight, (2, 3, 4, 1, 0)).reshape(kT, kH * kW * Cin, Cout)
        taps = [(kd, 0) for kd in range(kT)]

    NS = len(taps)
    wk = jnp.pad(wk, ((0, 0), (0, 0), (0, CoutP - Cout))).astype(jnp.bfloat16)

    # conv bias + eval-mode BN folded into per-channel affine: y = conv*scale+shift
    # TODO(synk): training-mode BN (batch statistics) would need an extra
    # reduction pass over (N, Do, Ho, Wo); eval-mode running stats used here.
    scale = (gamma / jnp.sqrt(running_var + eps)).astype(jnp.float32)
    shift = ((bias - running_mean) * scale + beta).astype(jnp.float32)
    scale2 = jnp.pad(scale, (0, CoutP - Cout)).reshape(1, CoutP)
    shift2 = jnp.pad(shift, (0, CoutP - Cout)).reshape(1, CoutP)

    # ---- generation-aware tile sizing (bounded residency, v7x-safe) --------
    vmem_cap = _vmem_capacity_bytes()

    def step_bytes(fd_):
        f_in = (fd_ - 1) * sT + kT
        b = (_tiled_bytes((f_in, R_in, K), 2, 16)          # x window, bf16
             + _tiled_bytes((NS, K, CoutP), 2, 16)         # packed weights
             + 2 * _tiled_bytes((1, CoutP), 4, 8)          # scale / shift
             + _tiled_bytes((fd_, HW, CoutP), 4, 8))       # output tile, f32
        return 2 * b                                       # double-buffered

    fd = 1
    for c in range(1, min(Do, max_frames_per_step) + 1):
        if Do % c == 0 and step_bytes(c) <= int(0.8 * vmem_cap):
            fd = c
    nd = Do // fd
    F_in = (fd - 1) * sT + kT

    # Per-(sample, frame-tile) input windows with a kT-sT frame halo,
    # materialized in the wrapper so the BlockSpec pipeline stays standard
    # (non-overlapping blocks) while per-step VMEM residency is bounded.
    x_win = jnp.stack([x_unf[:, d * fd * sT: d * fd * sT + F_in]
                       for d in range(nd)], axis=1)        # (N, nd, F_in, R_in, K)

    # Accumulator row chunk: keep the live (MROW, CoutP) f32 acc at <=32 vregs.
    MROW = 1
    for c in range(1, min(HW, 256) + 1):
        if HW % c == 0:
            MROW = c

    # ------------------------------- kernel ---------------------------------
    def kernel(x_ref, w_ref, scale_ref, shift_ref, o_ref):
        # x_ref:  (F_in, R_in, K)   bf16  input window of this (sample, tile)
        # w_ref:  (NS, K, CoutP)    bf16  packed weight slabs (grid-invariant)
        # scale_ref/shift_ref: (1, CoutP) f32
        # o_ref:  (fd, HW, CoutP)   f32
        sc = scale_ref[...]                  # loaded once per grid step
        sh = shift_ref[...]
        # frames / row chunks / tap slabs are fully unrolled (static) -> LLO
        # can overlap operand loads, MXU pushes and epilogue across frames.
        for j in range(fd):                                  # output frames
            for r0 in range(0, HW, MROW):                    # acc row chunks
                acc = None
                for s, (f_off, r_off) in enumerate(taps):    # packed tap slabs
                    xs = x_ref[j * sT + f_off, pl.ds(r0 + r_off, MROW), :]
                    part = jnp.dot(xs, w_ref[s],
                                   preferred_element_type=jnp.float32)
                    acc = part if acc is None else acc + part
                y = jnp.maximum(acc * sc + sh, 0.0)          # BN affine + ReLU
                o_ref[j, pl.ds(r0, MROW), :] = y.astype(o_ref.dtype)

    # clamped, generation-aware scoped-VMEM request (~2x true block bytes)
    vmem_limit = min(max(int(1.25 * step_bytes(fd)), 32 * 1024 * 1024),
                     int(0.9 * vmem_cap))

    cost = pl.CostEstimate(
        flops=2 * N * Do * HW * Cin * kvol * Cout,
        transcendentals=0,
        bytes_accessed=int(x_win.size * 2 + wk.size * 2
                           + (scale2.size + shift2.size) * 4
                           + N * Do * HW * CoutP * 4))

    out = pl.pallas_call(
        kernel,
        out_shape=jax.ShapeDtypeStruct((N, Do, HW, CoutP), jnp.float32),
        grid_spec=pltpu.PrefetchScalarGridSpec(
            num_scalar_prefetch=0,
            grid=(N, nd),
            in_specs=[
                pl.BlockSpec((None, None, F_in, R_in, K),
                             lambda n, d: (n, d, 0, 0, 0)),
                # grid-invariant operands; default double-buffering accepted
                # (few-hundred-KiB waste; pl.Buffered(1) left out on purpose).
                pl.BlockSpec((NS, K, CoutP), lambda n, d: (0, 0, 0)),
                pl.BlockSpec((1, CoutP), lambda n, d: (0, 0)),
                pl.BlockSpec((1, CoutP), lambda n, d: (0, 0)),
            ],
            out_specs=pl.BlockSpec((None, fd, HW, CoutP),
                                   lambda n, d: (n, d, 0, 0)),
        ),
        compiler_params=pltpu.CompilerParams(
            dimension_semantics=("parallel", "parallel"),
            vmem_limit_bytes=vmem_limit),
        cost_estimate=cost,
    )(x_win, wk, scale2, shift2)

    # back to the module's (N, To, Cout, Ho, Wo) layout (f32, as in PyTorch)
    out = out[:, :, :, :Cout].reshape(N, Do, Ho, Wo, Cout)
    return jnp.transpose(out, (0, 1, 4, 2, 3))


def _reference(x, weight, bias, gamma, beta, mean, var, stride, padding, eps=1e-5):
    """Plain-JAX reference mirroring the PyTorch forward (eval-mode BN)."""
    xc = jnp.transpose(x, (0, 2, 1, 3, 4))
    y = lax.conv_general_dilated(
        xc, weight,
        window_strides=(stride,) * 3,
        padding=[(padding, padding)] * 3,
        dimension_numbers=('NCDHW', 'OIDHW', 'NCDHW'),
        precision=lax.Precision.HIGHEST)
    y = y + bias.reshape(1, -1, 1, 1, 1)
    y = (y - mean.reshape(1, -1, 1, 1, 1)) / jnp.sqrt(var.reshape(1, -1, 1, 1, 1) + eps)
    y = y * gamma.reshape(1, -1, 1, 1, 1) + beta.reshape(1, -1, 1, 1, 1)
    y = jnp.maximum(y, 0.0)
    return jnp.transpose(y, (0, 2, 1, 3, 4))


if __name__ == "__main__":
    def run_case(key, N, T, Cin, H, W, Cout, ksz, stride, padding):
        kx, kw, kb, kg, kbt, km, kv = jax.random.split(key, 7)
        x = jax.random.normal(kx, (N, T, Cin, H, W), jnp.float32)

        # deterministic PyTorch-like fan-in uniform init for the conv
        fan_in = Cin * ksz ** 3
        bound = 1.0 / (fan_in ** 0.5)
        weight = jax.random.uniform(kw, (Cout, Cin, ksz, ksz, ksz), jnp.float32,
                                    -bound, bound)
        bias = jax.random.uniform(kb, (Cout,), jnp.float32, -bound, bound)
        gamma = 1.0 + 0.1 * jax.random.normal(kg, (Cout,), jnp.float32)
        beta = 0.1 * jax.random.normal(kbt, (Cout,), jnp.float32)
        running_mean = 0.1 * jax.random.normal(km, (Cout,), jnp.float32)
        running_var = jnp.abs(1.0 + 0.1 * jax.random.normal(kv, (Cout,), jnp.float32))

        out = conv3d_bn_relu(x, weight, bias, gamma, beta, running_mean,
                             running_var, stride=stride, padding=padding)
        out = jax.block_until_ready(out)

        # reference on bf16-rounded operands (the kernel feeds the MXU bf16)
        x_bf = x.astype(jnp.bfloat16).astype(jnp.float32)
        w_bf = weight.astype(jnp.bfloat16).astype(jnp.float32)
        ref = _reference(x_bf, w_bf, bias, gamma, beta, running_mean,
                         running_var, stride, padding)

        assert out.shape == ref.shape, (out.shape, ref.shape)
        max_err = float(jnp.max(jnp.abs(out - ref)))
        assert jnp.allclose(out, ref, atol=2e-2, rtol=2e-2), max_err

    key = jax.random.PRNGKey(0)
    k1, k2 = jax.random.split(key)
    # primary case (stride==1 fast path: K = kW*Cin, kT*kH matmuls per frame)
    run_case(k1, N=2, T=8, Cin=4, H=16, W=16, Cout=8, ksz=3, stride=1, padding=1)
    # strided case (previously-untested path: K = kH*kW*Cin, kT matmuls/frame)
    run_case(k2, N=2, T=8, Cin=4, H=16, W=16, Cout=8, ksz=3, stride=2, padding=1)
    print("KERNEL_OK")
</pallas_src>

<mosaic_0001>
module attributes {stable_mosaic.version = 11 : i64} {
  func.func @kernel(%arg0: i32, %arg1: i32, %arg2: memref<1x1x6x288x12xbf16, #tpu.memory_space<vmem>>, %arg3: memref<9x12x128xbf16, #tpu.memory_space<vmem>>, %arg4: memref<1x128xf32, #tpu.memory_space<vmem>>, %arg5: memref<1x128xf32, #tpu.memory_space<vmem>>, %arg6: memref<1x4x256x128xf32, #tpu.memory_space<vmem>>) attributes {dimension_semantics = [#tpu.dimension_semantics<parallel>, #tpu.dimension_semantics<parallel>], iteration_bounds = array<i64: 2, 2>, scalar_prefetch = 0 : i64, scratch_operands = 0 : i64, tpu.core_type = #tpu.core_type<tc>, window_params = [{transform_indices = @transform_0, window_bounds = array<i64: 1, 1, 6, 288, 12>}, {pipeline_mode = #tpu.pipeline_mode<synchronous>, transform_indices = @transform_1, window_bounds = array<i64: 9, 12, 128>}, {pipeline_mode = #tpu.pipeline_mode<synchronous>, transform_indices = @transform_2, window_bounds = array<i64: 1, 128>}, {pipeline_mode = #tpu.pipeline_mode<synchronous>, transform_indices = @transform_3, window_bounds = array<i64: 1, 128>}, {transform_indices = @transform_4, window_bounds = array<i64: 1, 4, 256, 128>}]} {
    %c0 = arith.constant 0 : index
    %c0_0 = arith.constant 0 : index
    %0 = vector.load %arg4[%c0, %c0_0] : memref<1x128xf32, #tpu.memory_space<vmem>>, vector<1x128xf32>
    %c0_1 = arith.constant 0 : index
    %c0_2 = arith.constant 0 : index
    %1 = vector.load %arg5[%c0_1, %c0_2] : memref<1x128xf32, #tpu.memory_space<vmem>>, vector<1x128xf32>
    %c0_3 = arith.constant 0 : index
    %c0_4 = arith.constant 0 : index
    %c0_5 = arith.constant 0 : index
    %c0_6 = arith.constant 0 : index
    %c0_7 = arith.constant 0 : index
    %2 = vector.load %arg2[%c0_3, %c0_4, %c0_5, %c0_6, %c0_7] : memref<1x1x6x288x12xbf16, #tpu.memory_space<vmem>>, vector<1x1x1x256x12xbf16>
    %3 = vector.shape_cast %2 : vector<1x1x1x256x12xbf16> to vector<256x12xbf16>
    %c0_8 = arith.constant 0 : index
    %c0_9 = arith.constant 0 : index
    %c0_10 = arith.constant 0 : index
    %4 = vector.load %arg3[%c0_8, %c0_9, %c0_10] : memref<9x12x128xbf16, #tpu.memory_space<vmem>>, vector<1x12x128xbf16>
    %5 = vector.shape_cast %4 : vector<1x12x128xbf16> to vector<12x128xbf16>
    %cst = arith.constant dense<0.000000e+00> : vector<256x128xf32>
    %6 = tpu.matmul %3, %5, %cst {dimension_numbers = #tpu.dot_dimension_numbers<[1], [0], [0], [1], [0, 0, 1, 1], [], []>} : vector<256x12xbf16>, vector<12x128xbf16>, vector<256x128xf32> -> vector<256x128xf32>
    %c0_11 = arith.constant 0 : index
    %c0_12 = arith.constant 0 : index
    %c0_13 = arith.constant 0 : index
    %c16 = arith.constant 16 : index
    %c0_14 = arith.constant 0 : index
    %7 = vector.load %arg2[%c0_11, %c0_12, %c0_13, %c16, %c0_14] : memref<1x1x6x288x12xbf16, #tpu.memory_space<vmem>>, vector<1x1x1x256x12xbf16>
    %8 = vector.shape_cast %7 : vector<1x1x1x256x12xbf16> to vector<256x12xbf16>
    %c1 = arith.constant 1 : index
    %c0_15 = arith.constant 0 : index
    %c0_16 = arith.constant 0 : index
    %9 = vector.load %arg3[%c1, %c0_15, %c0_16] : memref<9x12x128xbf16, #tpu.memory_space<vmem>>, vector<1x12x128xbf16>
    %10 = vector.shape_cast %9 : vector<1x12x128xbf16> to vector<12x128xbf16>
    %cst_17 = arith.constant dense<0.000000e+00> : vector<256x128xf32>
    %11 = tpu.matmul %8, %10, %cst_17 {dimension_numbers = #tpu.dot_dimension_numbers<[1], [0], [0], [1], [0, 0, 1, 1], [], []>} : vector<256x12xbf16>, vector<12x128xbf16>, vector<256x128xf32> -> vector<256x128xf32>
    %12 = arith.addf %6, %11 : vector<256x128xf32>
    %c0_18 = arith.constant 0 : index
    %c0_19 = arith.constant 0 : index
    %c0_20 = arith.constant 0 : index
    %c32 = arith.constant 32 : index
    %c0_21 = arith.constant 0 : index
    %13 = vector.load %arg2[%c0_18, %c0_19, %c0_20, %c32, %c0_21] : memref<1x1x6x288x12xbf16, #tpu.memory_space<vmem>>, vector<1x1x1x256x12xbf16>
    %14 = vector.shape_cast %13 : vector<1x1x1x256x12xbf16> to vector<256x12xbf16>
    %c2 = arith.constant 2 : index
    %c0_22 = arith.constant 0 : index
    %c0_23 = arith.constant 0 : index
    %15 = vector.load %arg3[%c2, %c0_22, %c0_23] : memref<9x12x128xbf16, #tpu.memory_space<vmem>>, vector<1x12x128xbf16>
    %16 = vector.shape_cast %15 : vector<1x12x128xbf16> to vector<12x128xbf16>
    %cst_24 = arith.constant dense<0.000000e+00> : vector<256x128xf32>
    %17 = tpu.matmul %14, %16, %cst_24 {dimension_numbers = #tpu.dot_dimension_numbers<[1], [0], [0], [1], [0, 0, 1, 1], [], []>} : vector<256x12xbf16>, vector<12x128xbf16>, vector<256x128xf32> -> vector<256x128xf32>
    %18 = arith.addf %12, %17 : vector<256x128xf32>
    %c0_25 = arith.constant 0 : index
    %c0_26 = arith.constant 0 : index
    %c1_27 = arith.constant 1 : index
    %c0_28 = arith.constant 0 : index
    %c0_29 = arith.constant 0 : index
    %19 = vector.load %arg2[%c0_25, %c0_26, %c1_27, %c0_28, %c0_29] : memref<1x1x6x288x12xbf16, #tpu.memory_space<vmem>>, vector<1x1x1x256x12xbf16>
    %20 = vector.shape_cast %19 : vector<1x1x1x256x12xbf16> to vector<256x12xbf16>
    %c3 = arith.constant 3 : index
    %c0_30 = arith.constant 0 : index
    %c0_31 = arith.constant 0 : index
    %21 = vector.load %arg3[%c3, %c0_30, %c0_31] : memref<9x12x128xbf16, #tpu.memory_space<vmem>>, vector<1x12x128xbf16>
    %22 = vector.shape_cast %21 : vector<1x12x128xbf16> to vector<12x128xbf16>
    %cst_32 = arith.constant dense<0.000000e+00> : vector<256x128xf32>
    %23 = tpu.matmul %20, %22, %cst_32 {dimension_numbers = #tpu.dot_dimension_numbers<[1], [0], [0], [1], [0, 0, 1, 1], [], []>} : vector<256x12xbf16>, vector<12x128xbf16>, vector<256x128xf32> -> vector<256x128xf32>
    %24 = arith.addf %18, %23 : vector<256x128xf32>
    %c0_33 = arith.constant 0 : index
    %c0_34 = arith.constant 0 : index
    %c1_35 = arith.constant 1 : index
    %c16_36 = arith.constant 16 : index
    %c0_37 = arith.constant 0 : index
    %25 = vector.load %arg2[%c0_33, %c0_34, %c1_35, %c16_36, %c0_37] : memref<1x1x6x288x12xbf16, #tpu.memory_space<vmem>>, vector<1x1x1x256x12xbf16>
    %26 = vector.shape_cast %25 : vector<1x1x1x256x12xbf16> to vector<256x12xbf16>
    %c4 = arith.constant 4 : index
    %c0_38 = arith.constant 0 : index
    %c0_39 = arith.constant 0 : index
    %27 = vector.load %arg3[%c4, %c0_38, %c0_39] : memref<9x12x128xbf16, #tpu.memory_space<vmem>>, vector<1x12x128xbf16>
    %28 = vector.shape_cast %27 : vector<1x12x128xbf16> to vector<12x128xbf16>
    %cst_40 = arith.constant dense<0.000000e+00> : vector<256x128xf32>
    %29 = tpu.matmul %26, %28, %cst_40 {dimension_numbers = #tpu.dot_dimension_numbers<[1], [0], [0], [1], [0, 0, 1, 1], [], []>} : vector<256x12xbf16>, vector<12x128xbf16>, vector<256x128xf32> -> vector<256x128xf32>
    %30 = arith.addf %24, %29 : vector<256x128xf32>
    %c0_41 = arith.constant 0 : index
    %c0_42 = arith.constant 0 : index
    %c1_43 = arith.constant 1 : index
    %c32_44 = arith.constant 32 : index
    %c0_45 = arith.constant 0 : index
    %31 = vector.load %arg2[%c0_41, %c0_42, %c1_43, %c32_44, %c0_45] : memref<1x1x6x288x12xbf16, #tpu.memory_space<vmem>>, vector<1x1x1x256x12xbf16>
    %32 = vector.shape_cast %31 : vector<1x1x1x256x12xbf16> to vector<256x12xbf16>
    %c5 = arith.constant 5 : index
    %c0_46 = arith.constant 0 : index
    %c0_47 = arith.constant 0 : index
    %33 = vector.load %arg3[%c5, %c0_46, %c0_47] : memref<9x12x128xbf16, #tpu.memory_space<vmem>>, vector<1x12x128xbf16>
    %34 = vector.shape_cast %33 : vector<1x12x128xbf16> to vector<12x128xbf16>
    %cst_48 = arith.constant dense<0.000000e+00> : vector<256x128xf32>
    %35 = tpu.matmul %32, %34, %cst_48 {dimension_numbers = #tpu.dot_dimension_numbers<[1], [0], [0], [1], [0, 0, 1, 1], [], []>} : vector<256x12xbf16>, vector<12x128xbf16>, vector<256x128xf32> -> vector<256x128xf32>
    %36 = arith.addf %30, %35 : vector<256x128xf32>
    %c0_49 = arith.constant 0 : index
    %c0_50 = arith.constant 0 : index
    %c2_51 = arith.constant 2 : index
    %c0_52 = arith.constant 0 : index
    %c0_53 = arith.constant 0 : index
    %37 = vector.load %arg2[%c0_49, %c0_50, %c2_51, %c0_52, %c0_53] : memref<1x1x6x288x12xbf16, #tpu.memory_space<vmem>>, vector<1x1x1x256x12xbf16>
    %38 = vector.shape_cast %37 : vector<1x1x1x256x12xbf16> to vector<256x12xbf16>
    %c6 = arith.constant 6 : index
    %c0_54 = arith.constant 0 : index
    %c0_55 = arith.constant 0 : index
    %39 = vector.load %arg3[%c6, %c0_54, %c0_55] : memref<9x12x128xbf16, #tpu.memory_space<vmem>>, vector<1x12x128xbf16>
    %40 = vector.shape_cast %39 : vector<1x12x128xbf16> to vector<12x128xbf16>
    %cst_56 = arith.constant dense<0.000000e+00> : vector<256x128xf32>
    %41 = tpu.matmul %38, %40, %cst_56 {dimension_numbers = #tpu.dot_dimension_numbers<[1], [0], [0], [1], [0, 0, 1, 1], [], []>} : vector<256x12xbf16>, vector<12x128xbf16>, vector<256x128xf32> -> vector<256x128xf32>
    %42 = arith.addf %36, %41 : vector<256x128xf32>
    %c0_57 = arith.constant 0 : index
    %c0_58 = arith.constant 0 : index
    %c2_59 = arith.constant 2 : index
    %c16_60 = arith.constant 16 : index
    %c0_61 = arith.constant 0 : index
    %43 = vector.load %arg2[%c0_57, %c0_58, %c2_59, %c16_60, %c0_61] : memref<1x1x6x288x12xbf16, #tpu.memory_space<vmem>>, vector<1x1x1x256x12xbf16>
    %44 = vector.shape_cast %43 : vector<1x1x1x256x12xbf16> to vector<256x12xbf16>
    %c7 = arith.constant 7 : index
    %c0_62 = arith.constant 0 : index
    %c0_63 = arith.constant 0 : index
    %45 = vector.load %arg3[%c7, %c0_62, %c0_63] : memref<9x12x128xbf16, #tpu.memory_space<vmem>>, vector<1x12x128xbf16>
    %46 = vector.shape_cast %45 : vector<1x12x128xbf16> to vector<12x128xbf16>
    %cst_64 = arith.constant dense<0.000000e+00> : vector<256x128xf32>
    %47 = tpu.matmul %44, %46, %cst_64 {dimension_numbers = #tpu.dot_dimension_numbers<[1], [0], [0], [1], [0, 0, 1, 1], [], []>} : vector<256x12xbf16>, vector<12x128xbf16>, vector<256x128xf32> -> vector<256x128xf32>
    %48 = arith.addf %42, %47 : vector<256x128xf32>
    %c0_65 = arith.constant 0 : index
    %c0_66 = arith.constant 0 : index
    %c2_67 = arith.constant 2 : index
    %c32_68 = arith.constant 32 : index
    %c0_69 = arith.constant 0 : index
    %49 = vector.load %arg2[%c0_65, %c0_66, %c2_67, %c32_68, %c0_69] : memref<1x1x6x288x12xbf16, #tpu.memory_space<vmem>>, vector<1x1x1x256x12xbf16>
    %50 = vector.shape_cast %49 : vector<1x1x1x256x12xbf16> to vector<256x12xbf16>
    %c8 = arith.constant 8 : index
    %c0_70 = arith.constant 0 : index
    %c0_71 = arith.constant 0 : index
    %51 = vector.load %arg3[%c8, %c0_70, %c0_71] : memref<9x12x128xbf16, #tpu.memory_space<vmem>>, vector<1x12x128xbf16>
    %52 = vector.shape_cast %51 : vector<1x12x128xbf16> to vector<12x128xbf16>
    %cst_72 = arith.constant dense<0.000000e+00> : vector<256x128xf32>
    %53 = tpu.matmul %50, %52, %cst_72 {dimension_numbers = #tpu.dot_dimension_numbers<[1], [0], [0], [1], [0, 0, 1, 1], [], []>} : vector<256x12xbf16>, vector<12x128xbf16>, vector<256x128xf32> -> vector<256x128xf32>
    %54 = arith.addf %48, %53 : vector<256x128xf32>
    %55 = vector.broadcast %0 : vector<1x128xf32> to vector<256x128xf32>
    %56 = arith.mulf %54, %55 : vector<256x128xf32>
    %57 = vector.broadcast %1 : vector<1x128xf32> to vector<256x128xf32>
    %58 = arith.addf %56, %57 : vector<256x128xf32>
    %cst_73 = arith.constant 0.000000e+00 : f32
    %59 = vector.broadcast %cst_73 : f32 to vector<256x128xf32>
    %60 = arith.maximumf %58, %59 : vector<256x128xf32>
    %c0_74 = arith.constant 0 : index
    %c0_75 = arith.constant 0 : index
    %c0_76 = arith.constant 0 : index
    %c0_77 = arith.constant 0 : index
    %61 = vector.load %arg6[%c0_74, %c0_75, %c0_76, %c0_77] : memref<1x4x256x128xf32, #tpu.memory_space<vmem>>, vector<1x1x256x128xf32>
    %62 = vector.shape_cast %61 : vector<1x1x256x128xf32> to vector<256x128xf32>
    %63 = vector.shape_cast %60 : vector<256x128xf32> to vector<1x1x256x128xf32>
    tpu.vector_store %arg6[%c0_74, %c0_75, %c0_76, %c0_77], %63 {strides = array<i32>} : memref<1x4x256x128xf32, #tpu.memory_space<vmem>>, vector<1x1x256x128xf32>,
    %c0_78 = arith.constant 0 : index
    %c0_79 = arith.constant 0 : index
    %c1_80 = arith.constant 1 : index
    %c0_81 = arith.constant 0 : index
    %c0_82 = arith.constant 0 : index
    %64 = vector.load %arg2[%c0_78, %c0_79, %c1_80, %c0_81, %c0_82] : memref<1x1x6x288x12xbf16, #tpu.memory_space<vmem>>, vector<1x1x1x256x12xbf16>
    %65 = vector.shape_cast %64 : vector<1x1x1x256x12xbf16> to vector<256x12xbf16>
    %c0_83 = arith.constant 0 : index
    %c0_84 = arith.constant 0 : index
    %c0_85 = arith.constant 0 : index
    %66 = vector.load %arg3[%c0_83, %c0_84, %c0_85] : memref<9x12x128xbf16, #tpu.memory_space<vmem>>, vector<1x12x128xbf16>
    %67 = vector.shape_cast %66 : vector<1x12x128xbf16> to vector<12x128xbf16>
    %cst_86 = arith.constant dense<0.000000e+00> : vector<256x128xf32>
    %68 = tpu.matmul %65, %67, %cst_86 {dimension_numbers = #tpu.dot_dimension_numbers<[1], [0], [0], [1], [0, 0, 1, 1], [], []>} : vector<256x12xbf16>, vector<12x128xbf16>, vector<256x128xf32> -> vector<256x128xf32>
    %c0_87 = arith.constant 0 : index
    %c0_88 = arith.constant 0 : index
    %c1_89 = arith.constant 1 : index
    %c16_90 = arith.constant 16 : index
    %c0_91 = arith.constant 0 : index
    %69 = vector.load %arg2[%c0_87, %c0_88, %c1_89, %c16_90, %c0_91] : memref<1x1x6x288x12xbf16, #tpu.memory_space<vmem>>, vector<1x1x1x256x12xbf16>
    %70 = vector.shape_cast %69 : vector<1x1x1x256x12xbf16> to vector<256x12xbf16>
    %c1_92 = arith.constant 1 : index
    %c0_93 = arith.constant 0 : index
    %c0_94 = arith.constant 0 : index
    %71 = vector.load %arg3[%c1_92, %c0_93, %c0_94] : memref<9x12x128xbf16, #tpu.memory_space<vmem>>, vector<1x12x128xbf16>
    %72 = vector.shape_cast %71 : vector<1x12x128xbf16> to vector<12x128xbf16>
    %cst_95 = arith.constant dense<0.000000e+00> : vector<256x128xf32>
    %73 = tpu.matmul %70, %72, %cst_95 {dimension_numbers = #tpu.dot_dimension_numbers<[1], [0], [0], [1], [0, 0, 1, 1], [], []>} : vector<256x12xbf16>, vector<12x128xbf16>, vector<256x128xf32> -> vector<256x128xf32>
    %74 = arith.addf %68, %73 : vector<256x128xf32>
    %c0_96 = arith.constant 0 : index
    %c0_97 = arith.constant 0 : index
    %c1_98 = arith.constant 1 : index
    %c32_99 = arith.constant 32 : index
    %c0_100 = arith.constant 0 : index
    %75 = vector.load %arg2[%c0_96, %c0_97, %c1_98, %c32_99, %c0_100] : memref<1x1x6x288x12xbf16, #tpu.memory_space<vmem>>, vector<1x1x1x256x12xbf16>
    %76 = vector.shape_cast %75 : vector<1x1x1x256x12xbf16> to vector<256x12xbf16>
    %c2_101 = arith.constant 2 : index
    %c0_102 = arith.constant 0 : index
    %c0_103 = arith.constant 0 : index
    %77 = vector.load %arg3[%c2_101, %c0_102, %c0_103] : memref<9x12x128xbf16, #tpu.memory_space<vmem>>, vector<1x12x128xbf16>
    %78 = vector.shape_cast %77 : vector<1x12x128xbf16> to vector<12x128xbf16>
    %cst_104 = arith.constant dense<0.000000e+00> : vector<256x128xf32>
    %79 = tpu.matmul %76, %78, %cst_104 {dimension_numbers = #tpu.dot_dimension_numbers<[1], [0], [0], [1], [0, 0, 1, 1], [], []>} : vector<256x12xbf16>, vector<12x128xbf16>, vector<256x128xf32> -> vector<256x128xf32>
    %80 = arith.addf %74, %79 : vector<256x128xf32>
    %c0_105 = arith.constant 0 : index
    %c0_106 = arith.constant 0 : index
    %c2_107 = arith.constant 2 : index
    %c0_108 = arith.constant 0 : index
    %c0_109 = arith.constant 0 : index
    %81 = vector.load %arg2[%c0_105, %c0_106, %c2_107, %c0_108, %c0_109] : memref<1x1x6x288x12xbf16, #tpu.memory_space<vmem>>, vector<1x1x1x256x12xbf16>
    %82 = vector.shape_cast %81 : vector<1x1x1x256x12xbf16> to vector<256x12xbf16>
    %c3_110 = arith.constant 3 : index
    %c0_111 = arith.constant 0 : index
    %c0_112 = arith.constant 0 : index
    %83 = vector.load %arg3[%c3_110, %c0_111, %c0_112] : memref<9x12x128xbf16, #tpu.memory_space<vmem>>, vector<1x12x128xbf16>
    %84 = vector.shape_cast %83 : vector<1x12x128xbf16> to vector<12x128xbf16>
    %cst_113 = arith.constant dense<0.000000e+00> : vector<256x128xf32>
    %85 = tpu.matmul %82, %84, %cst_113 {dimension_numbers = #tpu.dot_dimension_numbers<[1], [0], [0], [1], [0, 0, 1, 1], [], []>} : vector<256x12xbf16>, vector<12x128xbf16>, vector<256x128xf32> -> vector<256x128xf32>
    %86 = arith.addf %80, %85 : vector<256x128xf32>
    %c0_114 = arith.constant 0 : index
    %c0_115 = arith.constant 0 : index
    %c2_116 = arith.constant 2 : index
    %c16_117 = arith.constant 16 : index
    %c0_118 = arith.constant 0 : index
    %87 = vector.load %arg2[%c0_114, %c0_115, %c2_116, %c16_117, %c0_118] : memref<1x1x6x288x12xbf16, #tpu.memory_space<vmem>>, vector<1x1x1x256x12xbf16>
    %88 = vector.shape_cast %87 : vector<1x1x1x256x12xbf16> to vector<256x12xbf16>
    %c4_119 = arith.constant 4 : index
    %c0_120 = arith.constant 0 : index
    %c0_121 = arith.constant 0 : index
    %89 = vector.load %arg3[%c4_119, %c0_120, %c0_121] : memref<9x12x128xbf16, #tpu.memory_space<vmem>>, vector<1x12x128xbf16>
    %90 = vector.shape_cast %89 : vector<1x12x128xbf16> to vector<12x128xbf16>
    %cst_122 = arith.constant dense<0.000000e+00> : vector<256x128xf32>
    %91 = tpu.matmul %88, %90, %cst_122 {dimension_numbers = #tpu.dot_dimension_numbers<[1], [0], [0], [1], [0, 0, 1, 1], [], []>} : vector<256x12xbf16>, vector<12x128xbf16>, vector<256x128xf32> -> vector<256x128xf32>
    %92 = arith.addf %86, %91 : vector<256x128xf32>
    %c0_123 = arith.constant 0 : index
    %c0_124 = arith.constant 0 : index
    %c2_125 = arith.constant 2 : index
    %c32_126 = arith.constant 32 : index
    %c0_127 = arith.constant 0 : index
    %93 = vector.load %arg2[%c0_123, %c0_124, %c2_125, %c32_126, %c0_127] : memref<1x1x6x288x12xbf16, #tpu.memory_space<vmem>>, vector<1x1x1x256x12xbf16>
    %94 = vector.shape_cast %93 : vector<1x1x1x256x12xbf16> to vector<256x12xbf16>
    %c5_128 = arith.constant 5 : index
    %c0_129 = arith.constant 0 : index
    %c0_130 = arith.constant 0 : index
    %95 = vector.load %arg3[%c5_128, %c0_129, %c0_130] : memref<9x12x128xbf16, #tpu.memory_space<vmem>>, vector<1x12x128xbf16>
    %96 = vector.shape_cast %95 : vector<1x12x128xbf16> to vector<12x128xbf16>
    %cst_131 = arith.constant dense<0.000000e+00> : vector<256x128xf32>
    %97 = tpu.matmul %94, %96, %cst_131 {dimension_numbers = #tpu.dot_dimension_numbers<[1], [0], [0], [1], [0, 0, 1, 1], [], []>} : vector<256x12xbf16>, vector<12x128xbf16>, vector<256x128xf32> -> vector<256x128xf32>
    %98 = arith.addf %92, %97 : vector<256x128xf32>
    %c0_132 = arith.constant 0 : index
    %c0_133 = arith.constant 0 : index
    %c3_134 = arith.constant 3 : index
    %c0_135 = arith.constant 0 : index
    %c0_136 = arith.constant 0 : index
    %99 = vector.load %arg2[%c0_132, %c0_133, %c3_134, %c0_135, %c0_136] : memref<1x1x6x288x12xbf16, #tpu.memory_space<vmem>>, vector<1x1x1x256x12xbf16>
    %100 = vector.shape_cast %99 : vector<1x1x1x256x12xbf16> to vector<256x12xbf16>
    %c6_137 = arith.constant 6 : index
    %c0_138 = arith.constant 0 : index
    %c0_139 = arith.constant 0 : index
    %101 = vector.load %arg3[%c6_137, %c0_138, %c0_139] : memref<9x12x128xbf16, #tpu.memory_space<vmem>>, vector<1x12x128xbf16>
    %102 = vector.shape_cast %101 : vector<1x12x128xbf16> to vector<12x128xbf16>
    %cst_140 = arith.constant dense<0.000000e+00> : vector<256x128xf32>
    %103 = tpu.matmul %100, %102, %cst_140 {dimension_numbers = #tpu.dot_dimension_numbers<[1], [0], [0], [1], [0, 0, 1, 1], [], []>} : vector<256x12xbf16>, vector<12x128xbf16>, vector<256x128xf32> -> vector<256x128xf32>
    %104 = arith.addf %98, %103 : vector<256x128xf32>
    %c0_141 = arith.constant 0 : index
    %c0_142 = arith.constant 0 : index
    %c3_143 = arith.constant 3 : index
    %c16_144 = arith.constant 16 : index
    %c0_145 = arith.constant 0 : index
    %105 = vector.load %arg2[%c0_141, %c0_142, %c3_143, %c16_144, %c0_145] : memref<1x1x6x288x12xbf16, #tpu.memory_space<vmem>>, vector<1x1x1x256x12xbf16>
    %106 = vector.shape_cast %105 : vector<1x1x1x256x12xbf16> to vector<256x12xbf16>
    %c7_146 = arith.constant 7 : index
    %c0_147 = arith.constant 0 : index
    %c0_148 = arith.constant 0 : index
    %107 = vector.load %arg3[%c7_146, %c0_147, %c0_148] : memref<9x12x128xbf16, #tpu.memory_space<vmem>>, vector<1x12x128xbf16>
    %108 = vector.shape_cast %107 : vector<1x12x128xbf16> to vector<12x128xbf16>
    %cst_149 = arith.constant dense<0.000000e+00> : vector<256x128xf32>
    %109 = tpu.matmul %106, %108, %cst_149 {dimension_numbers = #tpu.dot_dimension_numbers<[1], [0], [0], [1], [0, 0, 1, 1], [], []>} : vector<256x12xbf16>, vector<12x128xbf16>, vector<256x128xf32> -> vector<256x128xf32>
    %110 = arith.addf %104, %109 : vector<256x128xf32>
    %c0_150 = arith.constant 0 : index
    %c0_151 = arith.constant 0 : index
    %c3_152 = arith.constant 3 : index
    %c32_153 = arith.constant 32 : index
    %c0_154 = arith.constant 0 : index
    %111 = vector.load %arg2[%c0_150, %c0_151, %c3_152, %c32_153, %c0_154] : memref<1x1x6x288x12xbf16, #tpu.memory_space<vmem>>, vector<1x1x1x256x12xbf16>
    %112 = vector.shape_cast %111 : vector<1x1x1x256x12xbf16> to vector<256x12xbf16>
    %c8_155 = arith.constant 8 : index
    %c0_156 = arith.constant 0 : index
    %c0_157 = arith.constant 0 : index
    %113 = vector.load %arg3[%c8_155, %c0_156, %c0_157] : memref<9x12x128xbf16, #tpu.memory_space<vmem>>, vector<1x12x128xbf16>
    %114 = vector.shape_cast %113 : vector<1x12x128xbf16> to vector<12x128xbf16>
    %cst_158 = arith.constant dense<0.000000e+00> : vector<256x128xf32>
    %115 = tpu.matmul %112, %114, %cst_158 {dimension_numbers = #tpu.dot_dimension_numbers<[1], [0], [0], [1], [0, 0, 1, 1], [], []>} : vector<256x12xbf16>, vector<12x128xbf16>, vector<256x128xf32> -> vector<256x128xf32>
    %116 = arith.addf %110, %115 : vector<256x128xf32>
    %117 = vector.broadcast %0 : vector<1x128xf32> to vector<256x128xf32>
    %118 = arith.mulf %116, %117 : vector<256x128xf32>
    %119 = vector.broadcast %1 : vector<1x128xf32> to vector<256x128xf32>
    %120 = arith.addf %118, %119 : vector<256x128xf32>
    %cst_159 = arith.constant 0.000000e+00 : f32
    %121 = vector.broadcast %cst_159 : f32 to vector<256x128xf32>
    %122 = arith.maximumf %120, %121 : vector<256x128xf32>
    %c0_160 = arith.constant 0 : index
    %c1_161 = arith.constant 1 : index
    %c0_162 = arith.constant 0 : index
    %c0_163 = arith.constant 0 : index
    %123 = vector.load %arg6[%c0_160, %c1_161, %c0_162, %c0_163] : memref<1x4x256x128xf32, #tpu.memory_space<vmem>>, vector<1x1x256x128xf32>
    %124 = vector.shape_cast %123 : vector<1x1x256x128xf32> to vector<256x128xf32>
    %125 = vector.shape_cast %122 : vector<256x128xf32> to vector<1x1x256x128xf32>
    tpu.vector_store %arg6[%c0_160, %c1_161, %c0_162, %c0_163], %125 {strides = array<i32>} : memref<1x4x256x128xf32, #tpu.memory_space<vmem>>, vector<1x1x256x128xf32>,
    %c0_164 = arith.constant 0 : index
    %c0_165 = arith.constant 0 : index
    %c2_166 = arith.constant 2 : index
    %c0_167 = arith.constant 0 : index
    %c0_168 = arith.constant 0 : index
    %126 = vector.load %arg2[%c0_164, %c0_165, %c2_166, %c0_167, %c0_168] : memref<1x1x6x288x12xbf16, #tpu.memory_space<vmem>>, vector<1x1x1x256x12xbf16>
    %127 = vector.shape_cast %126 : vector<1x1x1x256x12xbf16> to vector<256x12xbf16>
    %c0_169 = arith.constant 0 : index
    %c0_170 = arith.constant 0 : index
    %c0_171 = arith.constant 0 : index
    %128 = vector.load %arg3[%c0_169, %c0_170, %c0_171] : memref<9x12x128xbf16, #tpu.memory_space<vmem>>, vector<1x12x128xbf16>
    %129 = vector.shape_cast %128 : vector<1x12x128xbf16> to vector<12x128xbf16>
    %cst_172 = arith.constant dense<0.000000e+00> : vector<256x128xf32>
    %130 = tpu.matmul %127, %129, %cst_172 {dimension_numbers = #tpu.dot_dimension_numbers<[1], [0], [0], [1], [0, 0, 1, 1], [], []>} : vector<256x12xbf16>, vector<12x128xbf16>, vector<256x128xf32> -> vector<256x128xf32>
    %c0_173 = arith.constant 0 : index
    %c0_174 = arith.constant 0 : index
    %c2_175 = arith.constant 2 : index
    %c16_176 = arith.constant 16 : index
    %c0_177 = arith.constant 0 : index
    %131 = vector.load %arg2[%c0_173, %c0_174, %c2_175, %c16_176, %c0_177] : memref<1x1x6x288x12xbf16, #tpu.memory_space<vmem>>, vector<1x1x1x256x12xbf16>
    %132 = vector.shape_cast %131 : vector<1x1x1x256x12xbf16> to vector<256x12xbf16>
    %c1_178 = arith.constant 1 : index
    %c0_179 = arith.constant 0 : index
    %c0_180 = arith.constant 0 : index
    %133 = vector.load %arg3[%c1_178, %c0_179, %c0_180] : memref<9x12x128xbf16, #tpu.memory_space<vmem>>, vector<1x12x128xbf16>
    %134 = vector.shape_cast %133 : vector<1x12x128xbf16> to vector<12x128xbf16>
    %cst_181 = arith.constant dense<0.000000e+00> : vector<256x128xf32>
    %135 = tpu.matmul %132, %134, %cst_181 {dimension_numbers = #tpu.dot_dimension_numbers<[1], [0], [0], [1], [0, 0, 1, 1], [], []>} : vector<256x12xbf16>, vector<12x128xbf16>, vector<256x128xf32> -> vector<256x128xf32>
    %136 = arith.addf %130, %135 : vector<256x128xf32>
    %c0_182 = arith.constant 0 : index
    %c0_183 = arith.constant 0 : index
    %c2_184 = arith.constant 2 : index
    %c32_185 = arith.constant 32 : index
    %c0_186 = arith.constant 0 : index
    %137 = vector.load %arg2[%c0_182, %c0_183, %c2_184, %c32_185, %c0_186] : memref<1x1x6x288x12xbf16, #tpu.memory_space<vmem>>, vector<1x1x1x256x12xbf16>
    %138 = vector.shape_cast %137 : vector<1x1x1x256x12xbf16> to vector<256x12xbf16>
    %c2_187 = arith.constant 2 : index
    %c0_188 = arith.constant 0 : index
    %c0_189 = arith.constant 0 : index
    %139 = vector.load %arg3[%c2_187, %c0_188, %c0_189] : memref<9x12x128xbf16, #tpu.memory_space<vmem>>, vector<1x12x128xbf16>
    %140 = vector.shape_cast %139 : vector<1x12x128xbf16> to vector<12x128xbf16>
    %cst_190 = arith.constant dense<0.000000e+00> : vector<256x128xf32>
    %141 = tpu.matmul %138, %140, %cst_190 {dimension_numbers = #tpu.dot_dimension_numbers<[1], [0], [0], [1], [0, 0, 1, 1], [], []>} : vector<256x12xbf16>, vector<12x128xbf16>, vector<256x128xf32> -> vector<256x128xf32>
    %142 = arith.addf %136, %141 : vector<256x128xf32>
    %c0_191 = arith.constant 0 : index
    %c0_192 = arith.constant 0 : index
    %c3_193 = arith.constant 3 : index
    %c0_194 = arith.constant 0 : index
    %c0_195 = arith.constant 0 : index
    %143 = vector.load %arg2[%c0_191, %c0_192, %c3_193, %c0_194, %c0_195] : memref<1x1x6x288x12xbf16, #tpu.memory_space<vmem>>, vector<1x1x1x256x12xbf16>
    %144 = vector.shape_cast %143 : vector<1x1x1x256x12xbf16> to vector<256x12xbf16>
    %c3_196 = arith.constant 3 : index
    %c0_197 = arith.constant 0 : index
    %c0_198 = arith.constant 0 : index
    %145 = vector.load %arg3[%c3_196, %c0_197, %c0_198] : memref<9x12x128xbf16, #tpu.memory_space<vmem>>, vector<1x12x128xbf16>
    %146 = vector.shape_cast %145 : vector<1x12x128xbf16> to vector<12x128xbf16>
    %cst_199 = arith.constant dense<0.000000e+00> : vector<256x128xf32>
    %147 = tpu.matmul %144, %146, %cst_199 {dimension_numbers = #tpu.dot_dimension_numbers<[1], [0], [0], [1], [0, 0, 1, 1], [], []>} : vector<256x12xbf16>, vector<12x128xbf16>, vector<256x128xf32> -> vector<256x128xf32>
    %148 = arith.addf %142, %147 : vector<256x128xf32>
    %c0_200 = arith.constant 0 : index
    %c0_201 = arith.constant 0 : index
    %c3_202 = arith.constant 3 : index
    %c16_203 = arith.constant 16 : index
    %c0_204 = arith.constant 0 : index
    %149 = vector.load %arg2[%c0_200, %c0_201, %c3_202, %c16_203, %c0_204] : memref<1x1x6x288x12xbf16, #tpu.memory_space<vmem>>, vector<1x1x1x256x12xbf16>
    %150 = vector.shape_cast %149 : vector<1x1x1x256x12xbf16> to vector<256x12xbf16>
    %c4_205 = arith.constant 4 : index
    %c0_206 = arith.constant 0 : index
    %c0_207 = arith.constant 0 : index
    %151 = vector.load %arg3[%c4_205, %c0_206, %c0_207] : memref<9x12x128xbf16, #tpu.memory_space<vmem>>, vector<1x12x128xbf16>
    %152 = vector.shape_cast %151 : vector<1x12x128xbf16> to vector<12x128xbf16>
    %cst_208 = arith.constant dense<0.000000e+00> : vector<256x128xf32>
    %153 = tpu.matmul %150, %152, %cst_208 {dimension_numbers = #tpu.dot_dimension_numbers<[1], [0], [0], [1], [0, 0, 1, 1], [], []>} : vector<256x12xbf16>, vector<12x128xbf16>, vector<256x128xf32> -> vector<256x128xf32>
    %154 = arith.addf %148, %153 : vector<256x128xf32>
    %c0_209 = arith.constant 0 : index
    %c0_210 = arith.constant 0 : index
    %c3_211 = arith.constant 3 : index
    %c32_212 = arith.constant 32 : index
    %c0_213 = arith.constant 0 : index
    %155 = vector.load %arg2[%c0_209, %c0_210, %c3_211, %c32_212, %c0_213] : memref<1x1x6x288x12xbf16, #tpu.memory_space<vmem>>, vector<1x1x1x256x12xbf16>
    %156 = vector.shape_cast %155 : vector<1x1x1x256x12xbf16> to vector<256x12xbf16>
    %c5_214 = arith.constant 5 : index
    %c0_215 = arith.constant 0 : index
    %c0_216 = arith.constant 0 : index
    %157 = vector.load %arg3[%c5_214, %c0_215, %c0_216] : memref<9x12x128xbf16, #tpu.memory_space<vmem>>, vector<1x12x128xbf16>
    %158 = vector.shape_cast %157 : vector<1x12x128xbf16> to vector<12x128xbf16>
    %cst_217 = arith.constant dense<0.000000e+00> : vector<256x128xf32>
    %159 = tpu.matmul %156, %158, %cst_217 {dimension_numbers = #tpu.dot_dimension_numbers<[1], [0], [0], [1], [0, 0, 1, 1], [], []>} : vector<256x12xbf16>, vector<12x128xbf16>, vector<256x128xf32> -> vector<256x128xf32>
    %160 = arith.addf %154, %159 : vector<256x128xf32>
    %c0_218 = arith.constant 0 : index
    %c0_219 = arith.constant 0 : index
    %c4_220 = arith.constant 4 : index
    %c0_221 = arith.constant 0 : index
    %c0_222 = arith.constant 0 : index
    %161 = vector.load %arg2[%c0_218, %c0_219, %c4_220, %c0_221, %c0_222] : memref<1x1x6x288x12xbf16, #tpu.memory_space<vmem>>, vector<1x1x1x256x12xbf16>
    %162 = vector.shape_cast %161 : vector<1x1x1x256x12xbf16> to vector<256x12xbf16>
    %c6_223 = arith.constant 6 : index
    %c0_224 = arith.constant 0 : index
    %c0_225 = arith.constant 0 : index
    %163 = vector.load %arg3[%c6_223, %c0_224, %c0_225] : memref<9x12x128xbf16, #tpu.memory_space<vmem>>, vector<1x12x128xbf16>
    %164 = vector.shape_cast %163 : vector<1x12x128xbf16> to vector<12x128xbf16>
    %cst_226 = arith.constant dense<0.000000e+00> : vector<256x128xf32>
    %165 = tpu.matmul %162, %164, %cst_226 {dimension_numbers = #tpu.dot_dimension_numbers<[1], [0], [0], [1], [0, 0, 1, 1], [], []>} : vector<256x12xbf16>, vector<12x128xbf16>, vector<256x128xf32> -> vector<256x128xf32>
    %166 = arith.addf %160, %165 : vector<256x128xf32>
    %c0_227 = arith.constant 0 : index
    %c0_228 = arith.constant 0 : index
    %c4_229 = arith.constant 4 : index
    %c16_230 = arith.constant 16 : index
    %c0_231 = arith.constant 0 : index
    %167 = vector.load %arg2[%c0_227, %c0_228, %c4_229, %c16_230, %c0_231] : memref<1x1x6x288x12xbf16, #tpu.memory_space<vmem>>, vector<1x1x1x256x12xbf16>
    %168 = vector.shape_cast %167 : vector<1x1x1x256x12xbf16> to vector<256x12xbf16>
    %c7_232 = arith.constant 7 : index
    %c0_233 = arith.constant 0 : index
    %c0_234 = arith.constant 0 : index
    %169 = vector.load %arg3[%c7_232, %c0_233, %c0_234] : memref<9x12x128xbf16, #tpu.memory_space<vmem>>, vector<1x12x128xbf16>
    %170 = vector.shape_cast %169 : vector<1x12x128xbf16> to vector<12x128xbf16>
    %cst_235 = arith.constant dense<0.000000e+00> : vector<256x128xf32>
    %171 = tpu.matmul %168, %170, %cst_235 {dimension_numbers = #tpu.dot_dimension_numbers<[1], [0], [0], [1], [0, 0, 1, 1], [], []>} : vector<256x12xbf16>, vector<12x128xbf16>, vector<256x128xf32> -> vector<256x128xf32>
    %172 = arith.addf %166, %171 : vector<256x128xf32>
    %c0_236 = arith.constant 0 : index
    %c0_237 = arith.constant 0 : index
    %c4_238 = arith.constant 4 : index
    %c32_239 = arith.constant 32 : index
    %c0_240 = arith.constant 0 : index
    %173 = vector.load %arg2[%c0_236, %c0_237, %c4_238, %c32_239, %c0_240] : memref<1x1x6x288x12xbf16, #tpu.memory_space<vmem>>, vector<1x1x1x256x12xbf16>
    %174 = vector.shape_cast %173 : vector<1x1x1x256x12xbf16> to vector<256x12xbf16>
    %c8_241 = arith.constant 8 : index
    %c0_242 = arith.constant 0 : index
    %c0_243 = arith.constant 0 : index
    %175 = vector.load %arg3[%c8_241, %c0_242, %c0_243] : memref<9x12x128xbf16, #tpu.memory_space<vmem>>, vector<1x12x128xbf16>
    %176 = vector.shape_cast %175 : vector<1x12x128xbf16> to vector<12x128xbf16>
    %cst_244 = arith.constant dense<0.000000e+00> : vector<256x128xf32>
    %177 = tpu.matmul %174, %176, %cst_244 {dimension_numbers = #tpu.dot_dimension_numbers<[1], [0], [0], [1], [0, 0, 1, 1], [], []>} : vector<256x12xbf16>, vector<12x128xbf16>, vector<256x128xf32> -> vector<256x128xf32>
    %178 = arith.addf %172, %177 : vector<256x128xf32>
    %179 = vector.broadcast %0 : vector<1x128xf32> to vector<256x128xf32>
    %180 = arith.mulf %178, %179 : vector<256x128xf32>
    %181 = vector.broadcast %1 : vector<1x128xf32> to vector<256x128xf32>
    %182 = arith.addf %180, %181 : vector<256x128xf32>
    %cst_245 = arith.constant 0.000000e+00 : f32
    %183 = vector.broadcast %cst_245 : f32 to vector<256x128xf32>
    %184 = arith.maximumf %182, %183 : vector<256x128xf32>
    %c0_246 = arith.constant 0 : index
    %c2_247 = arith.constant 2 : index
    %c0_248 = arith.constant 0 : index
    %c0_249 = arith.constant 0 : index
    %185 = vector.load %arg6[%c0_246, %c2_247, %c0_248, %c0_249] : memref<1x4x256x128xf32, #tpu.memory_space<vmem>>, vector<1x1x256x128xf32>
    %186 = vector.shape_cast %185 : vector<1x1x256x128xf32> to vector<256x128xf32>
    %187 = vector.shape_cast %184 : vector<256x128xf32> to vector<1x1x256x128xf32>
    tpu.vector_store %arg6[%c0_246, %c2_247, %c0_248, %c0_249], %187 {strides = array<i32>} : memref<1x4x256x128xf32, #tpu.memory_space<vmem>>, vector<1x1x256x128xf32>,
    %c0_250 = arith.constant 0 : index
    %c0_251 = arith.constant 0 : index
    %c3_252 = arith.constant 3 : index
    %c0_253 = arith.constant 0 : index
    %c0_254 = arith.constant 0 : index
    %188 = vector.load %arg2[%c0_250, %c0_251, %c3_252, %c0_253, %c0_254] : memref<1x1x6x288x12xbf16, #tpu.memory_space<vmem>>, vector<1x1x1x256x12xbf16>
    %189 = vector.shape_cast %188 : vector<1x1x1x256x12xbf16> to vector<256x12xbf16>
    %c0_255 = arith.constant 0 : index
    %c0_256 = arith.constant 0 : index
    %c0_257 = arith.constant 0 : index
    %190 = vector.load %arg3[%c0_255, %c0_256, %c0_257] : memref<9x12x128xbf16, #tpu.memory_space<vmem>>, vector<1x12x128xbf16>
    %191 = vector.shape_cast %190 : vector<1x12x128xbf16> to vector<12x128xbf16>
    %cst_258 = arith.constant dense<0.000000e+00> : vector<256x128xf32>
    %192 = tpu.matmul %189, %191, %cst_258 {dimension_numbers = #tpu.dot_dimension_numbers<[1], [0], [0], [1], [0, 0, 1, 1], [], []>} : vector<256x12xbf16>, vector<12x128xbf16>, vector<256x128xf32> -> vector<256x128xf32>
    %c0_259 = arith.constant 0 : index
    %c0_260 = arith.constant 0 : index
    %c3_261 = arith.constant 3 : index
    %c16_262 = arith.constant 16 : index
    %c0_263 = arith.constant 0 : index
    %193 = vector.load %arg2[%c0_259, %c0_260, %c3_261, %c16_262, %c0_263] : memref<1x1x6x288x12xbf16, #tpu.memory_space<vmem>>, vector<1x1x1x256x12xbf16>
    %194 = vector.shape_cast %193 : vector<1x1x1x256x12xbf16> to vector<256x12xbf16>
    %c1_264 = arith.constant 1 : index
    %c0_265 = arith.constant 0 : index
    %c0_266 = arith.constant 0 : index
    %195 = vector.load %arg3[%c1_264, %c0_265, %c0_266] : memref<9x12x128xbf16, #tpu.memory_space<vmem>>, vector<1x12x128xbf16>
    %196 = vector.shape_cast %195 : vector<1x12x128xbf16> to vector<12x128xbf16>
    %cst_267 = arith.constant dense<0.000000e+00> : vector<256x128xf32>
    %197 = tpu.matmul %194, %196, %cst_267 {dimension_numbers = #tpu.dot_dimension_numbers<[1], [0], [0], [1], [0, 0, 1, 1], [], []>} : vector<256x12xbf16>, vector<12x128xbf16>, vector<256x128xf32> -> vector<256x128xf32>
    %198 = arith.addf %192, %197 : vector<256x128xf32>
    %c0_268 = arith.constant 0 : index
    %c0_269 = arith.constant 0 : index
    %c3_270 = arith.constant 3 : index
    %c32_271 = arith.constant 32 : index
    %c0_272 = arith.constant 0 : index
    %199 = vector.load %arg2[%c0_268, %c0_269, %c3_270, %c32_271, %c0_272] : memref<1x1x6x288x12xbf16, #tpu.memory_space<vmem>>, vector<1x1x1x256x12xbf16>
    %200 = vector.shape_cast %199 : vector<1x1x1x256x12xbf16> to vector<256x12xbf16>
    %c2_273 = arith.constant 2 : index
    %c0_274 = arith.constant 0 : index
    %c0_275 = arith.constant 0 : index
    %201 = vector.load %arg3[%c2_273, %c0_274, %c0_275] : memref<9x12x128xbf16, #tpu.memory_space<vmem>>, vector<1x12x128xbf16>
    %202 = vector.shape_cast %201 : vector<1x12x128xbf16> to vector<12x128xbf16>
    %cst_276 = arith.constant dense<0.000000e+00> : vector<256x128xf32>
    %203 = tpu.matmul %200, %202, %cst_276 {dimension_numbers = #tpu.dot_dimension_numbers<[1], [0], [0], [1], [0, 0, 1, 1], [], []>} : vector<256x12xbf16>, vector<12x128xbf16>, vector<256x128xf32> -> vector<256x128xf32>
    %204 = arith.addf %198, %203 : vector<256x128xf32>
    %c0_277 = arith.constant 0 : index
    %c0_278 = arith.constant 0 : index
    %c4_279 = arith.constant 4 : index
    %c0_280 = arith.constant 0 : index
    %c0_281 = arith.constant 0 : index
    %205 = vector.load %arg2[%c0_277, %c0_278, %c4_279, %c0_280, %c0_281] : memref<1x1x6x288x12xbf16, #tpu.memory_space<vmem>>, vector<1x1x1x256x12xbf16>
    %206 = vector.shape_cast %205 : vector<1x1x1x256x12xbf16> to vector<256x12xbf16>
    %c3_282 = arith.constant 3 : index
    %c0_283 = arith.constant 0 : index
    %c0_284 = arith.constant 0 : index
    %207 = vector.load %arg3[%c3_282, %c0_283, %c0_284] : memref<9x12x128xbf16, #tpu.memory_space<vmem>>, vector<1x12x128xbf16>
    %208 = vector.shape_cast %207 : vector<1x12x128xbf16> to vector<12x128xbf16>
    %cst_285 = arith.constant dense<0.000000e+00> : vector<256x128xf32>
    %209 = tpu.matmul %206, %208, %cst_285 {dimension_numbers = #tpu.dot_dimension_numbers<[1], [0], [0], [1], [0, 0, 1, 1], [], []>} : vector<256x12xbf16>, vector<12x128xbf16>, vector<256x128xf32> -> vector<256x128xf32>
    %210 = arith.addf %204, %209 : vector<256x128xf32>
    %c0_286 = arith.constant 0 : index
    %c0_287 = arith.constant 0 : index
    %c4_288 = arith.constant 4 : index
    %c16_289 = arith.constant 16 : index
    %c0_290 = arith.constant 0 : index
    %211 = vector.load %arg2[%c0_286, %c0_287, %c4_288, %c16_289, %c0_290] : memref<1x1x6x288x12xbf16, #tpu.memory_space<vmem>>, vector<1x1x1x256x12xbf16>
    %212 = vector.shape_cast %211 : vector<1x1x1x256x12xbf16> to vector<256x12xbf16>
    %c4_291 = arith.constant 4 : index
    %c0_292 = arith.constant 0 : index
    %c0_293 = arith.constant 0 : index
    %213 = vector.load %arg3[%c4_291, %c0_292, %c0_293] : memref<9x12x128xbf16, #tpu.memory_space<vmem>>, vector<1x12x128xbf16>
    %214 = vector.shape_cast %213 : vector<1x12x128xbf16> to vector<12x128xbf16>
    %cst_294 = arith.constant dense<0.000000e+00> : vector<256x128xf32>
    %215 = tpu.matmul %212, %214, %cst_294 {dimension_numbers = #tpu.dot_dimension_numbers<[1], [0], [0], [1], [0, 0, 1, 1], [], []>} : vector<256x12xbf16>, vector<12x128xbf16>, vector<256x128xf32> -> vector<256x128xf32>
    %216 = arith.addf %210, %215 : vector<256x128xf32>
    %c0_295 = arith.constant 0 : index
    %c0_296 = arith.constant 0 : index
    %c4_297 = arith.constant 4 : index
    %c32_298 = arith.constant 32 : index
    %c0_299 = arith.constant 0 : index
    %217 = vector.load %arg2[%c0_295, %c0_296, %c4_297, %c32_298, %c0_299] : memref<1x1x6x288x12xbf16, #tpu.memory_space<vmem>>, vector<1x1x1x256x12xbf16>
    %218 = vector.shape_cast %217 : vector<1x1x1x256x12xbf16> to vector<256x12xbf16>
    %c5_300 = arith.constant 5 : index
    %c0_301 = arith.constant 0 : index
    %c0_302 = arith.constant 0 : index
    %219 = vector.load %arg3[%c5_300, %c0_301, %c0_302] : memref<9x12x128xbf16, #tpu.memory_space<vmem>>, vector<1x12x128xbf16>
    %220 = vector.shape_cast %219 : vector<1x12x128xbf16> to vector<12x128xbf16>
    %cst_303 = arith.constant dense<0.000000e+00> : vector<256x128xf32>
    %221 = tpu.matmul %218, %220, %cst_303 {dimension_numbers = #tpu.dot_dimension_numbers<[1], [0], [0], [1], [0, 0, 1, 1], [], []>} : vector<256x12xbf16>, vector<12x128xbf16>, vector<256x128xf32> -> vector<256x128xf32>
    %222 = arith.addf %216, %221 : vector<256x128xf32>
    %c0_304 = arith.constant 0 : index
    %c0_305 = arith.constant 0 : index
    %c5_306 = arith.constant 5 : index
    %c0_307 = arith.constant 0 : index
    %c0_308 = arith.constant 0 : index
    %223 = vector.load %arg2[%c0_304, %c0_305, %c5_306, %c0_307, %c0_308] : memref<1x1x6x288x12xbf16, #tpu.memory_space<vmem>>, vector<1x1x1x256x12xbf16>
    %224 = vector.shape_cast %223 : vector<1x1x1x256x12xbf16> to vector<256x12xbf16>
    %c6_309 = arith.constant 6 : index
    %c0_310 = arith.constant 0 : index
    %c0_311 = arith.constant 0 : index
    %225 = vector.load %arg3[%c6_309, %c0_310, %c0_311] : memref<9x12x128xbf16, #tpu.memory_space<vmem>>, vector<1x12x128xbf16>
    %226 = vector.shape_cast %225 : vector<1x12x128xbf16> to vector<12x128xbf16>
    %cst_312 = arith.constant dense<0.000000e+00> : vector<256x128xf32>
    %227 = tpu.matmul %224, %226, %cst_312 {dimension_numbers = #tpu.dot_dimension_numbers<[1], [0], [0], [1], [0, 0, 1, 1], [], []>} : vector<256x12xbf16>, vector<12x128xbf16>, vector<256x128xf32> -> vector<256x128xf32>
    %228 = arith.addf %222, %227 : vector<256x128xf32>
    %c0_313 = arith.constant 0 : index
    %c0_314 = arith.constant 0 : index
    %c5_315 = arith.constant 5 : index
    %c16_316 = arith.constant 16 : index
    %c0_317 = arith.constant 0 : index
    %229 = vector.load %arg2[%c0_313, %c0_314, %c5_315, %c16_316, %c0_317] : memref<1x1x6x288x12xbf16, #tpu.memory_space<vmem>>, vector<1x1x1x256x12xbf16>
    %230 = vector.shape_cast %229 : vector<1x1x1x256x12xbf16> to vector<256x12xbf16>
    %c7_318 = arith.constant 7 : index
    %c0_319 = arith.constant 0 : index
    %c0_320 = arith.constant 0 : index
    %231 = vector.load %arg3[%c7_318, %c0_319, %c0_320] : memref<9x12x128xbf16, #tpu.memory_space<vmem>>, vector<1x12x128xbf16>
    %232 = vector.shape_cast %231 : vector<1x12x128xbf16> to vector<12x128xbf16>
    %cst_321 = arith.constant dense<0.000000e+00> : vector<256x128xf32>
    %233 = tpu.matmul %230, %232, %cst_321 {dimension_numbers = #tpu.dot_dimension_numbers<[1], [0], [0], [1], [0, 0, 1, 1], [], []>} : vector<256x12xbf16>, vector<12x128xbf16>, vector<256x128xf32> -> vector<256x128xf32>
    %234 = arith.addf %228, %233 : vector<256x128xf32>
    %c0_322 = arith.constant 0 : index
    %c0_323 = arith.constant 0 : index
    %c5_324 = arith.constant 5 : index
    %c32_325 = arith.constant 32 : index
    %c0_326 = arith.constant 0 : index
    %235 = vector.load %arg2[%c0_322, %c0_323, %c5_324, %c32_325, %c0_326] : memref<1x1x6x288x12xbf16, #tpu.memory_space<vmem>>, vector<1x1x1x256x12xbf16>
    %236 = vector.shape_cast %235 : vector<1x1x1x256x12xbf16> to vector<256x12xbf16>
    %c8_327 = arith.constant 8 : index
    %c0_328 = arith.constant 0 : index
    %c0_329 = arith.constant 0 : index
    %237 = vector.load %arg3[%c8_327, %c0_328, %c0_329] : memref<9x12x128xbf16, #tpu.memory_space<vmem>>, vector<1x12x128xbf16>
    %238 = vector.shape_cast %237 : vector<1x12x128xbf16> to vector<12x128xbf16>
    %cst_330 = arith.constant dense<0.000000e+00> : vector<256x128xf32>
    %239 = tpu.matmul %236, %238, %cst_330 {dimension_numbers = #tpu.dot_dimension_numbers<[1], [0], [0], [1], [0, 0, 1, 1], [], []>} : vector<256x12xbf16>, vector<12x128xbf16>, vector<256x128xf32> -> vector<256x128xf32>
    %240 = arith.addf %234, %239 : vector<256x128xf32>
    %241 = vector.broadcast %0 : vector<1x128xf32> to vector<256x128xf32>
    %242 = arith.mulf %240, %241 : vector<256x128xf32>
    %243 = vector.broadcast %1 : vector<1x128xf32> to vector<256x128xf32>
    %244 = arith.addf %242, %243 : vector<256x128xf32>
    %cst_331 = arith.constant 0.000000e+00 : f32
    %245 = vector.broadcast %cst_331 : f32 to vector<256x128xf32>
    %246 = arith.maximumf %244, %245 : vector<256x128xf32>
    %c0_332 = arith.constant 0 : index
    %c3_333 = arith.constant 3 : index
    %c0_334 = arith.constant 0 : index
    %c0_335 = arith.constant 0 : index
    %247 = vector.load %arg6[%c0_332, %c3_333, %c0_334, %c0_335] : memref<1x4x256x128xf32, #tpu.memory_space<vmem>>, vector<1x1x256x128xf32>
    %248 = vector.shape_cast %247 : vector<1x1x256x128xf32> to vector<256x128xf32>
    %249 = vector.shape_cast %246 : vector<256x128xf32> to vector<1x1x256x128xf32>
    tpu.vector_store %arg6[%c0_332, %c3_333, %c0_334, %c0_335], %249 {strides = array<i32>} : memref<1x4x256x128xf32, #tpu.memory_space<vmem>>, vector<1x1x256x128xf32>,
    return
  }
  func.func @transform_0(%arg0: i32, %arg1: i32) -> (i32, i32, i32, i32, i32) {
    %c0_i32 = arith.constant 0 : i32
    %c0_i32_0 = arith.constant 0 : i32
    %c0_i32_1 = arith.constant 0 : i32
    %c0_i32_2 = arith.constant 0 : i32
    return %arg0, %arg1, %c0_i32, %c0_i32_0, %c0_i32_1 : i32, i32, i32, i32, i32
  }
  func.func @transform_1(%arg0: i32, %arg1: i32) -> (i32, i32, i32) {
    %c0_i32 = arith.constant 0 : i32
    %c0_i32_0 = arith.constant 0 : i32
    %c0_i32_1 = arith.constant 0 : i32
    %c0_i32_2 = arith.constant 0 : i32
    return %c0_i32, %c0_i32_0, %c0_i32_1 : i32, i32, i32
  }
  func.func @transform_2(%arg0: i32, %arg1: i32) -> (i32, i32) {
    %c0_i32 = arith.constant 0 : i32
    %c0_i32_0 = arith.constant 0 : i32
    %c0_i32_1 = arith.constant 0 : i32
    return %c0_i32, %c0_i32_0 : i32, i32
  }
  func.func @transform_3(%arg0: i32, %arg1: i32) -> (i32, i32) {
    %c0_i32 = arith.constant 0 : i32
    %c0_i32_0 = arith.constant 0 : i32
    %c0_i32_1 = arith.constant 0 : i32
    return %c0_i32, %c0_i32_0 : i32, i32
  }
  func.func @transform_4(%arg0: i32, %arg1: i32) -> (i32, i32, i32, i32) {
    %c0_i32 = arith.constant 0 : i32
    %c0_i32_0 = arith.constant 0 : i32
    %c0_i32_1 = arith.constant 0 : i32
    return %arg0, %arg1, %c0_i32, %c0_i32_0 : i32, i32, i32, i32
  }
}

</mosaic_0001>

<bundles_post_ra>
// kernel: tpu_custom_call.1
= control target key start
LH: loop header
LB: loop body
LE: loop exit
PB: predicated region body
PF: predicated region fallthrough
CT: control target
= control target key end

     0   :  { %s21176_s0 = inlined_call_operand.vmem [shape: bf16[2,2,6,288,12], index: 0, kind: input, shape index: {}]   ;;  %s21177_s1 = inlined_call_operand.hbm [shape: bf16[9,12,128], index: 1, kind: input, shape index: {}]   ;;  %s21178_s2 = inlined_call_operand.hbm [shape: f32[1,128], index: 2, kind: input, shape index: {}]   ;;  %s21179_s3 = inlined_call_operand.hbm [shape: f32[1,128], index: 3, kind: input, shape index: {}]   ;;  %s21180_s4 = inlined_call_operand.hbm [shape: f32[2,8,256,128], index: 4, kind: output, shape index: {}]  }
   0x1   :  { %21189 = sst [smem:[#allocation16_spill]] %s21178_s2 }
   0x2   :  { %9 = vsyncpa [#allocation3], 0 }
   0x3   :  { %10 = vsyncpa [#allocation6], 0 }
   0x4   :  { %11 = vsyncpa [#allocation4], 0 }
   0x5   :  { %13 = vsyncpa [#allocation4 + $0x1], 0  ;;  %s19147_s15 = smov 0   ;;  %s19149_s16 = smov 0  }
   0x6   :  { %s19151_s17 = smov 0   ;;  %s19153_s18 = smov 0  }
   0x7   :  { %s19155_s19 = smov 0   ;;  %s19157_s20 = smov 0  }
   0x8   :  { %s19159_s21 = smov 0   ;;  %s19161_s22 = smov 0  }
   0x9 LB: > { %21190 = sst [smem:[#allocation12_spill]] %s19104_s20  ;;  %s13155_s23 = sadd.s32 4294967295, %s19112_s22   ;;  %s19112_s22 = sphi %s19161_s22, %s19_s22   ;;  %s19108_s21 = sphi %s19159_s21, %s21208_s21   ;;  %s19104_s20 = sphi %s19157_s20, %s21207_s20   ;;  %s19100_s19 = sphi %s19155_s19, %s21206_s19   ;;  %s19096_s18 = sphi %s19153_s18, %s21205_s18   ;;  %s19092_s17 = sphi %s19151_s17, %s21211_s17   ;;  %s19088_s16 = sphi %s19149_s16, %s21210_s16   ;;  %s19084_s15 = sphi %s19147_s15, %s21209_s15  }
   0xa   : > { %21191 = sst [smem:[#allocation13_spill]] %s19108_s21  ;;  %s13156_s24 = sadd.s32 4294967294, %s19112_s22  }
   0xb   : > { %s28_s25 = sadd.s32 1, %s19104_s20  ;;  %s31_s26 = sadd.s32 1, %s19108_s21 }
   0xc   : > { %p29_p0 = scmp.ge.s32.totalorder %s28_s25, 2  ;;  %s131_s27 = sadd.s32 1, %s19092_s17 }
   0xd   : > { %p141_p1 = scmp.ne.s32.totalorder %s19092_s17, %s19088_s16  ;;  %p142_p2 = scmp.eq.s32.totalorder %s13155_s23, 3 }
   0xe   : > { %s21213_s25 = smov (%p29_p0, %s28_s25), 0  ;;  %s21215_s26 = smov (!%p29_p0, %s31_s26), %s19108_s21 }
   0xf   : > { %21192 = sst [smem:[#allocation14_spill]] %s21213_s25  ;;  %s127_s28 = ssub.s32 %s19104_s20, %s21213_s25 }
  0x10   : > { %p19199_p3 = por %p142_p2, %p141_p1  ;;  %p33_p4 = scmp.ge.s32.totalorder %s21215_s26, 2 }
  0x11   : > { %p147_p5 = scmp.ne.s32.totalorder %s19088_s16, %s19084_s15  ;;  %p148_p6 = scmp.eq.s32.totalorder %s13156_s24, 3 }
  0x12   : > { %s21193_s29 = scalar_select %p19199_p3, 1, 0 }
  0x13   : > { %p13157_p7 = scmp.ge.s32.totalorder %s19112_s22, 1  ;;  %s21217_s26 = smov (%p33_p4, %s21215_s26), 0 }
  0x14   : > { %21194 = sst [smem:[#allocation15_spill]] %s21217_s26  ;;  %p19208_p8 = por %p148_p6, %p147_p5 }
  0x15   : > { %p155_p9 = scmp.lt.s32.totalorder %s19112_s22, 5  ;;  %s126_s5 = ssub.s32 %s19108_s21, %s21217_s26 }
  0x16   : > { %s21195_s30 = scalar_select %p19208_p8, 1, 0 }
  0x17   : > { %s128_s6 = sor.u32 %s127_s28, %s126_s5  ;;  %p19215_p10 = pnand %p13157_p7, %p155_p9 }
  0x18   : > { %p129_p11 = scmp.eq.s32.totalorder %s128_s6, 0  ;;  %p19219_p12 = scmp.eq.s32.totalorder %s13155_s23, 0 }
  0x19   : > { %s21196_s7 = scalar_select %p19215_p10, 1, 0 }
  0x1a   : > { %s21197_s8 = scalar_select %p19219_p12, 1, 0 }
  0x1b   : > { %p18280_p13 = pneg %p19215_p10  ;;  %s19114_s11 = smov [#allocation5]  }
  0x1c   : > { %s19226_s9 = scalar_select %p129_p11, %s19092_s17, %s131_s27  }
  0x1d   : > { %p19230_p0 = pnand %p19219_p12, %p18280_p13  ;;  %s181_s12 = sshll.u32 %s19114_s11, 4  ;;  %s182_s12 = int_to_ptr.vmem [resolvable:$true] %s181_s12 }
  0x1e   : > { %s21199_s2 = sld [smem:[#allocation16_spill]] }
  0x1f   : > { %p19242_p2 = pneg %p19230_p0 }
  0x24   : > { %s18926_s23 = scalar_lea.hbm %s21199_s2, 16 }
  0x25   : > { %p18927_p1 = scmp.ne.s32.totalorder %s21199_s2, %s18926_s23  ;;  %p18933_p6 = scmp.lt.u32.totalorder %s18926_s23, %s21199_s2 }
  0x27   : > { %p18929_p4 = pnand %p19242_p2, %p18927_p1 }
  0x29   : > { %p18930_p5 = pneg %p18929_p4 }
  0x2b   : > { %p18935_p7 = pnand %p18933_p6, %p18930_p5 }
  0x2d   : > { %18938 = shalt.err (!%p18935_p7)
}
  0x2e   : > { %s18939_s11 = scalar_lea.vmem %s182_s12, 16  ;;  %s18946_s13 = scalar_lea.vmem %s182_s12, 32 }
  0x2f   : > { %p18940_p9 = scmp.ne.s32.totalorder %s182_s12, %s18939_s11  ;;  %p18947_p8 = scmp.lt.s32.totalorder %s182_s12, %s182_s12 }
  0x30   : > { %p18948_p3 = scmp.lt.s32.totalorder %s18946_s13, %s18939_s11 }
  0x31   : > { %p18942_p11 = pnand %p18940_p9, %p19242_p2 }
  0x32   : > { %p18949_p12 = por %p18948_p3, %p18947_p8 }
  0x33   : > { %p18943_p13 = pneg %p18942_p11 }
  0x35   : > { %p18950_p10 = pnand %p18949_p12, %p18943_p13 }
  0x37   : > { %18953 = shalt.err (!%p18950_p10)
}
  0x38   : > { %18286 = dma.hbm_to_vmem [thread:$0]  (!%p19230_p0), %s21199_s2, 16, %s182_s12, [#allocation6]  }
  0x39   : > { %s19115_s23 = smov [#allocation2]   ;;  %s18954_s26 = scalar_lea.hbm %s21177_s1, 1152 }
  0x3a   : > { %s167_s28 = sshll.u32 %s19115_s23, 4  ;;  %p18955_p3 = scmp.ne.s32.totalorder %s21177_s1, %s18954_s26  ;;  %s168_s28 = int_to_ptr.vmem [resolvable:$true] %s167_s28 }
  0x3b   : > { %p18961_p12 = scmp.lt.u32.totalorder %s18954_s26, %s21177_s1 }
  0x3c   : > { %p18957_p8 = pnand %p18955_p3, %p19242_p2 }
  0x3e   : > { %p18958_p10 = pneg %p18957_p8 }
  0x40   : > { %p18963_p1 = pnand %p18961_p12, %p18958_p10 }
  0x42   : > { %18966 = shalt.err (!%p18963_p1)
}
  0x43   : > { %s18967_s12 = scalar_lea.vmem %s168_s28, 1152  ;;  %p18975_p7 = scmp.lt.s32.totalorder %s168_s28, %s168_s28 }
  0x44   : > { %p18968_p4 = scmp.ne.s32.totalorder %s168_s28, %s18967_s12  ;;  %p18976_p9 = scmp.lt.s32.totalorder %s18967_s12, %s18967_s12 }
  0x46   : > { %p18970_p5 = pnand %p18968_p4, %p19242_p2  ;;  %p18977_p11 = por %p18976_p9, %p18975_p7 }
  0x48   : > { %p18971_p6 = pneg %p18970_p5 }
  0x4a   : > { %p18978_p13 = pnand %p18977_p11, %p18971_p6 }
  0x4c   : > { %18981 = shalt.err (!%p18978_p13)
}
  0x4d   : > { %s19116_s21 = smov 64   ;;  %s19117_s25 = smov 4  }
  0x4e   : > { %18283 = dma.hbm_to_vmem [thread:$0]  (!%p19230_p0), %s21177_s1, 1152, %s168_s28, [#allocation3], %s19116_s21, %s19116_s21, %s19117_s25  }
  0x4f   : > { %s19118_s24 = smov [#allocation7]   ;;  %s18982_s11 = scalar_lea.hbm %s21179_s3, 16 }
  0x50   : > { %s192_s23 = sshll.u32 %s19118_s24, 4  ;;  %p18983_p3 = scmp.ne.s32.totalorder %s21179_s3, %s18982_s11  ;;  %s193_s23 = int_to_ptr.vmem [resolvable:$true] %s192_s23 }
  0x51   : > { %p18989_p12 = scmp.lt.u32.totalorder %s18982_s11, %s21179_s3 }
  0x52   : > { %p18985_p8 = pnand %p18983_p3, %p19242_p2 }
  0x54   : > { %p18986_p10 = pneg %p18985_p8 }
  0x56   : > { %p18991_p1 = pnand %p18989_p12, %p18986_p10 }
  0x58   : > { %18994 = shalt.err (!%p18991_p1)
}
  0x59   : > { %s18995_s28 = scalar_lea.vmem %s193_s23, 16  ;;  %s19002_s21 = scalar_lea.vmem %s193_s23, 32 }
  0x5a   : > { %p18996_p4 = scmp.ne.s32.totalorder %s193_s23, %s18995_s28  ;;  %p19003_p7 = scmp.lt.s32.totalorder %s193_s23, %s193_s23 }
  0x5b   : > { %p19004_p9 = scmp.lt.s32.totalorder %s19002_s21, %s18995_s28 }
  0x5c   : > { %p18998_p5 = pnand %p18996_p4, %p19242_p2 }
  0x5d   : > { %p19005_p11 = por %p19004_p9, %p19003_p7 }
  0x5e   : > { %p18999_p6 = pneg %p18998_p5 }
  0x60   : > { %p19006_p13 = pnand %p19005_p11, %p18999_p6 }
  0x62   : > { %19009 = shalt.err (!%p19006_p13)
}
  0x63   : > { %18289 = dma.hbm_to_vmem [thread:$0]  (!%p19230_p0), %s21179_s3, 16, %s193_s23, [#allocation6]  }
  0x64   : > { %p21201_p3 = scmp.ne.s32.totalorder %s21196_s7, 0 }
  0x65   : > { %p21202_p8 = scmp.ne.s32.totalorder (!%p21201_p3), %s21197_s8, 0 }
  0x66   : > { %217 = sbr.rel (%p21201_p3) target bundleno = 1504 (0x5e0), region = 36 }
  0x6d   : > { %19071 = dma.done.wait (%p21202_p8), [#allocation3], 1152  }
  0x6e   : > { %19073 = vsyncadd (%p21202_p8), [#allocation3], 4294966144 }
  0x6f   : > { %19075 = dma.done.wait (%p21202_p8), [#allocation6], 32  }
  0x70   : > { %19077 = vsyncadd (%p21202_p8), [#allocation6], 4294967264  ;;  %p255_p0 = scmp.lt.s32.totalorder %s19100_s19, 1  ;;  %p257_p2 = scmp.lt.s32.totalorder %s19096_s18, 1  ;;  %vm441_vm0 = vcmask 1045504   ;;  %vm392_vm1 = vcmask 97280  }
  0x71   : > { %v18372_v0 = vld [vmem:[#allocation2 + $0x8] sm:$0x3f]   ;;  %v18377_v4 = vld [vmem:[#allocation2] sm:$0x3f]   ;;  %v18410_v30 = vld [vmem:[#allocation2 + $0x10] sm:$0x3f]  }
  0x72   : > { %s256_s2 = scalar_select %p255_p0, %s19100_s19, 1  ;;  %v18373_v1 = vld [vmem:[#allocation2 + $0x8] sm:$0x3f]   ;;  %18228 = vmatprep.subr.msk.bf16.mxu0 %vm441_vm0, %v18372_v0  ;;  %v443_v2 = vsel %vm441_vm0, %v18372_v0, 0  ;;  %v620_v8 = vsel %vm441_vm0, %v18377_v4, 0  ;;  %v952_v44 = vsel %vm441_vm0, %v18410_v30, 0 }
  0x73   : > { %s258_s20 = scalar_select %p257_p2, %s19096_s18, 1  ;;  %18237 = vmatprep.subr.msk.bf16.mxu1 %vm441_vm0, %v18373_v1  ;;  %15981 = vmatpush3.bf16.msra.mxu0 %v443_v2  ;;  %v3645_v3 = vsel %vm441_vm0, %v18373_v1, 0  ;;  %v18379_v10 = vld [vmem:[#allocation2] sm:$0x3f]   ;;  %v18411_v31 = vld [vmem:[#allocation2 + $0x10] sm:$0x3f]  }
  0x74   : > { %s18265_s7 = smul.u32 432, %s256_s2  ;;  %16287 = vmatpush3.bf16.msra.mxu1 %v3645_v3  ;;  %18229 = vmatprep.subr.msk.bf16.mxu0 %vm441_vm0, %v18377_v4  ;;  %v3822_v12 = vsel %vm441_vm0, %v18379_v10, 0  ;;  %v4153_v45 = vsel %vm441_vm0, %v18411_v31, 0  ;;  %v18415_v46 = vld [vmem:[#allocation2 + $0x18] sm:$0x3f]   ;;  %s252_s5 = sand.u32 1, %s19088_s16  }
  0x75   : > { %s18264_s10 = smul.u32 216, %s258_s20  ;;  %18238 = vmatprep.subr.msk.bf16.mxu1 %vm441_vm0, %v18379_v10  ;;  %v18417_v47 = vld [vmem:[#allocation2 + $0x18] sm:$0x3f]   ;;  %v1317_v51 = vsel %vm441_vm0, %v18415_v46, 0  ;;  %v19507_v56 = vld [vmem:[#allocation2 + $0x20] sm:$0x3f]  }
  0x76   : > { %v4516_v52 = vsel %vm441_vm0, %v18417_v47, 0  ;;  %v19510_v57 = vld [vmem:[#allocation2 + $0x20] sm:$0x3f]   ;;  %s20244_s6 = sshll.u32 %s252_s5, 10  ;;  %s15367_s13 = sshll.u32 %s19096_s18, 7 }
  0x77   : > { %s261_s27 = sadd.s32 %s18265_s7, %s18264_s10  ;;  %s20269_s11 = scalar_lea.vmem [#allocation8], %s20244_s6 }
  0x78   : > { %s13167_s8 = sshll.u32 %s261_s27, 2  ;;  %s15363_s12 = sshll.u32 %s19100_s19, 8 }
  0x79   : > { %s19315_s23 = scalar_lea.vmem %s21176_s0, %s13167_s8  ;;  %s21089_s18 = sadd.s32 %s15367_s13, %s15363_s12 }
  0x7a   : > { %v19318_v5 = vld [vmem:[%s19315_s23 + $0x8] sm:$0xff]   ;;  %v19321_v6 = vld [vmem:[%s19315_s23 + $0x98] sm:$0xff]   ;;  %v19327_v7 = vld [vmem:[%s19315_s23 + $0x10] sm:$0xff]   ;;  %s15364_s19 = sshll.u32 %s21089_s18, 7  ;;  %s13039_s28 = sshll.u32 %s20269_s11, 4  ;;  %s21115_s28 = int_to_ptr.vmem [resolvable:$true] %s13039_s28 }
  0x7b   : > { %15982 = vmatprep.mubr.msk.bf16.mxu0 %vm392_vm1, %v19318_v5  ;;  %16288 = vmatprep.mubr.msk.bf16.mxu1 %vm392_vm1, %v19321_v6  ;;  %v19333_v9 = vld [vmem:[%s19315_s23 + $0xa0] sm:$0xff]   ;;  %v19340_v11 = vld [vmem:[%s19315_s23 + $0x18] sm:$0xff]   ;;  %v19345_v13 = vld [vmem:[%s19315_s23 + $0xa8] sm:$0xff]   ;;  %s21113_s14 = scalar_lea.hbm %s21180_s4, %s15364_s19  ;;  %s21124_s2 = scalar_lea.sflag [#allocation4], %s252_s5 }
  0x7c   : > { %15983 = vmatmul.mubr.msk.bf16.vlgmr.msra.gmra.mrb[0].mxu0 %vm392_vm1, %v19327_v7  ;;  %16289 = vmatmul.mubr.msk.bf16.vlgmr.msra.gmra.mrb[0].mxu1 %vm392_vm1, %v19333_v9  ;;  %v19350_v14 = vld [vmem:[%s19315_s23 + $0x20] sm:$0xff]   ;;  %v19355_v15 = vld [vmem:[%s19315_s23 + $0xb0] sm:$0xff]   ;;  %v19358_v16 = vld [vmem:[%s19315_s23 + $0x28] sm:$0xff]   ;;  %s19010_s20 = scalar_lea.vmem %s21115_s28, 16384  ;;  %p21203_p12 = scmp.ne.s32.totalorder %s21193_s29, 0 }
  0x7d   : > { %16015 = vmatpush3.bf16.msra.mxu0 %v620_v8  ;;  %16321 = vmatpush3.bf16.msra.mxu1 %v3822_v12  ;;  %v19361_v17 = vld [vmem:[%s19315_s23 + $0xb8] sm:$0xff]   ;;  %v19372_v18 = vld [vmem:[%s19315_s23 + $0x30] sm:$0xff]   ;;  %v19375_v19 = vld [vmem:[%s19315_s23 + $0xc0] sm:$0xff]   ;;  %p19011_p10 = scmp.ne.s32.totalorder %s21115_s28, %s19010_s20  ;;  %s19119_s7 = smov [#allocation8]  }
  0x7e   : > { %15986 = vmatprep.mubr.msk.bf16.mxu0 %vm392_vm1, %v19340_v11  ;;  %16292 = vmatprep.mubr.msk.bf16.mxu1 %vm392_vm1, %v19345_v13  ;;  %v19378_v20 = vld [vmem:[%s19315_s23 + $0x38] sm:$0xff]   ;;  %v19381_v21 = vld [vmem:[%s19315_s23 + $0xc8] sm:$0xff]   ;;  %v19392_v22 = vld [vmem:[%s19315_s23 + $0x40] sm:$0xff]   ;;  %s19014_s10 = sshll.u32 %s19119_s7, 4  ;;  %s19015_s10 = int_to_ptr.vmem [resolvable:$false] %s19014_s10 }
  0x7f   : > { %v19395_v23 = vld [vmem:[%s19315_s23 + $0xd0] sm:$0xff]   ;;  %v19398_v24 = vld [vmem:[%s19315_s23 + $0x48] sm:$0xff]   ;;  %v19401_v25 = vld [vmem:[%s19315_s23 + $0xd8] sm:$0xff]   ;;  %18230 = vmatprep.subr.msk.bf16.mxu0 %vm441_vm0, %v18410_v30  ;;  %18239 = vmatprep.subr.msk.bf16.mxu1 %vm441_vm0, %v18411_v31  ;;  %p19012_p1 = pnand %p19011_p10, %p21203_p12  ;;  %s19016_s27 = scalar_lea.vmem %s19015_s10, 32768 }
  0x80   : > { %v18394_v26 = vld [vmem:[%s19315_s23 + $0x50] sm:$0xff]   ;;  %v18395_v27 = vld [vmem:[%s19315_s23 + $0xe0] sm:$0xff]   ;;  %v18396_v28 = vld [vmem:[%s19315_s23 + $0x58] sm:$0xff]   ;;  %p19017_p5 = scmp.lt.s32.totalorder %s21115_s28, %s19015_s10  ;;  %p19018_p6 = scmp.lt.s32.totalorder %s19016_s27, %s19010_s20 }
  0x81   : > { %v18397_v29 = vld [vmem:[%s19315_s23 + $0xe8] sm:$0xff]   ;;  %v18398_v32 = vld [vmem:[%s19315_s23 + $0x60] sm:$0xff]   ;;  %v18399_v33 = vld [vmem:[%s19315_s23 + $0xf0] sm:$0xff]   ;;  %p19013_p4 = pneg %p19012_p1 }
  0x82   : > { %v18400_v34 = vld [vmem:[%s19315_s23 + $0x68] sm:$0xff]   ;;  %v18401_v35 = vld [vmem:[%s19315_s23 + $0xf8] sm:$0xff]   ;;  %v18402_v36 = vld [vmem:[%s19315_s23 + $0x70] sm:$0xff]   ;;  %p19019_p7 = por %p19018_p6, %p19017_p5 }
  0x83   : > { %v18403_v37 = vld [vmem:[%s19315_s23 + $0x100] sm:$0xff]   ;;  %v18404_v38 = vld [vmem:[%s19315_s23 + $0x78] sm:$0xff]   ;;  %v18405_v39 = vld [vmem:[%s19315_s23 + $0x108] sm:$0xff]  }
  0x84   : > { %15987 = vmatmul.mubr.msk.bf16.gmra.mrb[4].mxu0 %vm392_vm1, %v19350_v14  ;;  %16293 = vmatmul.mubr.msk.bf16.gmra.mrb[4].mxu1 %vm392_vm1, %v19355_v15  ;;  %v18406_v40 = vld [vmem:[%s19315_s23 + $0x80] sm:$0xff]   ;;  %v18407_v41 = vld [vmem:[%s19315_s23 + $0x110] sm:$0xff]   ;;  %v18414_v50 = vld [vmem:[%s19315_s23 + $0x18] sm:$0xff]   ;;  %p19020_p9 = pnand %p19019_p7, %p19013_p4 }
  0x85   : > { %15990 = vmatprep.mubr.msk.bf16.mxu0 %vm392_vm1, %v19358_v16  ;;  %16296 = vmatprep.mubr.msk.bf16.mxu1 %vm392_vm1, %v19361_v17  ;;  %v18408_v42 = vld [vmem:[%s19315_s23] sm:$0xff]   ;;  %v18409_v43 = vld [vmem:[%s19315_s23 + $0x90] sm:$0xff]   ;;  %v18416_v53 = vld [vmem:[%s19315_s23 + $0xa8] sm:$0xff]  }
  0x86   : > { %v18412_v48 = vld [vmem:[%s19315_s23 + $0x10] sm:$0xff]   ;;  %v18413_v49 = vld [vmem:[%s19315_s23 + $0xa0] sm:$0xff]   ;;  %v18420_v58 = vld [vmem:[%s19315_s23 + $0x28] sm:$0xff]  }
  0x87   : > { %v18418_v54 = vld [vmem:[%s19315_s23 + $0x20] sm:$0xff]   ;;  %v18419_v55 = vld [vmem:[%s19315_s23 + $0xb0] sm:$0xff]   ;;  %v18421_v59 = vld [vmem:[%s19315_s23 + $0xb8] sm:$0xff]  }
  0x88   : > { %v18422_v60 = vld [vmem:[%s19315_s23 + $0x30] sm:$0xff]   ;;  %v18423_v61 = vld [vmem:[%s19315_s23 + $0xc0] sm:$0xff]   ;;  %v18424_v62 = vld [vmem:[%s19315_s23 + $0x38] sm:$0xff]  }
  0x89   : > { %v18425_v63 = vld [vmem:[%s19315_s23 + $0xc8] sm:$0xff]   ;;  %v18426_v0 = vld [vmem:[%s19315_s23 + $0x40] sm:$0xff]   ;;  %v18427_v1 = vld [vmem:[%s19315_s23 + $0xd0] sm:$0xff]  }
  0x8a   : > { %v18428_v2 = vld [vmem:[%s19315_s23 + $0x48] sm:$0xff]   ;;  %v18429_v3 = vld [vmem:[%s19315_s23 + $0xd8] sm:$0xff]   ;;  %v18430_v4 = vld [vmem:[%s19315_s23 + $0x50] sm:$0xff]  }
  0x8b   : > { %v18434_v8 = vld [vmem:[%s19315_s23 + $0x60] sm:$0xff]   ;;  %v18436_v10 = vld [vmem:[%s19315_s23 + $0x68] sm:$0xff]   ;;  %v18438_v12 = vld [vmem:[%s19315_s23 + $0x70] sm:$0xff]  }
  0x8c   : > { %15991 = vmatmul.mubr.msk.bf16.gmra.mrb[8].mxu0 %vm392_vm1, %v19372_v18  ;;  %16297 = vmatmul.mubr.msk.bf16.gmra.mrb[8].mxu1 %vm392_vm1, %v19375_v19  ;;  %v18454_v30 = vld [vmem:[%s19315_s23 + $0xa8] sm:$0xff]   ;;  %v18455_v31 = vld [vmem:[%s19315_s23 + $0x138] sm:$0xff]  }
  0x8d   : > { %15994 = vmatprep.mubr.msk.bf16.mxu0 %vm392_vm1, %v19378_v20  ;;  %16300 = vmatprep.mubr.msk.bf16.mxu1 %vm392_vm1, %v19381_v21 }
  0x94   : > { %15995 = vmatmul.mubr.msk.bf16.gmra.mrb[12].mxu0 %vm392_vm1, %v19392_v22  ;;  %16301 = vmatmul.mubr.msk.bf16.gmra.mrb[12].mxu1 %vm392_vm1, %v19395_v23 }
  0x95   : > { %15998 = vmatprep.mubr.msk.bf16.mxu0 %vm392_vm1, %v19398_v24  ;;  %16304 = vmatprep.mubr.msk.bf16.mxu1 %vm392_vm1, %v19401_v25 }
  0x9c   : > { %15999 = vmatmul.mubr.msk.bf16.gmra.mrb[16].mxu0 %vm392_vm1, %v18394_v26  ;;  %16305 = vmatmul.mubr.msk.bf16.gmra.mrb[16].mxu1 %vm392_vm1, %v18395_v27 }
  0x9d   : > { %16002 = vmatprep.mubr.msk.bf16.mxu0 %vm392_vm1, %v18396_v28  ;;  %16308 = vmatprep.mubr.msk.bf16.mxu1 %vm392_vm1, %v18397_v29 }
  0xa4   : > { %16003 = vmatmul.mubr.msk.bf16.gmra.mrb[20].mxu0 %vm392_vm1, %v18398_v32  ;;  %16309 = vmatmul.mubr.msk.bf16.gmra.mrb[20].mxu1 %vm392_vm1, %v18399_v33 }
  0xa5   : > { %16006 = vmatprep.mubr.msk.bf16.mxu0 %vm392_vm1, %v18400_v34  ;;  %16312 = vmatprep.mubr.msk.bf16.mxu1 %vm392_vm1, %v18401_v35 }
  0xac   : > { %16007 = vmatmul.mubr.msk.bf16.gmra.mrb[24].mxu0 %vm392_vm1, %v18402_v36  ;;  %16313 = vmatmul.mubr.msk.bf16.gmra.mrb[24].mxu1 %vm392_vm1, %v18403_v37 }
  0xad   : > { %16010 = vmatprep.mubr.msk.bf16.mxu0 %vm392_vm1, %v18404_v38  ;;  %16316 = vmatprep.mubr.msk.bf16.mxu1 %vm392_vm1, %v18405_v39 }
  0xb4   : > { %16011 = vmatmul.mubr.msk.bf16.gmra.mrb[28].mxu0 %vm392_vm1, %v18406_v40  ;;  %16317 = vmatmul.mubr.msk.bf16.gmra.mrb[28].mxu1 %vm392_vm1, %v18407_v41  ;;  %v18464_v40 = vld [vmem:[%s19315_s23 + $0xd0] sm:$0xff]   ;;  %v18465_v41 = vld [vmem:[%s19315_s23 + $0x160] sm:$0xff]  }
  0xb5   : > { %16016 = vmatprep.mubr.msk.bf16.mxu0 %vm392_vm1, %v18408_v42  ;;  %16322 = vmatprep.mubr.msk.bf16.mxu1 %vm392_vm1, %v18409_v43  ;;  %v18466_v42 = vld [vmem:[%s19315_s23 + $0xd8] sm:$0xff]   ;;  %v18467_v43 = vld [vmem:[%s19315_s23 + $0x168] sm:$0xff]  }
  0xbc   : > { %16017 = vmatmul.mubr.msk.bf16.vlgmr.msra.gmra.mrb[0].mxu0 %vm392_vm1, %v19318_v5  ;;  %16323 = vmatmul.mubr.msk.bf16.vlgmr.msra.gmra.mrb[0].mxu1 %vm392_vm1, %v19321_v6  ;;  %v18431_v5 = vld [vmem:[%s19315_s23 + $0xe0] sm:$0xff]   ;;  %v18432_v6 = vld [vmem:[%s19315_s23 + $0x58] sm:$0xff]  }
  0xbd   : > { %16049 = vmatpush3.bf16.msra.mxu0 %v952_v44  ;;  %16355 = vmatpush3.bf16.msra.mxu1 %v4153_v45  ;;  %v18468_v44 = vld [vmem:[%s19315_s23 + $0xe0] sm:$0xff]   ;;  %v18469_v45 = vld [vmem:[%s19315_s23 + $0x170] sm:$0xff]  }
  0xbe   : > { %16020 = vmatprep.mubr.msk.bf16.mxu0 %vm392_vm1, %v19327_v7  ;;  %16326 = vmatprep.mubr.msk.bf16.mxu1 %vm392_vm1, %v19333_v9  ;;  %v18433_v7 = vld [vmem:[%s19315_s23 + $0xe8] sm:$0xff]   ;;  %v18435_v9 = vld [vmem:[%s19315_s23 + $0xf0] sm:$0xff]  }
  0xbf   : > { %18231 = vmatprep.subr.msk.bf16.mxu0 %vm441_vm0, %v18415_v46  ;;  %18240 = vmatprep.subr.msk.bf16.mxu1 %vm441_vm0, %v18417_v47  ;;  %v18470_v46 = vld [vmem:[%s19315_s23 + $0xe8] sm:$0xff]   ;;  %v18471_v47 = vld [vmem:[%s19315_s23 + $0x178] sm:$0xff]  }
  0xc4   : > { %16021 = vmatmul.mubr.msk.bf16.gmra.mrb[4].mxu0 %vm392_vm1, %v19340_v11  ;;  %16327 = vmatmul.mubr.msk.bf16.gmra.mrb[4].mxu1 %vm392_vm1, %v19345_v13  ;;  %v18437_v11 = vld [vmem:[%s19315_s23 + $0xf8] sm:$0xff]   ;;  %v18439_v13 = vld [vmem:[%s19315_s23 + $0x100] sm:$0xff]  }
  0xc5   : > { %16024 = vmatprep.mubr.msk.bf16.mxu0 %vm392_vm1, %v19350_v14  ;;  %16330 = vmatprep.mubr.msk.bf16.mxu1 %vm392_vm1, %v19355_v15  ;;  %v18440_v14 = vld [vmem:[%s19315_s23 + $0x78] sm:$0xff]   ;;  %v18441_v15 = vld [vmem:[%s19315_s23 + $0x108] sm:$0xff]  }
  0xcc   : > { %16025 = vmatmul.mubr.msk.bf16.gmra.mrb[8].mxu0 %vm392_vm1, %v19358_v16  ;;  %16331 = vmatmul.mubr.msk.bf16.gmra.mrb[8].mxu1 %vm392_vm1, %v19361_v17  ;;  %v18442_v16 = vld [vmem:[%s19315_s23 + $0x80] sm:$0xff]   ;;  %v18443_v17 = vld [vmem:[%s19315_s23 + $0x110] sm:$0xff]  }
  0xcd   : > { %16028 = vmatprep.mubr.msk.bf16.mxu0 %vm392_vm1, %v19372_v18  ;;  %16334 = vmatprep.mubr.msk.bf16.mxu1 %vm392_vm1, %v19375_v19  ;;  %v18444_v18 = vld [vmem:[%s19315_s23 + $0x88] sm:$0xff]   ;;  %v18445_v19 = vld [vmem:[%s19315_s23 + $0x118] sm:$0xff]  }
  0xd4   : > { %16029 = vmatmul.mubr.msk.bf16.gmra.mrb[12].mxu0 %vm392_vm1, %v19378_v20  ;;  %16335 = vmatmul.mubr.msk.bf16.gmra.mrb[12].mxu1 %vm392_vm1, %v19381_v21  ;;  %v18446_v20 = vld [vmem:[%s19315_s23 + $0x90] sm:$0xff]   ;;  %v18447_v21 = vld [vmem:[%s19315_s23 + $0x120] sm:$0xff]  }
  0xd5   : > { %16032 = vmatprep.mubr.msk.bf16.mxu0 %vm392_vm1, %v19392_v22  ;;  %16338 = vmatprep.mubr.msk.bf16.mxu1 %vm392_vm1, %v19395_v23  ;;  %v18448_v22 = vld [vmem:[%s19315_s23 + $0x98] sm:$0xff]   ;;  %v1681_v23 = vsel %vm441_vm0, %v19507_v56, 0 }
  0xdc   : > { %16033 = vmatmul.mubr.msk.bf16.gmra.mrb[16].mxu0 %vm392_vm1, %v19398_v24  ;;  %16339 = vmatmul.mubr.msk.bf16.gmra.mrb[16].mxu1 %vm392_vm1, %v19401_v25  ;;  %v4879_v24 = vsel %vm441_vm0, %v19510_v57, 0  ;;  %v18450_v25 = vld [vmem:[%s19315_s23 + $0x128] sm:$0xff]  }
  0xdd   : > { %16036 = vmatprep.mubr.msk.bf16.mxu0 %vm392_vm1, %v18394_v26  ;;  %16342 = vmatprep.mubr.msk.bf16.mxu1 %vm392_vm1, %v18395_v27  ;;  %v18452_v26 = vld [vmem:[%s19315_s23 + $0xa0] sm:$0xff]   ;;  %v18453_v27 = vld [vmem:[%s19315_s23 + $0x130] sm:$0xff]  }
  0xe4   : > { %16037 = vmatmul.mubr.msk.bf16.gmra.mrb[20].mxu0 %vm392_vm1, %v18396_v28  ;;  %16343 = vmatmul.mubr.msk.bf16.gmra.mrb[20].mxu1 %vm392_vm1, %v18397_v29  ;;  %v19583_v28 = vld [vmem:[#allocation2 + $0x28] sm:$0x3f]  }
  0xe5   : > { %16040 = vmatprep.mubr.msk.bf16.mxu0 %vm392_vm1, %v18398_v32  ;;  %16346 = vmatprep.mubr.msk.bf16.mxu1 %vm392_vm1, %v18399_v33  ;;  %v19586_v29 = vld [vmem:[#allocation2 + $0x28] sm:$0x3f]   ;;  %v18456_v32 = vld [vmem:[%s19315_s23 + $0xb0] sm:$0xff]   ;;  %v18457_v33 = vld [vmem:[%s19315_s23 + $0x140] sm:$0xff]  }
  0xec   : > { %16041 = vmatmul.mubr.msk.bf16.gmra.mrb[24].mxu0 %vm392_vm1, %v18400_v34  ;;  %16347 = vmatmul.mubr.msk.bf16.gmra.mrb[24].mxu1 %vm392_vm1, %v18401_v35  ;;  %v18458_v34 = vld [vmem:[%s19315_s23 + $0xb8] sm:$0xff]   ;;  %v18459_v35 = vld [vmem:[%s19315_s23 + $0x148] sm:$0xff]  }
  0xed   : > { %16044 = vmatprep.mubr.msk.bf16.mxu0 %vm392_vm1, %v18402_v36  ;;  %16350 = vmatprep.mubr.msk.bf16.mxu1 %vm392_vm1, %v18403_v37  ;;  %v18460_v36 = vld [vmem:[%s19315_s23 + $0xc0] sm:$0xff]   ;;  %v18461_v37 = vld [vmem:[%s19315_s23 + $0x150] sm:$0xff]  }
  0xf4   : > { %16045 = vmatmul.mubr.msk.bf16.gmra.mrb[28].mxu0 %vm392_vm1, %v18404_v38  ;;  %16351 = vmatmul.mubr.msk.bf16.gmra.mrb[28].mxu1 %vm392_vm1, %v18405_v39  ;;  %v18462_v38 = vld [vmem:[%s19315_s23 + $0xc8] sm:$0xff]   ;;  %v18463_v39 = vld [vmem:[%s19315_s23 + $0x158] sm:$0xff]  }
  0xf5   : > { %16050 = vmatprep.mubr.msk.bf16.mxu0 %vm392_vm1, %v18412_v48  ;;  %16356 = vmatprep.mubr.msk.bf16.mxu1 %vm392_vm1, %v18413_v49  ;;  %v18472_v48 = vld [vmem:[%s19315_s23 + $0xf0] sm:$0xff]   ;;  %v18473_v49 = vld [vmem:[%s19315_s23 + $0x180] sm:$0xff]  }
  0xfc   : > { %16051 = vmatmul.mubr.msk.bf16.vlgmr.msra.gmra.mrb[0].mxu0 %vm392_vm1, %v18414_v50  ;;  %16357 = vmatmul.mubr.msk.bf16.vlgmr.msra.gmra.mrb[0].mxu1 %vm392_vm1, %v18416_v53  ;;  %v18474_v50 = vld [vmem:[%s19315_s23 + $0xf8] sm:$0xff]   ;;  %v18477_v53 = vld [vmem:[%s19315_s23 + $0x190] sm:$0xff]  }
  0xfd   : > { %16083 = vmatpush3.bf16.msra.mxu0 %v1317_v51  ;;  %16389 = vmatpush3.bf16.msra.mxu1 %v4516_v52  ;;  %v18475_v51 = vld [vmem:[%s19315_s23 + $0x188] sm:$0xff]   ;;  %v18476_v52 = vld [vmem:[%s19315_s23 + $0x100] sm:$0xff]  }
  0xfe   : > { %16054 = vmatprep.mubr.msk.bf16.mxu0 %vm392_vm1, %v18418_v54  ;;  %16360 = vmatprep.mubr.msk.bf16.mxu1 %vm392_vm1, %v18419_v55  ;;  %v18478_v54 = vld [vmem:[%s19315_s23 + $0x108] sm:$0xff]   ;;  %v18479_v55 = vld [vmem:[%s19315_s23 + $0x198] sm:$0xff]  }
  0xff   : > { %18232 = vmatprep.subr.msk.bf16.mxu0 %vm441_vm0, %v19507_v56  ;;  %18241 = vmatprep.subr.msk.bf16.mxu1 %vm441_vm0, %v19510_v57  ;;  %v18480_v56 = vld [vmem:[%s19315_s23 + $0x98] sm:$0xff]   ;;  %v18481_v57 = vld [vmem:[%s19315_s23 + $0x128] sm:$0xff]  }
 0x104   : > { %16055 = vmatmul.mubr.msk.bf16.gmra.mrb[4].mxu0 %vm392_vm1, %v18420_v58  ;;  %16361 = vmatmul.mubr.msk.bf16.gmra.mrb[4].mxu1 %vm392_vm1, %v18421_v59  ;;  %v18482_v58 = vld [vmem:[%s19315_s23 + $0xa0] sm:$0xff]   ;;  %v2045_v59 = vsel %vm441_vm0, %v19583_v28, 0 }
 0x105   : > { %16058 = vmatprep.mubr.msk.bf16.mxu0 %vm392_vm1, %v18422_v60  ;;  %16364 = vmatprep.mubr.msk.bf16.mxu1 %vm392_vm1, %v18423_v61  ;;  %v5242_v60 = vsel %vm441_vm0, %v19586_v29, 0  ;;  %v18484_v61 = vld [vmem:[%s19315_s23 + $0x130] sm:$0xff]  }
 0x10c   : > { %16059 = vmatmul.mubr.msk.bf16.gmra.mrb[8].mxu0 %vm392_vm1, %v18424_v62  ;;  %16365 = vmatmul.mubr.msk.bf16.gmra.mrb[8].mxu1 %vm392_vm1, %v18425_v63  ;;  %v18486_v62 = vld [vmem:[%s19315_s23 + $0xa8] sm:$0xff]   ;;  %v18487_v63 = vld [vmem:[%s19315_s23 + $0x138] sm:$0xff]  }
 0x10d   : > { %16062 = vmatprep.mubr.msk.bf16.mxu0 %vm392_vm1, %v18426_v0  ;;  %16368 = vmatprep.mubr.msk.bf16.mxu1 %vm392_vm1, %v18427_v1  ;;  %v19659_v0 = vld [vmem:[#allocation2 + $0x30] sm:$0x3f]  }
 0x10e   : > { %v19662_v1 = vld [vmem:[#allocation2 + $0x30] sm:$0x3f]  }
 0x114   : > { %16063 = vmatmul.mubr.msk.bf16.gmra.mrb[12].mxu0 %vm392_vm1, %v18428_v2  ;;  %16369 = vmatmul.mubr.msk.bf16.gmra.mrb[12].mxu1 %vm392_vm1, %v18429_v3  ;;  %v18488_v2 = vld [vmem:[%s19315_s23 + $0xb0] sm:$0xff]   ;;  %v18489_v3 = vld [vmem:[%s19315_s23 + $0x140] sm:$0xff]  }
 0x115   : > { %16066 = vmatprep.mubr.msk.bf16.mxu0 %vm392_vm1, %v18430_v4  ;;  %16372 = vmatprep.mubr.msk.bf16.mxu1 %vm392_vm1, %v18431_v5  ;;  %v18490_v4 = vld [vmem:[%s19315_s23 + $0xb8] sm:$0xff]   ;;  %v18491_v5 = vld [vmem:[%s19315_s23 + $0x148] sm:$0xff]  }
 0x11c   : > { %16067 = vmatmul.mubr.msk.bf16.gmra.mrb[16].mxu0 %vm392_vm1, %v18432_v6  ;;  %16373 = vmatmul.mubr.msk.bf16.gmra.mrb[16].mxu1 %vm392_vm1, %v18433_v7  ;;  %v18492_v6 = vld [vmem:[%s19315_s23 + $0xc0] sm:$0xff]   ;;  %v18493_v7 = vld [vmem:[%s19315_s23 + $0x150] sm:$0xff]  }
 0x11d   : > { %16070 = vmatprep.mubr.msk.bf16.mxu0 %vm392_vm1, %v18434_v8  ;;  %16376 = vmatprep.mubr.msk.bf16.mxu1 %vm392_vm1, %v18435_v9  ;;  %v18494_v8 = vld [vmem:[%s19315_s23 + $0xc8] sm:$0xff]   ;;  %v18495_v9 = vld [vmem:[%s19315_s23 + $0x158] sm:$0xff]  }
 0x124   : > { %16071 = vmatmul.mubr.msk.bf16.gmra.mrb[20].mxu0 %vm392_vm1, %v18436_v10  ;;  %16377 = vmatmul.mubr.msk.bf16.gmra.mrb[20].mxu1 %vm392_vm1, %v18437_v11  ;;  %v18496_v10 = vld [vmem:[%s19315_s23 + $0xd0] sm:$0xff]   ;;  %v18497_v11 = vld [vmem:[%s19315_s23 + $0x160] sm:$0xff]  }
 0x125   : > { %16074 = vmatprep.mubr.msk.bf16.mxu0 %vm392_vm1, %v18438_v12  ;;  %16380 = vmatprep.mubr.msk.bf16.mxu1 %vm392_vm1, %v18439_v13  ;;  %v18498_v12 = vld [vmem:[%s19315_s23 + $0xd8] sm:$0xff]   ;;  %v18499_v13 = vld [vmem:[%s19315_s23 + $0x168] sm:$0xff]  }
 0x12c   : > { %16075 = vmatmul.mubr.msk.bf16.gmra.mrb[24].mxu0 %vm392_vm1, %v18440_v14  ;;  %16381 = vmatmul.mubr.msk.bf16.gmra.mrb[24].mxu1 %vm392_vm1, %v18441_v15  ;;  %v18500_v14 = vld [vmem:[%s19315_s23 + $0xe0] sm:$0xff]   ;;  %v18501_v15 = vld [vmem:[%s19315_s23 + $0x170] sm:$0xff]  }
 0x12d   : > { %16078 = vmatprep.mubr.msk.bf16.mxu0 %vm392_vm1, %v18442_v16  ;;  %16384 = vmatprep.mubr.msk.bf16.mxu1 %vm392_vm1, %v18443_v17  ;;  %v18502_v16 = vld [vmem:[%s19315_s23 + $0xe8] sm:$0xff]   ;;  %v18503_v17 = vld [vmem:[%s19315_s23 + $0x178] sm:$0xff]  }
 0x134   : > { %16079 = vmatmul.mubr.msk.bf16.gmra.mrb[28].mxu0 %vm392_vm1, %v18444_v18  ;;  %16385 = vmatmul.mubr.msk.bf16.gmra.mrb[28].mxu1 %vm392_vm1, %v18445_v19  ;;  %v18504_v18 = vld [vmem:[%s19315_s23 + $0xf0] sm:$0xff]   ;;  %v18505_v19 = vld [vmem:[%s19315_s23 + $0x180] sm:$0xff]  }
 0x135   : > { %16084 = vmatprep.mubr.msk.bf16.mxu0 %vm392_vm1, %v18446_v20  ;;  %16390 = vmatprep.mubr.msk.bf16.mxu1 %vm392_vm1, %v18447_v21  ;;  %v18506_v20 = vld [vmem:[%s19315_s23 + $0xf8] sm:$0xff]   ;;  %v18507_v21 = vld [vmem:[%s19315_s23 + $0x188] sm:$0xff]  }
 0x13c   : > { %16085 = vmatmul.mubr.msk.bf16.vlgmr.msra.gmra.mrb[0].mxu0 %vm392_vm1, %v18448_v22  ;;  %16391 = vmatmul.mubr.msk.bf16.vlgmr.msra.gmra.mrb[0].mxu1 %vm392_vm1, %v18450_v25  ;;  %v18508_v22 = vld [vmem:[%s19315_s23 + $0x100] sm:$0xff]   ;;  %v18511_v25 = vld [vmem:[%s19315_s23 + $0x198] sm:$0xff]  }
 0x13d   : > { %16117 = vmatpush3.bf16.msra.mxu0 %v1681_v23  ;;  %16423 = vmatpush3.bf16.msra.mxu1 %v4879_v24  ;;  %v18509_v23 = vld [vmem:[%s19315_s23 + $0x190] sm:$0xff]   ;;  %v18510_v24 = vld [vmem:[%s19315_s23 + $0x108] sm:$0xff]  }
 0x13e   : > { %16088 = vmatprep.mubr.msk.bf16.mxu0 %vm392_vm1, %v18452_v26  ;;  %16394 = vmatprep.mubr.msk.bf16.mxu1 %vm392_vm1, %v18453_v27  ;;  %v18512_v26 = vld [vmem:[%s19315_s23 + $0x110] sm:$0xff]   ;;  %v18513_v27 = vld [vmem:[%s19315_s23 + $0x1a0] sm:$0xff]  }
 0x13f   : > { %18233 = vmatprep.subr.msk.bf16.mxu0 %vm441_vm0, %v19583_v28  ;;  %18242 = vmatprep.subr.msk.bf16.mxu1 %vm441_vm0, %v19586_v29  ;;  %v18514_v28 = vld [vmem:[%s19315_s23 + $0xa0] sm:$0xff]   ;;  %v18515_v29 = vld [vmem:[%s19315_s23 + $0x130] sm:$0xff]  }
 0x144   : > { %16089 = vmatmul.mubr.msk.bf16.gmra.mrb[4].mxu0 %vm392_vm1, %v18454_v30  ;;  %16395 = vmatmul.mubr.msk.bf16.gmra.mrb[4].mxu1 %vm392_vm1, %v18455_v31  ;;  %v18516_v30 = vld [vmem:[%s19315_s23 + $0xa8] sm:$0xff]   ;;  %v2410_v31 = vsel %vm441_vm0, %v19659_v0, 0 }
 0x145   : > { %16092 = vmatprep.mubr.msk.bf16.mxu0 %vm392_vm1, %v18456_v32  ;;  %16398 = vmatprep.mubr.msk.bf16.mxu1 %vm392_vm1, %v18457_v33  ;;  %v5606_v32 = vsel %vm441_vm0, %v19662_v1, 0  ;;  %v18518_v33 = vld [vmem:[%s19315_s23 + $0x138] sm:$0xff]  }
 0x14c   : > { %16093 = vmatmul.mubr.msk.bf16.gmra.mrb[8].mxu0 %vm392_vm1, %v18458_v34  ;;  %16399 = vmatmul.mubr.msk.bf16.gmra.mrb[8].mxu1 %vm392_vm1, %v18459_v35  ;;  %v18520_v34 = vld [vmem:[%s19315_s23 + $0xb0] sm:$0xff]   ;;  %v18521_v35 = vld [vmem:[%s19315_s23 + $0x140] sm:$0xff]  }
 0x14d   : > { %16096 = vmatprep.mubr.msk.bf16.mxu0 %vm392_vm1, %v18460_v36  ;;  %16402 = vmatprep.mubr.msk.bf16.mxu1 %vm392_vm1, %v18461_v37  ;;  %v19735_v36 = vld [vmem:[#allocation2 + $0x38] sm:$0x3f]  }
 0x14e   : > { %v19738_v37 = vld [vmem:[#allocation2 + $0x38] sm:$0x3f]  }
 0x154   : > { %16097 = vmatmul.mubr.msk.bf16.gmra.mrb[12].mxu0 %vm392_vm1, %v18462_v38  ;;  %16403 = vmatmul.mubr.msk.bf16.gmra.mrb[12].mxu1 %vm392_vm1, %v18463_v39  ;;  %v18522_v38 = vld [vmem:[%s19315_s23 + $0xb8] sm:$0xff]   ;;  %v18523_v39 = vld [vmem:[%s19315_s23 + $0x148] sm:$0xff]  }
 0x155   : > { %16100 = vmatprep.mubr.msk.bf16.mxu0 %vm392_vm1, %v18464_v40  ;;  %16406 = vmatprep.mubr.msk.bf16.mxu1 %vm392_vm1, %v18465_v41  ;;  %v18524_v40 = vld [vmem:[%s19315_s23 + $0xc0] sm:$0xff]   ;;  %v18525_v41 = vld [vmem:[%s19315_s23 + $0x150] sm:$0xff]  }
 0x15c   : > { %16101 = vmatmul.mubr.msk.bf16.gmra.mrb[16].mxu0 %vm392_vm1, %v18466_v42  ;;  %16407 = vmatmul.mubr.msk.bf16.gmra.mrb[16].mxu1 %vm392_vm1, %v18467_v43  ;;  %v18526_v42 = vld [vmem:[%s19315_s23 + $0xc8] sm:$0xff]   ;;  %v18527_v43 = vld [vmem:[%s19315_s23 + $0x158] sm:$0xff]  }
 0x15d   : > { %16104 = vmatprep.mubr.msk.bf16.mxu0 %vm392_vm1, %v18468_v44  ;;  %16410 = vmatprep.mubr.msk.bf16.mxu1 %vm392_vm1, %v18469_v45  ;;  %v18528_v44 = vld [vmem:[%s19315_s23 + $0xd0] sm:$0xff]   ;;  %v18529_v45 = vld [vmem:[%s19315_s23 + $0x160] sm:$0xff]  }
 0x164   : > { %16105 = vmatmul.mubr.msk.bf16.gmra.mrb[20].mxu0 %vm392_vm1, %v18470_v46  ;;  %16411 = vmatmul.mubr.msk.bf16.gmra.mrb[20].mxu1 %vm392_vm1, %v18471_v47  ;;  %v18530_v46 = vld [vmem:[%s19315_s23 + $0xd8] sm:$0xff]   ;;  %v18531_v47 = vld [vmem:[%s19315_s23 + $0x168] sm:$0xff]  }
 0x165   : > { %16108 = vmatprep.mubr.msk.bf16.mxu0 %vm392_vm1, %v18472_v48  ;;  %16414 = vmatprep.mubr.msk.bf16.mxu1 %vm392_vm1, %v18473_v49  ;;  %v18532_v48 = vld [vmem:[%s19315_s23 + $0xe0] sm:$0xff]   ;;  %v18533_v49 = vld [vmem:[%s19315_s23 + $0x170] sm:$0xff]  }
 0x16c   : > { %16109 = vmatmul.mubr.msk.bf16.gmra.mrb[24].mxu0 %vm392_vm1, %v18474_v50  ;;  %16415 = vmatmul.mubr.msk.bf16.gmra.mrb[24].mxu1 %vm392_vm1, %v18475_v51  ;;  %v18534_v50 = vld [vmem:[%s19315_s23 + $0xe8] sm:$0xff]   ;;  %v18535_v51 = vld [vmem:[%s19315_s23 + $0x178] sm:$0xff]  }
 0x16d   : > { %16112 = vmatprep.mubr.msk.bf16.mxu0 %vm392_vm1, %v18476_v52  ;;  %16418 = vmatprep.mubr.msk.bf16.mxu1 %vm392_vm1, %v18477_v53  ;;  %v18536_v52 = vld [vmem:[%s19315_s23 + $0xf0] sm:$0xff]   ;;  %v18537_v53 = vld [vmem:[%s19315_s23 + $0x180] sm:$0xff]  }
 0x174   : > { %16113 = vmatmul.mubr.msk.bf16.gmra.mrb[28].mxu0 %vm392_vm1, %v18478_v54  ;;  %16419 = vmatmul.mubr.msk.bf16.gmra.mrb[28].mxu1 %vm392_vm1, %v18479_v55  ;;  %v18538_v54 = vld [vmem:[%s19315_s23 + $0xf8] sm:$0xff]   ;;  %v18539_v55 = vld [vmem:[%s19315_s23 + $0x188] sm:$0xff]  }
 0x175   : > { %16118 = vmatprep.mubr.msk.bf16.mxu0 %vm392_vm1, %v18480_v56  ;;  %16424 = vmatprep.mubr.msk.bf16.mxu1 %vm392_vm1, %v18481_v57  ;;  %v18540_v56 = vld [vmem:[%s19315_s23 + $0x100] sm:$0xff]   ;;  %v18541_v57 = vld [vmem:[%s19315_s23 + $0x190] sm:$0xff]  }
 0x17c   : > { %16119 = vmatmul.mubr.msk.bf16.vlgmr.msra.gmra.mrb[0].mxu0 %vm392_vm1, %v18482_v58  ;;  %16425 = vmatmul.mubr.msk.bf16.vlgmr.msra.gmra.mrb[0].mxu1 %vm392_vm1, %v18484_v61  ;;  %v18542_v58 = vld [vmem:[%s19315_s23 + $0x108] sm:$0xff]   ;;  %v18545_v61 = vld [vmem:[%s19315_s23 + $0x1a0] sm:$0xff]  }
 0x17d   : > { %16151 = vmatpush3.bf16.msra.mxu0 %v2045_v59  ;;  %16457 = vmatpush3.bf16.msra.mxu1 %v5242_v60  ;;  %v18543_v59 = vld [vmem:[%s19315_s23 + $0x198] sm:$0xff]   ;;  %v18544_v60 = vld [vmem:[%s19315_s23 + $0x110] sm:$0xff]  }
 0x17e   : > { %16122 = vmatprep.mubr.msk.bf16.mxu0 %vm392_vm1, %v18486_v62  ;;  %16428 = vmatprep.mubr.msk.bf16.mxu1 %vm392_vm1, %v18487_v63  ;;  %v18546_v62 = vld [vmem:[%s19315_s23 + $0x118] sm:$0xff]   ;;  %v18547_v63 = vld [vmem:[%s19315_s23 + $0x1a8] sm:$0xff]  }
 0x17f   : > { %18234 = vmatprep.subr.msk.bf16.mxu0 %vm441_vm0, %v19659_v0  ;;  %18243 = vmatprep.subr.msk.bf16.mxu1 %vm441_vm0, %v19662_v1  ;;  %v18548_v0 = vld [vmem:[%s19315_s23 + $0x120] sm:$0xff]   ;;  %v18549_v1 = vld [vmem:[%s19315_s23 + $0x1b0] sm:$0xff]  }
 0x184   : > { %16123 = vmatmul.mubr.msk.bf16.gmra.mrb[4].mxu0 %vm392_vm1, %v18488_v2  ;;  %16429 = vmatmul.mubr.msk.bf16.gmra.mrb[4].mxu1 %vm392_vm1, %v18489_v3  ;;  %v18550_v2 = vld [vmem:[%s19315_s23 + $0x128] sm:$0xff]   ;;  %v2774_v3 = vsel %vm441_vm0, %v19735_v36, 0 }
 0x185   : > { %16126 = vmatprep.mubr.msk.bf16.mxu0 %vm392_vm1, %v18490_v4  ;;  %16432 = vmatprep.mubr.msk.bf16.mxu1 %vm392_vm1, %v18491_v5  ;;  %v5969_v4 = vsel %vm441_vm0, %v19738_v37, 0  ;;  %v18552_v5 = vld [vmem:[%s19315_s23 + $0x1b8] sm:$0xff]  }
 0x18c   : > { %16127 = vmatmul.mubr.msk.bf16.gmra.mrb[8].mxu0 %vm392_vm1, %v18492_v6  ;;  %16433 = vmatmul.mubr.msk.bf16.gmra.mrb[8].mxu1 %vm392_vm1, %v18493_v7  ;;  %v18554_v6 = vld [vmem:[%s19315_s23 + $0x130] sm:$0xff]   ;;  %v18555_v7 = vld [vmem:[%s19315_s23 + $0x1c0] sm:$0xff]  }
 0x18d   : > { %16130 = vmatprep.mubr.msk.bf16.mxu0 %vm392_vm1, %v18494_v8  ;;  %16436 = vmatprep.mubr.msk.bf16.mxu1 %vm392_vm1, %v18495_v9  ;;  %v19811_v8 = vld [vmem:[#allocation2 + $0x40] sm:$0x3f]  }
 0x18e   : > { %v19813_v9 = vld [vmem:[#allocation2 + $0x40] sm:$0x3f]  }
 0x194   : > { %16131 = vmatmul.mubr.msk.bf16.gmra.mrb[12].mxu0 %vm392_vm1, %v18496_v10  ;;  %16437 = vmatmul.mubr.msk.bf16.gmra.mrb[12].mxu1 %vm392_vm1, %v18497_v11  ;;  %v18556_v10 = vld [vmem:[%s19315_s23 + $0x138] sm:$0xff]   ;;  %v18557_v11 = vld [vmem:[%s19315_s23 + $0x1c8] sm:$0xff]  }
 0x195   : > { %16134 = vmatprep.mubr.msk.bf16.mxu0 %vm392_vm1, %v18498_v12  ;;  %16440 = vmatprep.mubr.msk.bf16.mxu1 %vm392_vm1, %v18499_v13  ;;  %v18558_v12 = vld [vmem:[%s19315_s23 + $0x140] sm:$0xff]   ;;  %v18559_v13 = vld [vmem:[%s19315_s23 + $0x1d0] sm:$0xff]  }
 0x19c   : > { %16135 = vmatmul.mubr.msk.bf16.gmra.mrb[16].mxu0 %vm392_vm1, %v18500_v14  ;;  %16441 = vmatmul.mubr.msk.bf16.gmra.mrb[16].mxu1 %vm392_vm1, %v18501_v15  ;;  %v18560_v14 = vld [vmem:[%s19315_s23 + $0x148] sm:$0xff]   ;;  %v18561_v15 = vld [vmem:[%s19315_s23 + $0x1d8] sm:$0xff]  }
 0x19d   : > { %16138 = vmatprep.mubr.msk.bf16.mxu0 %vm392_vm1, %v18502_v16  ;;  %16444 = vmatprep.mubr.msk.bf16.mxu1 %vm392_vm1, %v18503_v17  ;;  %v18562_v16 = vld [vmem:[%s19315_s23 + $0x150] sm:$0xff]   ;;  %v18563_v17 = vld [vmem:[%s19315_s23 + $0x1e0] sm:$0xff]  }
 0x1a4   : > { %16139 = vmatmul.mubr.msk.bf16.gmra.mrb[20].mxu0 %vm392_vm1, %v18504_v18  ;;  %16445 = vmatmul.mubr.msk.bf16.gmra.mrb[20].mxu1 %vm392_vm1, %v18505_v19  ;;  %v18564_v18 = vld [vmem:[%s19315_s23 + $0x158] sm:$0xff]   ;;  %v18565_v19 = vld [vmem:[%s19315_s23 + $0x1e8] sm:$0xff]  }
 0x1a5   : > { %16142 = vmatprep.mubr.msk.bf16.mxu0 %vm392_vm1, %v18506_v20  ;;  %16448 = vmatprep.mubr.msk.bf16.mxu1 %vm392_vm1, %v18507_v21  ;;  %v18566_v20 = vld [vmem:[%s19315_s23 + $0x160] sm:$0xff]   ;;  %v18567_v21 = vld [vmem:[%s19315_s23 + $0x1f0] sm:$0xff]  }
 0x1ac   : > { %16143 = vmatmul.mubr.msk.bf16.gmra.mrb[24].mxu0 %vm392_vm1, %v18508_v22  ;;  %16449 = vmatmul.mubr.msk.bf16.gmra.mrb[24].mxu1 %vm392_vm1, %v18509_v23  ;;  %v18568_v22 = vld [vmem:[%s19315_s23 + $0x168] sm:$0xff]   ;;  %v18569_v23 = vld [vmem:[%s19315_s23 + $0x1f8] sm:$0xff]  }
 0x1ad   : > { %16146 = vmatprep.mubr.msk.bf16.mxu0 %vm392_vm1, %v18510_v24  ;;  %16452 = vmatprep.mubr.msk.bf16.mxu1 %vm392_vm1, %v18511_v25  ;;  %v18570_v24 = vld [vmem:[%s19315_s23 + $0x170] sm:$0xff]   ;;  %v18571_v25 = vld [vmem:[%s19315_s23 + $0x200] sm:$0xff]  }
 0x1b4   : > { %16147 = vmatmul.mubr.msk.bf16.gmra.mrb[28].mxu0 %vm392_vm1, %v18512_v26  ;;  %16453 = vmatmul.mubr.msk.bf16.gmra.mrb[28].mxu1 %vm392_vm1, %v18513_v27  ;;  %v18572_v26 = vld [vmem:[%s19315_s23 + $0x178] sm:$0xff]   ;;  %v18573_v27 = vld [vmem:[%s19315_s23 + $0x208] sm:$0xff]  }
 0x1b5   : > { %16152 = vmatprep.mubr.msk.bf16.mxu0 %vm392_vm1, %v18514_v28  ;;  %16458 = vmatprep.mubr.msk.bf16.mxu1 %vm392_vm1, %v18515_v29  ;;  %v18574_v28 = vld [vmem:[%s19315_s23 + $0x180] sm:$0xff]   ;;  %v18575_v29 = vld [vmem:[%s19315_s23 + $0x210] sm:$0xff]  }
 0x1bc   : > { %16153 = vmatmul.mubr.msk.bf16.vlgmr.msra.gmra.mrb[0].mxu0 %vm392_vm1, %v18516_v30  ;;  %16459 = vmatmul.mubr.msk.bf16.vlgmr.msra.gmra.mrb[0].mxu1 %vm392_vm1, %v18518_v33  ;;  %v18576_v30 = vld [vmem:[%s19315_s23 + $0x188] sm:$0xff]   ;;  %v18579_v33 = vld [vmem:[%s19315_s23 + $0x220] sm:$0xff]  }
 0x1bd   : > { %16185 = vmatpush3.bf16.msra.mxu0 %v2410_v31  ;;  %16491 = vmatpush3.bf16.msra.mxu1 %v5606_v32  ;;  %v18577_v31 = vld [vmem:[%s19315_s23 + $0x218] sm:$0xff]   ;;  %v18578_v32 = vld [vmem:[%s19315_s23 + $0x190] sm:$0xff]  }
 0x1be   : > { %16156 = vmatprep.mubr.msk.bf16.mxu0 %vm392_vm1, %v18520_v34  ;;  %16462 = vmatprep.mubr.msk.bf16.mxu1 %vm392_vm1, %v18521_v35  ;;  %v18580_v34 = vld [vmem:[%s19315_s23 + $0x198] sm:$0xff]   ;;  %v18581_v35 = vld [vmem:[%s19315_s23 + $0x228] sm:$0xff]  }
 0x1bf   : > { %18235 = vmatprep.subr.msk.bf16.mxu0 %vm441_vm0, %v19735_v36  ;;  %18244 = vmatprep.subr.msk.bf16.mxu1 %vm441_vm0, %v19738_v37  ;;  %v18582_v36 = vld [vmem:[%s19315_s23 + $0x128] sm:$0xff]   ;;  %v18583_v37 = vld [vmem:[%s19315_s23 + $0x1b8] sm:$0xff]  }
 0x1c4   : > { %16157 = vmatmul.mubr.msk.bf16.gmra.mrb[4].mxu0 %vm392_vm1, %v18522_v38  ;;  %16463 = vmatmul.mubr.msk.bf16.gmra.mrb[4].mxu1 %vm392_vm1, %v18523_v39  ;;  %v18584_v38 = vld [vmem:[%s19315_s23 + $0x130] sm:$0xff]   ;;  %v3138_v39 = vsel %vm441_vm0, %v19811_v8, 0 }
 0x1c5   : > { %16160 = vmatprep.mubr.msk.bf16.mxu0 %vm392_vm1, %v18524_v40  ;;  %16466 = vmatprep.mubr.msk.bf16.mxu1 %vm392_vm1, %v18525_v41  ;;  %v6332_v40 = vsel %vm441_vm0, %v19813_v9, 0  ;;  %v18586_v41 = vld [vmem:[%s19315_s23 + $0x1c0] sm:$0xff]  }
 0x1cc   : > { %16161 = vmatmul.mubr.msk.bf16.gmra.mrb[8].mxu0 %vm392_vm1, %v18526_v42  ;;  %16467 = vmatmul.mubr.msk.bf16.gmra.mrb[8].mxu1 %vm392_vm1, %v18527_v43  ;;  %v18588_v42 = vld [vmem:[%s19315_s23 + $0x138] sm:$0xff]   ;;  %v18589_v43 = vld [vmem:[%s19315_s23 + $0x1c8] sm:$0xff]  }
 0x1cd   : > { %16164 = vmatprep.mubr.msk.bf16.mxu0 %vm392_vm1, %v18528_v44  ;;  %16470 = vmatprep.mubr.msk.bf16.mxu1 %vm392_vm1, %v18529_v45  ;;  %v19887_v44 = vld [vmem:[#allocation2 + $0x8] sm:$0x3f]  }
 0x1ce   : > { %v19890_v45 = vld [vmem:[#allocation2 + $0x8] sm:$0x3f]  }
 0x1d4   : > { %16165 = vmatmul.mubr.msk.bf16.gmra.mrb[12].mxu0 %vm392_vm1, %v18530_v46  ;;  %16471 = vmatmul.mubr.msk.bf16.gmra.mrb[12].mxu1 %vm392_vm1, %v18531_v47  ;;  %v18590_v46 = vld [vmem:[%s19315_s23 + $0x140] sm:$0xff]   ;;  %v18591_v47 = vld [vmem:[%s19315_s23 + $0x1d0] sm:$0xff]  }
 0x1d5   : > { %16168 = vmatprep.mubr.msk.bf16.mxu0 %vm392_vm1, %v18532_v48  ;;  %16474 = vmatprep.mubr.msk.bf16.mxu1 %vm392_vm1, %v18533_v49  ;;  %v18592_v48 = vld [vmem:[%s19315_s23 + $0x148] sm:$0xff]   ;;  %v18593_v49 = vld [vmem:[%s19315_s23 + $0x1d8] sm:$0xff]  }
 0x1dc   : > { %16169 = vmatmul.mubr.msk.bf16.gmra.mrb[16].mxu0 %vm392_vm1, %v18534_v50  ;;  %16475 = vmatmul.mubr.msk.bf16.gmra.mrb[16].mxu1 %vm392_vm1, %v18535_v51  ;;  %v18594_v50 = vld [vmem:[%s19315_s23 + $0x150] sm:$0xff]   ;;  %v18595_v51 = vld [vmem:[%s19315_s23 + $0x1e0] sm:$0xff]  }
 0x1dd   : > { %16172 = vmatprep.mubr.msk.bf16.mxu0 %vm392_vm1, %v18536_v52  ;;  %16478 = vmatprep.mubr.msk.bf16.mxu1 %vm392_vm1, %v18537_v53  ;;  %v18596_v52 = vld [vmem:[%s19315_s23 + $0x158] sm:$0xff]   ;;  %v18597_v53 = vld [vmem:[%s19315_s23 + $0x1e8] sm:$0xff]  }
 0x1e4   : > { %16173 = vmatmul.mubr.msk.bf16.gmra.mrb[20].mxu0 %vm392_vm1, %v18538_v54  ;;  %16479 = vmatmul.mubr.msk.bf16.gmra.mrb[20].mxu1 %vm392_vm1, %v18539_v55  ;;  %v18598_v54 = vld [vmem:[%s19315_s23 + $0x160] sm:$0xff]   ;;  %v18599_v55 = vld [vmem:[%s19315_s23 + $0x1f0] sm:$0xff]  }
 0x1e5   : > { %16176 = vmatprep.mubr.msk.bf16.mxu0 %vm392_vm1, %v18540_v56  ;;  %16482 = vmatprep.mubr.msk.bf16.mxu1 %vm392_vm1, %v18541_v57  ;;  %v18600_v56 = vld [vmem:[%s19315_s23 + $0x168] sm:$0xff]   ;;  %v18601_v57 = vld [vmem:[%s19315_s23 + $0x1f8] sm:$0xff]  }
 0x1ec   : > { %16177 = vmatmul.mubr.msk.bf16.gmra.mrb[24].mxu0 %vm392_vm1, %v18542_v58  ;;  %16483 = vmatmul.mubr.msk.bf16.gmra.mrb[24].mxu1 %vm392_vm1, %v18543_v59  ;;  %v18602_v58 = vld [vmem:[%s19315_s23 + $0x170] sm:$0xff]   ;;  %v18603_v59 = vld [vmem:[%s19315_s23 + $0x200] sm:$0xff]  }
 0x1ed   : > { %16180 = vmatprep.mubr.msk.bf16.mxu0 %vm392_vm1, %v18544_v60  ;;  %16486 = vmatprep.mubr.msk.bf16.mxu1 %vm392_vm1, %v18545_v61  ;;  %v18604_v60 = vld [vmem:[%s19315_s23 + $0x178] sm:$0xff]   ;;  %v18605_v61 = vld [vmem:[%s19315_s23 + $0x208] sm:$0xff]  }
 0x1f4   : > { %16181 = vmatmul.mubr.msk.bf16.gmra.mrb[28].mxu0 %vm392_vm1, %v18546_v62  ;;  %16487 = vmatmul.mubr.msk.bf16.gmra.mrb[28].mxu1 %vm392_vm1, %v18547_v63  ;;  %v18606_v62 = vld [vmem:[%s19315_s23 + $0x180] sm:$0xff]   ;;  %v18607_v63 = vld [vmem:[%s19315_s23 + $0x210] sm:$0xff]  }
 0x1f5   : > { %16186 = vmatprep.mubr.msk.bf16.mxu0 %vm392_vm1, %v18548_v0  ;;  %16492 = vmatprep.mubr.msk.bf16.mxu1 %vm392_vm1, %v18549_v1  ;;  %v18608_v0 = vld [vmem:[%s19315_s23 + $0x188] sm:$0xff]   ;;  %v18609_v1 = vld [vmem:[%s19315_s23 + $0x218] sm:$0xff]  }
 0x1fc   : > { %16187 = vmatmul.mubr.msk.bf16.vlgmr.msra.gmra.mrb[0].mxu0 %vm392_vm1, %v18550_v2  ;;  %16493 = vmatmul.mubr.msk.bf16.vlgmr.msra.gmra.mrb[0].mxu1 %vm392_vm1, %v18552_v5  ;;  %v18610_v2 = vld [vmem:[%s19315_s23 + $0x190] sm:$0xff]   ;;  %v18613_v5 = vld [vmem:[%s19315_s23 + $0x228] sm:$0xff]  }
 0x1fd   : > { %16219 = vmatpush3.bf16.msra.mxu0 %v2774_v3  ;;  %16525 = vmatpush3.bf16.msra.mxu1 %v5969_v4  ;;  %v18611_v3 = vld [vmem:[%s19315_s23 + $0x220] sm:$0xff]   ;;  %v18612_v4 = vld [vmem:[%s19315_s23 + $0x198] sm:$0xff]  }
 0x1fe   : > { %16190 = vmatprep.mubr.msk.bf16.mxu0 %vm392_vm1, %v18554_v6  ;;  %16496 = vmatprep.mubr.msk.bf16.mxu1 %vm392_vm1, %v18555_v7  ;;  %v18614_v6 = vld [vmem:[%s19315_s23 + $0x1a0] sm:$0xff]   ;;  %v18615_v7 = vld [vmem:[%s19315_s23 + $0x230] sm:$0xff]  }
 0x1ff   : > { %18236 = vmatprep.subr.msk.bf16.mxu0 %vm441_vm0, %v19811_v8  ;;  %18245 = vmatprep.subr.msk.bf16.mxu1 %vm441_vm0, %v19813_v9  ;;  %v18616_v8 = vld [vmem:[%s19315_s23 + $0x130] sm:$0xff]   ;;  %v18617_v9 = vld [vmem:[%s19315_s23 + $0x1c0] sm:$0xff]  }
 0x204   : > { %16191 = vmatmul.mubr.msk.bf16.gmra.mrb[4].mxu0 %vm392_vm1, %v18556_v10  ;;  %16497 = vmatmul.mubr.msk.bf16.gmra.mrb[4].mxu1 %vm392_vm1, %v18557_v11  ;;  %v18618_v10 = vld [vmem:[%s19315_s23 + $0x138] sm:$0xff]   ;;  %v18619_v11 = vld [vmem:[%s19315_s23 + $0x1c8] sm:$0xff]  }
 0x205   : > { %16194 = vmatprep.mubr.msk.bf16.mxu0 %vm392_vm1, %v18558_v12  ;;  %16500 = vmatprep.mubr.msk.bf16.mxu1 %vm392_vm1, %v18559_v13  ;;  %v6828_v12 = vsel %vm441_vm0, %v19887_v44, 0  ;;  %v18622_v13 = vld [vmem:[%s19315_s23 + $0x140] sm:$0xff]  }
 0x20c   : > { %16195 = vmatmul.mubr.msk.bf16.gmra.mrb[8].mxu0 %vm392_vm1, %v18560_v14  ;;  %16501 = vmatmul.mubr.msk.bf16.gmra.mrb[8].mxu1 %vm392_vm1, %v18561_v15  ;;  %v10011_v14 = vsel %vm441_vm0, %v19890_v45, 0  ;;  %v18623_v15 = vld [vmem:[%s19315_s23 + $0x1d0] sm:$0xff]  }
 0x20d   : > { %16198 = vmatprep.mubr.msk.bf16.mxu0 %vm392_vm1, %v18562_v16  ;;  %16504 = vmatprep.mubr.msk.bf16.mxu1 %vm392_vm1, %v18563_v17  ;;  %v19963_v16 = vld [vmem:[#allocation2] sm:$0x3f]  }
 0x20e   : > { %v19966_v17 = vld [vmem:[#allocation2] sm:$0x3f]  }
 0x214   : > { %16199 = vmatmul.mubr.msk.bf16.gmra.mrb[12].mxu0 %vm392_vm1, %v18564_v18  ;;  %16505 = vmatmul.mubr.msk.bf16.gmra.mrb[12].mxu1 %vm392_vm1, %v18565_v19  ;;  %v18624_v18 = vld [vmem:[%s19315_s23 + $0x148] sm:$0xff]   ;;  %v18625_v19 = vld [vmem:[%s19315_s23 + $0x1d8] sm:$0xff]  }
 0x215   : > { %16202 = vmatprep.mubr.msk.bf16.mxu0 %vm392_vm1, %v18566_v20  ;;  %16508 = vmatprep.mubr.msk.bf16.mxu1 %vm392_vm1, %v18567_v21  ;;  %v18626_v20 = vld [vmem:[%s19315_s23 + $0x150] sm:$0xff]   ;;  %v18627_v21 = vld [vmem:[%s19315_s23 + $0x1e0] sm:$0xff]  }
 0x21c   : > { %16203 = vmatmul.mubr.msk.bf16.gmra.mrb[16].mxu0 %vm392_vm1, %v18568_v22  ;;  %16509 = vmatmul.mubr.msk.bf16.gmra.mrb[16].mxu1 %vm392_vm1, %v18569_v23  ;;  %v18628_v22 = vld [vmem:[%s19315_s23 + $0x158] sm:$0xff]   ;;  %v18629_v23 = vld [vmem:[%s19315_s23 + $0x1e8] sm:$0xff]  }
 0x21d   : > { %16206 = vmatprep.mubr.msk.bf16.mxu0 %vm392_vm1, %v18570_v24  ;;  %16512 = vmatprep.mubr.msk.bf16.mxu1 %vm392_vm1, %v18571_v25  ;;  %v18630_v24 = vld [vmem:[%s19315_s23 + $0x160] sm:$0xff]   ;;  %v18631_v25 = vld [vmem:[%s19315_s23 + $0x1f0] sm:$0xff]  }
 0x224   : > { %16207 = vmatmul.mubr.msk.bf16.gmra.mrb[20].mxu0 %vm392_vm1, %v18572_v26  ;;  %16513 = vmatmul.mubr.msk.bf16.gmra.mrb[20].mxu1 %vm392_vm1, %v18573_v27  ;;  %v18632_v26 = vld [vmem:[%s19315_s23 + $0x168] sm:$0xff]   ;;  %v18633_v27 = vld [vmem:[%s19315_s23 + $0x1f8] sm:$0xff]  }
 0x225   : > { %16210 = vmatprep.mubr.msk.bf16.mxu0 %vm392_vm1, %v18574_v28  ;;  %16516 = vmatprep.mubr.msk.bf16.mxu1 %vm392_vm1, %v18575_v29  ;;  %v18634_v28 = vld [vmem:[%s19315_s23 + $0x170] sm:$0xff]   ;;  %v18635_v29 = vld [vmem:[%s19315_s23 + $0x200] sm:$0xff]  }
 0x22c   : > { %16211 = vmatmul.mubr.msk.bf16.gmra.mrb[24].mxu0 %vm392_vm1, %v18576_v30  ;;  %16517 = vmatmul.mubr.msk.bf16.gmra.mrb[24].mxu1 %vm392_vm1, %v18577_v31  ;;  %v18636_v30 = vld [vmem:[%s19315_s23 + $0x178] sm:$0xff]   ;;  %v18637_v31 = vld [vmem:[%s19315_s23 + $0x208] sm:$0xff]  }
 0x22d   : > { %16214 = vmatprep.mubr.msk.bf16.mxu0 %vm392_vm1, %v18578_v32  ;;  %16520 = vmatprep.mubr.msk.bf16.mxu1 %vm392_vm1, %v18579_v33  ;;  %v18638_v32 = vld [vmem:[%s19315_s23 + $0x180] sm:$0xff]   ;;  %v18639_v33 = vld [vmem:[%s19315_s23 + $0x210] sm:$0xff]  }
 0x234   : > { %16215 = vmatmul.mubr.msk.bf16.gmra.mrb[28].mxu0 %vm392_vm1, %v18580_v34  ;;  %16521 = vmatmul.mubr.msk.bf16.gmra.mrb[28].mxu1 %vm392_vm1, %v18581_v35  ;;  %v18640_v34 = vld [vmem:[%s19315_s23 + $0x188] sm:$0xff]   ;;  %v18641_v35 = vld [vmem:[%s19315_s23 + $0x218] sm:$0xff]  }
 0x235   : > { %16220 = vmatprep.mubr.msk.bf16.mxu0 %vm392_vm1, %v18582_v36  ;;  %16526 = vmatprep.mubr.msk.bf16.mxu1 %vm392_vm1, %v18583_v37  ;;  %v18642_v36 = vld [vmem:[%s19315_s23 + $0x190] sm:$0xff]   ;;  %v18643_v37 = vld [vmem:[%s19315_s23 + $0x220] sm:$0xff]  }
 0x23c   : > { %16221 = vmatmul.mubr.msk.bf16.vlgmr.msra.gmra.mrb[0].mxu0 %vm392_vm1, %v18584_v38  ;;  %16527 = vmatmul.mubr.msk.bf16.vlgmr.msra.gmra.mrb[0].mxu1 %vm392_vm1, %v18586_v41  ;;  %v18644_v38 = vld [vmem:[%s19315_s23 + $0x198] sm:$0xff]   ;;  %v18647_v41 = vld [vmem:[%s19315_s23 + $0x230] sm:$0xff]  }
 0x23d   : > { %16253 = vmatpush3.bf16.msra.mxu0 %v3138_v39  ;;  %16559 = vmatpush3.bf16.msra.mxu1 %v6332_v40  ;;  %v18645_v39 = vld [vmem:[%s19315_s23 + $0x228] sm:$0xff]   ;;  %v18646_v40 = vld [vmem:[%s19315_s23 + $0x1a0] sm:$0xff]  }
 0x23e   : > { %16224 = vmatprep.mubr.msk.bf16.mxu0 %vm392_vm1, %v18588_v42  ;;  %16530 = vmatprep.mubr.msk.bf16.mxu1 %vm392_vm1, %v18589_v43  ;;  %v18648_v42 = vld [vmem:[%s19315_s23 + $0x1a8] sm:$0xff]   ;;  %v18649_v43 = vld [vmem:[%s19315_s23 + $0x238] sm:$0xff]  }
 0x23f   : > { %18246 = vmatprep.subr.msk.bf16.mxu0 %vm441_vm0, %v19887_v44  ;;  %18255 = vmatprep.subr.msk.bf16.mxu1 %vm441_vm0, %v19890_v45  ;;  %v20026_v44 = vld [vmem:[%s19315_s23 + $0x128] sm:$0xff]   ;;  %v20029_v45 = vld [vmem:[%s19315_s23 + $0x1b8] sm:$0xff]  }
 0x244   : > { %16225 = vmatmul.mubr.msk.bf16.gmra.mrb[4].mxu0 %vm392_vm1, %v18590_v46  ;;  %16531 = vmatmul.mubr.msk.bf16.gmra.mrb[4].mxu1 %vm392_vm1, %v18591_v47  ;;  %v20038_v46 = vld [vmem:[%s19315_s23 + $0x130] sm:$0xff]   ;;  %v20041_v47 = vld [vmem:[%s19315_s23 + $0x1c0] sm:$0xff]  }
 0x245   : > { %16228 = vmatprep.mubr.msk.bf16.mxu0 %vm392_vm1, %v18592_v48  ;;  %16534 = vmatprep.mubr.msk.bf16.mxu1 %vm392_vm1, %v18593_v49  ;;  %v7005_v48 = vsel %vm441_vm0, %v19963_v16, 0  ;;  %v20046_v49 = vld [vmem:[%s19315_s23 + $0x138] sm:$0xff]  }
 0x24c   : > { %16229 = vmatmul.mubr.msk.bf16.gmra.mrb[8].mxu0 %vm392_vm1, %v18594_v50  ;;  %16535 = vmatmul.mubr.msk.bf16.gmra.mrb[8].mxu1 %vm392_vm1, %v18595_v51  ;;  %v10188_v50 = vsel %vm441_vm0, %v19966_v17, 0  ;;  %v20051_v51 = vld [vmem:[%s19315_s23 + $0x1c8] sm:$0xff]  }
 0x24d   : > { %16232 = vmatprep.mubr.msk.bf16.mxu0 %vm392_vm1, %v18596_v52  ;;  %16538 = vmatprep.mubr.msk.bf16.mxu1 %vm392_vm1, %v18597_v53  ;;  %v20053_v52 = vld [vmem:[#allocation2 + $0x10] sm:$0x3f]  }
 0x24e   : > { %v20057_v53 = vld [vmem:[#allocation2 + $0x10] sm:$0x3f]  }
 0x254   : > { %16233 = vmatmul.mubr.msk.bf16.gmra.mrb[12].mxu0 %vm392_vm1, %v18598_v54  ;;  %16539 = vmatmul.mubr.msk.bf16.gmra.mrb[12].mxu1 %vm392_vm1, %v18599_v55  ;;  %v20068_v54 = vld [vmem:[%s19315_s23 + $0x140] sm:$0xff]   ;;  %v20073_v55 = vld [vmem:[%s19315_s23 + $0x1d0] sm:$0xff]  }
 0x255   : > { %16236 = vmatprep.mubr.msk.bf16.mxu0 %vm392_vm1, %v18600_v56  ;;  %16542 = vmatprep.mubr.msk.bf16.mxu1 %vm392_vm1, %v18601_v57  ;;  %v20076_v56 = vld [vmem:[%s19315_s23 + $0x148] sm:$0xff]   ;;  %v20079_v57 = vld [vmem:[%s19315_s23 + $0x1d8] sm:$0xff]  }
 0x25c   : > { %16237 = vmatmul.mubr.msk.bf16.gmra.mrb[16].mxu0 %vm392_vm1, %v18602_v58  ;;  %16543 = vmatmul.mubr.msk.bf16.gmra.mrb[16].mxu1 %vm392_vm1, %v18603_v59  ;;  %v20090_v58 = vld [vmem:[%s19315_s23 + $0x150] sm:$0xff]   ;;  %v20093_v59 = vld [vmem:[%s19315_s23 + $0x1e0] sm:$0xff]  }
 0x25d   : > { %16240 = vmatprep.mubr.msk.bf16.mxu0 %vm392_vm1, %v18604_v60  ;;  %16546 = vmatprep.mubr.msk.bf16.mxu1 %vm392_vm1, %v18605_v61  ;;  %v20096_v60 = vld [vmem:[%s19315_s23 + $0x158] sm:$0xff]   ;;  %v20099_v61 = vld [vmem:[%s19315_s23 + $0x1e8] sm:$0xff]  }
 0x264   : > { %16241 = vmatmul.mubr.msk.bf16.gmra.mrb[20].mxu0 %vm392_vm1, %v18606_v62  ;;  %16547 = vmatmul.mubr.msk.bf16.gmra.mrb[20].mxu1 %vm392_vm1, %v18607_v63  ;;  %v18666_v62 = vld [vmem:[%s19315_s23 + $0x160] sm:$0xff]   ;;  %v18667_v63 = vld [vmem:[%s19315_s23 + $0x1f0] sm:$0xff]  }
 0x265   : > { %16244 = vmatprep.mubr.msk.bf16.mxu0 %vm392_vm1, %v18608_v0  ;;  %16550 = vmatprep.mubr.msk.bf16.mxu1 %vm392_vm1, %v18609_v1  ;;  %v18668_v0 = vld [vmem:[%s19315_s23 + $0x168] sm:$0xff]   ;;  %v18669_v1 = vld [vmem:[%s19315_s23 + $0x1f8] sm:$0xff]  }
 0x26c   : > { %16245 = vmatmul.mubr.msk.bf16.gmra.mrb[24].mxu0 %vm392_vm1, %v18610_v2  ;;  %16551 = vmatmul.mubr.msk.bf16.gmra.mrb[24].mxu1 %vm392_vm1, %v18611_v3  ;;  %v18670_v2 = vld [vmem:[%s19315_s23 + $0x170] sm:$0xff]   ;;  %v18671_v3 = vld [vmem:[%s19315_s23 + $0x200] sm:$0xff]  }
 0x26d   : > { %16248 = vmatprep.mubr.msk.bf16.mxu0 %vm392_vm1, %v18612_v4  ;;  %16554 = vmatprep.mubr.msk.bf16.mxu1 %vm392_vm1, %v18613_v5  ;;  %v18672_v4 = vld [vmem:[%s19315_s23 + $0x178] sm:$0xff]   ;;  %v18673_v5 = vld [vmem:[%s19315_s23 + $0x208] sm:$0xff]  }
 0x274   : > { %16249 = vmatmul.mubr.msk.bf16.gmra.mrb[28].mxu0 %vm392_vm1, %v18614_v6  ;;  %16555 = vmatmul.mubr.msk.bf16.gmra.mrb[28].mxu1 %vm392_vm1, %v18615_v7  ;;  %v18674_v6 = vld [vmem:[%s19315_s23 + $0x180] sm:$0xff]   ;;  %v18675_v7 = vld [vmem:[%s19315_s23 + $0x210] sm:$0xff]  }
 0x275   : > { %16254 = vmatprep.mubr.msk.bf16.mxu0 %vm392_vm1, %v18616_v8  ;;  %16560 = vmatprep.mubr.msk.bf16.mxu1 %vm392_vm1, %v18617_v9  ;;  %v18676_v8 = vld [vmem:[%s19315_s23 + $0x188] sm:$0xff]   ;;  %v18677_v9 = vld [vmem:[%s19315_s23 + $0x218] sm:$0xff]  }
 0x27c   : > { %16255 = vmatmul.mubr.msk.bf16.vlgmr.msra.gmra.mrb[0].mxu0 %vm392_vm1, %v18618_v10  ;;  %16561 = vmatmul.mubr.msk.bf16.vlgmr.msra.gmra.mrb[0].mxu1 %vm392_vm1, %v18619_v11  ;;  %v18678_v10 = vld [vmem:[%s19315_s23 + $0x190] sm:$0xff]   ;;  %v18679_v11 = vld [vmem:[%s19315_s23 + $0x220] sm:$0xff]  }
 0x27d   : > { %16593 = vmatpush3.bf16.msra.mxu0 %v6828_v12  ;;  %16899 = vmatpush3.bf16.msra.mxu1 %v10011_v14  ;;  %v18680_v12 = vld [vmem:[%s19315_s23 + $0x198] sm:$0xff]   ;;  %v18682_v14 = vld [vmem:[%s19315_s23 + $0x1a0] sm:$0xff]  }
 0x27e   : > { %16258 = vmatprep.mubr.msk.bf16.mxu0 %vm392_vm1, %v18622_v13  ;;  %16564 = vmatprep.mubr.msk.bf16.mxu1 %vm392_vm1, %v18623_v15  ;;  %v18681_v13 = vld [vmem:[%s19315_s23 + $0x228] sm:$0xff]   ;;  %v18683_v15 = vld [vmem:[%s19315_s23 + $0x230] sm:$0xff]  }
 0x27f   : > { %18247 = vmatprep.subr.msk.bf16.mxu0 %vm441_vm0, %v19963_v16  ;;  %18256 = vmatprep.subr.msk.bf16.mxu1 %vm441_vm0, %v19966_v17  ;;  %v18684_v16 = vld [vmem:[%s19315_s23 + $0x120] sm:$0xff]   ;;  %v18685_v17 = vld [vmem:[%s19315_s23 + $0x1b0] sm:$0xff]  }
 0x284   : > { %16259 = vmatmul.mubr.msk.bf16.gmra.mrb[4].mxu0 %vm392_vm1, %v18624_v18  ;;  %16565 = vmatmul.mubr.msk.bf16.gmra.mrb[4].mxu1 %vm392_vm1, %v18625_v19  ;;  %v7336_v18 = vsel %vm441_vm0, %v20053_v52, 0  ;;  %v10519_v19 = vsel %vm441_vm0, %v20057_v53, 0 }
 0x285   : > { %16262 = vmatprep.mubr.msk.bf16.mxu0 %vm392_vm1, %v18626_v20  ;;  %16568 = vmatprep.mubr.msk.bf16.mxu1 %vm392_vm1, %v18627_v21  ;;  %v18691_v20 = vld [vmem:[#allocation2 + $0x18] sm:$0x3f]  }
 0x286   : > { %v18693_v21 = vld [vmem:[#allocation2 + $0x18] sm:$0x3f]  }
 0x28c   : > { %16263 = vmatmul.mubr.msk.bf16.gmra.mrb[8].mxu0 %vm392_vm1, %v18628_v22  ;;  %16569 = vmatmul.mubr.msk.bf16.gmra.mrb[8].mxu1 %vm392_vm1, %v18629_v23  ;;  %v18688_v22 = vld [vmem:[%s19315_s23 + $0x130] sm:$0xff]   ;;  %v18689_v23 = vld [vmem:[%s19315_s23 + $0x1c0] sm:$0xff]  }
 0x28d   : > { %16266 = vmatprep.mubr.msk.bf16.mxu0 %vm392_vm1, %v18630_v24  ;;  %16572 = vmatprep.mubr.msk.bf16.mxu1 %vm392_vm1, %v18631_v25  ;;  %v18690_v24 = vld [vmem:[%s19315_s23 + $0x138] sm:$0xff]   ;;  %v18692_v25 = vld [vmem:[%s19315_s23 + $0x1c8] sm:$0xff]  }
 0x294   : > { %16267 = vmatmul.mubr.msk.bf16.gmra.mrb[12].mxu0 %vm392_vm1, %v18632_v26  ;;  %16573 = vmatmul.mubr.msk.bf16.gmra.mrb[12].mxu1 %vm392_vm1, %v18633_v27  ;;  %v7699_v26 = vsel %vm441_vm0, %v18691_v20, 0  ;;  %v18694_v27 = vld [vmem:[%s19315_s23 + $0x140] sm:$0xff]  }
 0x295   : > { %16270 = vmatprep.mubr.msk.bf16.mxu0 %vm392_vm1, %v18634_v28  ;;  %16576 = vmatprep.mubr.msk.bf16.mxu1 %vm392_vm1, %v18635_v29  ;;  %v10882_v28 = vsel %vm441_vm0, %v18693_v21, 0  ;;  %v18695_v29 = vld [vmem:[%s19315_s23 + $0x1d0] sm:$0xff]  }
 0x29c   : > { %16271 = vmatmul.mubr.msk.bf16.gmra.mrb[16].mxu0 %vm392_vm1, %v18636_v30  ;;  %16577 = vmatmul.mubr.msk.bf16.gmra.mrb[16].mxu1 %vm392_vm1, %v18637_v31  ;;  %v20209_v30 = vld [vmem:[#allocation2 + $0x20] sm:$0x3f]  }
 0x29d   : > { %16274 = vmatprep.mubr.msk.bf16.mxu0 %vm392_vm1, %v18638_v32  ;;  %16580 = vmatprep.mubr.msk.bf16.mxu1 %vm392_vm1, %v18639_v33  ;;  %v20212_v31 = vld [vmem:[#allocation2 + $0x20] sm:$0x3f]   ;;  %v18696_v32 = vld [vmem:[%s19315_s23 + $0x148] sm:$0xff]   ;;  %v18697_v33 = vld [vmem:[%s19315_s23 + $0x1d8] sm:$0xff]  }
 0x2a4   : > { %16275 = vmatmul.mubr.msk.bf16.gmra.mrb[20].mxu0 %vm392_vm1, %v18640_v34  ;;  %16581 = vmatmul.mubr.msk.bf16.gmra.mrb[20].mxu1 %vm392_vm1, %v18641_v35  ;;  %v18698_v34 = vld [vmem:[%s19315_s23 + $0x150] sm:$0xff]   ;;  %v18699_v35 = vld [vmem:[%s19315_s23 + $0x1e0] sm:$0xff]  }
 0x2a5   : > { %16278 = vmatprep.mubr.msk.bf16.mxu0 %vm392_vm1, %v18642_v36  ;;  %16584 = vmatprep.mubr.msk.bf16.mxu1 %vm392_vm1, %v18643_v37  ;;  %v18700_v36 = vld [vmem:[%s19315_s23 + $0x158] sm:$0xff]   ;;  %v18701_v37 = vld [vmem:[%s19315_s23 + $0x1e8] sm:$0xff]  }
 0x2ac   : > { %16279 = vmatmul.mubr.msk.bf16.gmra.mrb[24].mxu0 %vm392_vm1, %v18644_v38  ;;  %16585 = vmatmul.mubr.msk.bf16.gmra.mrb[24].mxu1 %vm392_vm1, %v18645_v39  ;;  %v18702_v38 = vld [vmem:[%s19315_s23 + $0x160] sm:$0xff]   ;;  %v18703_v39 = vld [vmem:[%s19315_s23 + $0x1f0] sm:$0xff]  }
 0x2ad   : > { %16282 = vmatprep.mubr.msk.bf16.mxu0 %vm392_vm1, %v18646_v40  ;;  %16588 = vmatprep.mubr.msk.bf16.mxu1 %vm392_vm1, %v18647_v41  ;;  %v20236_v40 = vld [vmem:[#allocation5] ss:$0 sm:$0xff]  ;;  %v20240_v41 = vld [vmem:[#allocation7] ss:$0 sm:$0xff] }
 0x2b4   : > { %16283 = vmatmul.mubr.msk.bf16.gmra.mrb[28].mxu0 %vm392_vm1, %v18648_v42  ;;  %16589 = vmatmul.mubr.msk.bf16.gmra.mrb[28].mxu1 %vm392_vm1, %v18649_v43 }
 0x2b5   : > { %16594 = vmatprep.mubr.msk.bf16.mxu0 %vm392_vm1, %v20026_v44  ;;  %16900 = vmatprep.mubr.msk.bf16.mxu1 %vm392_vm1, %v20029_v45 }
 0x2bc   : > { %16595 = vmatmul.mubr.msk.bf16.vlgmr.msra.gmra.mrb[32].mxu0 %vm392_vm1, %v20038_v46  ;;  %16901 = vmatmul.mubr.msk.bf16.vlgmr.msra.gmra.mrb[32].mxu1 %vm392_vm1, %v20041_v47 }
 0x2bd   : > { %16627 = vmatpush3.bf16.msra.mxu0 %v7005_v48  ;;  %16933 = vmatpush3.bf16.msra.mxu1 %v10188_v50 }
 0x2be   : > { %16598 = vmatprep.mubr.msk.bf16.mxu0 %vm392_vm1, %v20046_v49  ;;  %16904 = vmatprep.mubr.msk.bf16.mxu1 %vm392_vm1, %v20051_v51 }
 0x2bf   : > { %18248 = vmatprep.subr.msk.bf16.mxu0 %vm441_vm0, %v20053_v52  ;;  %18257 = vmatprep.subr.msk.bf16.mxu1 %vm441_vm0, %v20057_v53  ;;  %v18706_v52 = vld [vmem:[%s19315_s23 + $0x170] sm:$0xff]  }
 0x2c4   : > { %16599 = vmatmul.mubr.msk.bf16.gmra.mrb[36].mxu0 %vm392_vm1, %v20068_v54  ;;  %16905 = vmatmul.mubr.msk.bf16.gmra.mrb[36].mxu1 %vm392_vm1, %v20073_v55 }
 0x2c5   : > { %16602 = vmatprep.mubr.msk.bf16.mxu0 %vm392_vm1, %v20076_v56  ;;  %16908 = vmatprep.mubr.msk.bf16.mxu1 %vm392_vm1, %v20079_v57 }
 0x2cc   : > { %16603 = vmatmul.mubr.msk.bf16.gmra.mrb[40].mxu0 %vm392_vm1, %v20090_v58  ;;  %16909 = vmatmul.mubr.msk.bf16.gmra.mrb[40].mxu1 %vm392_vm1, %v20093_v59 }
 0x2cd   : > { %16606 = vmatprep.mubr.msk.bf16.mxu0 %vm392_vm1, %v20096_v60  ;;  %16912 = vmatprep.mubr.msk.bf16.mxu1 %vm392_vm1, %v20099_v61 }
 0x2d4   : > { %16607 = vmatmul.mubr.msk.bf16.gmra.mrb[44].mxu0 %vm392_vm1, %v18666_v62  ;;  %16913 = vmatmul.mubr.msk.bf16.gmra.mrb[44].mxu1 %vm392_vm1, %v18667_v63 }
 0x2d5   : > { %16610 = vmatprep.mubr.msk.bf16.mxu0 %vm392_vm1, %v18668_v0  ;;  %16916 = vmatprep.mubr.msk.bf16.mxu1 %vm392_vm1, %v18669_v1 }
 0x2dc   : > { %16611 = vmatmul.mubr.msk.bf16.gmra.mrb[48].mxu0 %vm392_vm1, %v18670_v2  ;;  %16917 = vmatmul.mubr.msk.bf16.gmra.mrb[48].mxu1 %vm392_vm1, %v18671_v3 }
 0x2dd   : > { %16614 = vmatprep.mubr.msk.bf16.mxu0 %vm392_vm1, %v18672_v4  ;;  %16920 = vmatprep.mubr.msk.bf16.mxu1 %vm392_vm1, %v18673_v5 }
 0x2e4   : > { %16615 = vmatmul.mubr.msk.bf16.gmra.mrb[52].mxu0 %vm392_vm1, %v18674_v6  ;;  %16921 = vmatmul.mubr.msk.bf16.gmra.mrb[52].mxu1 %vm392_vm1, %v18675_v7 }
 0x2e5   : > { %16618 = vmatprep.mubr.msk.bf16.mxu0 %vm392_vm1, %v18676_v8  ;;  %16924 = vmatprep.mubr.msk.bf16.mxu1 %vm392_vm1, %v18677_v9 }
 0x2ec   : > { %16619 = vmatmul.mubr.msk.bf16.gmra.mrb[56].mxu0 %vm392_vm1, %v18678_v10  ;;  %16925 = vmatmul.mubr.msk.bf16.gmra.mrb[56].mxu1 %vm392_vm1, %v18679_v11 }
 0x2ed   : > { %16622 = vmatprep.mubr.msk.bf16.mxu0 %vm392_vm1, %v18680_v12  ;;  %16928 = vmatprep.mubr.msk.bf16.mxu1 %vm392_vm1, %v18681_v13 }
 0x2f4   : > { %16623 = vmatmul.mubr.msk.bf16.gmra.mrb[60].mxu0 %vm392_vm1, %v18682_v14  ;;  %16929 = vmatmul.mubr.msk.bf16.gmra.mrb[60].mxu1 %vm392_vm1, %v18683_v15 }
 0x2f5   : > { %16628 = vmatprep.mubr.msk.bf16.mxu0 %vm392_vm1, %v18684_v16  ;;  %16934 = vmatprep.mubr.msk.bf16.mxu1 %vm392_vm1, %v18685_v17 }
 0x2fc   : > { %16629 = vmatmul.mubr.msk.bf16.vlgmr.msra.gmra.mrb[32].mxu0 %vm392_vm1, %v20026_v44  ;;  %16935 = vmatmul.mubr.msk.bf16.vlgmr.msra.gmra.mrb[32].mxu1 %vm392_vm1, %v20029_v45 }
 0x2fd   : > { %16661 = vmatpush3.bf16.msra.mxu0 %v7336_v18  ;;  %16967 = vmatpush3.bf16.msra.mxu1 %v10519_v19  ;;  %v18708_v18 = vld [vmem:[%s19315_s23 + $0x178] sm:$0xff]  }
 0x2fe   : > { %16632 = vmatprep.mubr.msk.bf16.mxu0 %vm392_vm1, %v20038_v46  ;;  %16938 = vmatprep.mubr.msk.bf16.mxu1 %vm392_vm1, %v20041_v47  ;;  %v18704_v46 = vld [vmem:[%s19315_s23 + $0x168] sm:$0xff]  }
 0x2ff   : > { %18249 = vmatprep.subr.msk.bf16.mxu0 %vm441_vm0, %v18691_v20  ;;  %18258 = vmatprep.subr.msk.bf16.mxu1 %vm441_vm0, %v18693_v21 }
 0x304   : > { %16633 = vmatmul.mubr.msk.bf16.gmra.mrb[36].mxu0 %vm392_vm1, %v20046_v49  ;;  %16939 = vmatmul.mubr.msk.bf16.gmra.mrb[36].mxu1 %vm392_vm1, %v20051_v51  ;;  %v18705_v51 = vld [vmem:[%s19315_s23 + $0x1f8] sm:$0xff]  }
 0x305   : > { %16636 = vmatprep.mubr.msk.bf16.mxu0 %vm392_vm1, %v20068_v54  ;;  %16942 = vmatprep.mubr.msk.bf16.mxu1 %vm392_vm1, %v20073_v55 }
 0x30c   : > { %16637 = vmatmul.mubr.msk.bf16.gmra.mrb[40].mxu0 %vm392_vm1, %v20076_v56  ;;  %16943 = vmatmul.mubr.msk.bf16.gmra.mrb[40].mxu1 %vm392_vm1, %v20079_v57 }
 0x30d   : > { %16640 = vmatprep.mubr.msk.bf16.mxu0 %vm392_vm1, %v20090_v58  ;;  %16946 = vmatprep.mubr.msk.bf16.mxu1 %vm392_vm1, %v20093_v59  ;;  %v18707_v58 = vld [vmem:[%s19315_s23 + $0x200] sm:$0xff]  }
 0x314   : > { %16641 = vmatmul.mubr.msk.bf16.gmra.mrb[44].mxu0 %vm392_vm1, %v20096_v60  ;;  %16947 = vmatmul.mubr.msk.bf16.gmra.mrb[44].mxu1 %vm392_vm1, %v20099_v61 }
 0x315   : > { %16644 = vmatprep.mubr.msk.bf16.mxu0 %vm392_vm1, %v18666_v62  ;;  %16950 = vmatprep.mubr.msk.bf16.mxu1 %vm392_vm1, %v18667_v63 }
 0x31c   : > { %16645 = vmatmul.mubr.msk.bf16.gmra.mrb[48].mxu0 %vm392_vm1, %v18668_v0  ;;  %16951 = vmatmul.mubr.msk.bf16.gmra.mrb[48].mxu1 %vm392_vm1, %v18669_v1 }
 0x31d   : > { %16648 = vmatprep.mubr.msk.bf16.mxu0 %vm392_vm1, %v18670_v2  ;;  %16954 = vmatprep.mubr.msk.bf16.mxu1 %vm392_vm1, %v18671_v3 }
 0x324   : > { %16649 = vmatmul.mubr.msk.bf16.gmra.mrb[52].mxu0 %vm392_vm1, %v18672_v4  ;;  %16955 = vmatmul.mubr.msk.bf16.gmra.mrb[52].mxu1 %vm392_vm1, %v18673_v5 }
 0x325   : > { %16652 = vmatprep.mubr.msk.bf16.mxu0 %vm392_vm1, %v18674_v6  ;;  %16958 = vmatprep.mubr.msk.bf16.mxu1 %vm392_vm1, %v18675_v7 }
 0x32c   : > { %16653 = vmatmul.mubr.msk.bf16.gmra.mrb[56].mxu0 %vm392_vm1, %v18676_v8  ;;  %16959 = vmatmul.mubr.msk.bf16.gmra.mrb[56].mxu1 %vm392_vm1, %v18677_v9 }
 0x32d   : > { %16656 = vmatprep.mubr.msk.bf16.mxu0 %vm392_vm1, %v18678_v10  ;;  %16962 = vmatprep.mubr.msk.bf16.mxu1 %vm392_vm1, %v18679_v11 }
 0x334   : > { %16657 = vmatmul.mubr.msk.bf16.gmra.mrb[60].mxu0 %vm392_vm1, %v18680_v12  ;;  %16963 = vmatmul.mubr.msk.bf16.gmra.mrb[60].mxu1 %vm392_vm1, %v18681_v13 }
 0x335   : > { %16662 = vmatprep.mubr.msk.bf16.mxu0 %vm392_vm1, %v18688_v22  ;;  %16968 = vmatprep.mubr.msk.bf16.mxu1 %vm392_vm1, %v18689_v23  ;;  %v18709_v23 = vld [vmem:[%s19315_s23 + $0x208] sm:$0xff]  }
 0x33c   : > { %16663 = vmatmul.mubr.msk.bf16.vlgmr.msra.gmra.mrb[32].mxu0 %vm392_vm1, %v18690_v24  ;;  %16969 = vmatmul.mubr.msk.bf16.vlgmr.msra.gmra.mrb[32].mxu1 %vm392_vm1, %v18692_v25  ;;  %v18710_v24 = vld [vmem:[%s19315_s23 + $0x180] sm:$0xff]  }
 0x33d   : > { %16695 = vmatpush3.bf16.msra.mxu0 %v7699_v26  ;;  %17001 = vmatpush3.bf16.msra.mxu1 %v10882_v28 }
 0x33e   : > { %16666 = vmatprep.mubr.msk.bf16.mxu0 %vm392_vm1, %v18694_v27  ;;  %16972 = vmatprep.mubr.msk.bf16.mxu1 %vm392_vm1, %v18695_v29 }
 0x33f   : > { %18250 = vmatprep.subr.msk.bf16.mxu0 %vm441_vm0, %v20209_v30  ;;  %18259 = vmatprep.subr.msk.bf16.mxu1 %vm441_vm0, %v20212_v31 }
 0x344   : > { %16667 = vmatmul.mubr.msk.bf16.gmra.mrb[36].mxu0 %vm392_vm1, %v18696_v32  ;;  %16973 = vmatmul.mubr.msk.bf16.gmra.mrb[36].mxu1 %vm392_vm1, %v18697_v33  ;;  %v18711_v32 = vld [vmem:[%s19315_s23 + $0x210] sm:$0xff]  }
 0x345   : > { %16670 = vmatprep.mubr.msk.bf16.mxu0 %vm392_vm1, %v18698_v34  ;;  %16976 = vmatprep.mubr.msk.bf16.mxu1 %vm392_vm1, %v18699_v35 }
 0x34c   : > { %16671 = vmatmul.mubr.msk.bf16.gmra.mrb[40].mxu0 %vm392_vm1, %v18700_v36  ;;  %16977 = vmatmul.mubr.msk.bf16.gmra.mrb[40].mxu1 %vm392_vm1, %v18701_v37 }
 0x34d   : > { %16674 = vmatprep.mubr.msk.bf16.mxu0 %vm392_vm1, %v18702_v38  ;;  %16980 = vmatprep.mubr.msk.bf16.mxu1 %vm392_vm1, %v18703_v39 }
 0x34f   : > { %v16256_v42 = vpop.f32.mrb[0].mxu0  ;;  %v16562_v44 = vpop.f32.mrb[0].mxu1 }
 0x350   : > { %v3341_v43 = vmul.f32 %v16256_v42, %v20236_v40  ;;  %v3174_v45 = vpop.f32.mrb[1].mxu0  ;;  %v6529_v47 = vmul.f32 %v16562_v44, %v20236_v40  ;;  %v6368_v49 = vpop.f32.mrb[1].mxu1 }
 0x351   : > { %v3339_v48 = vmul.f32 %v20236_v40, %v3174_v45  ;;  %v16257_v50 = vpop.f32.mrb[2].mxu0  ;;  %v6527_v54 = vmul.f32 %v20236_v40, %v6368_v49  ;;  %v16563_v56 = vpop.f32.mrb[2].mxu1 }
 0x352   : > { %v3379_v53 = vadd.f32 %v20240_v41, %v3341_v43  ;;  %v3342_v55 = vmul.f32 %v16257_v50, %v20236_v40  ;;  %v3177_v57 = vpop.f32.mrb[3].mxu0  ;;  %v6561_v59 = vadd.f32 %v20240_v41, %v6529_v47  ;;  %v6530_v61 = vmul.f32 %v16563_v56, %v20236_v40  ;;  %v6371_v63 = vpop.f32.mrb[3].mxu1 }
 0x353   : > { %v3377_v60 = vadd.f32 %v20240_v41, %v3339_v48  ;;  %v3340_v62 = vmul.f32 %v20236_v40, %v3177_v57  ;;  %v6559_v1 = vadd.f32 %v20240_v41, %v6527_v54  ;;  %v6528_v3 = vmul.f32 %v20236_v40, %v6371_v63  ;;  %v18713_v63 = vld [vmem:[%s19315_s23 + $0x218] sm:$0xff]  }
 0x354   : > { %v3411_v0 = vmax.f32 %v3379_v53, 0.0  ;;  %v3380_v2 = vadd.f32 %v20240_v41, %v3342_v55  ;;  %16675 = vmatmul.mubr.msk.bf16.gmra.mrb[44].mxu0 %vm392_vm1, %v18704_v46  ;;  %v6593_v4 = vmax.f32 %v6561_v59, 0.0  ;;  %v6562_v6 = vadd.f32 %v20240_v41, %v6530_v61  ;;  %16981 = vmatmul.mubr.msk.bf16.gmra.mrb[44].mxu1 %vm392_vm1, %v18705_v51 }
 0x355   : > { %v3409_v5 = vmax.f32 %v3377_v60, 0.0  ;;  %v3378_v7 = vadd.f32 %v20240_v41, %v3340_v62  ;;  %16678 = vmatprep.mubr.msk.bf16.mxu0 %vm392_vm1, %v18706_v52  ;;  %v6591_v8 = vmax.f32 %v6559_v1, 0.0  ;;  %v6560_v10 = vadd.f32 %v20240_v41, %v6528_v3  ;;  %16984 = vmatprep.mubr.msk.bf16.mxu1 %vm392_vm1, %v18707_v58  ;;  %v18712_v58 = vld [vmem:[%s19315_s23 + $0x188] sm:$0xff]  }
 0x356   : > { %3443 = vst [vmem:[%s20269_s11 + $0x10] sm:$0xff] %v3411_v0  ;;  %v3412_v9 = vmax.f32 %v3380_v2, 0.0  ;;  %14186 = vst [vmem:[%s20269_s11 + $0x110] sm:$0xff] %v6593_v4  ;;  %v6594_v11 = vmax.f32 %v6562_v6, 0.0  ;;  %v18714_v0 = vld [vmem:[%s19315_s23 + $0x190] sm:$0xff]   ;;  %v18715_v6 = vld [vmem:[%s19315_s23 + $0x220] sm:$0xff]  }
 0x357   : > { %3441 = vst [vmem:[%s20269_s11] sm:$0xff] %v3409_v5  ;;  %v3410_v12 = vmax.f32 %v3378_v7, 0.0  ;;  %v16260_v13 = vpop.f32.mrb[4].mxu0  ;;  %14184 = vst [vmem:[%s20269_s11 + $0x100] sm:$0xff] %v6591_v8  ;;  %v6592_v14 = vmax.f32 %v6560_v10, 0.0  ;;  %v16566_v16 = vpop.f32.mrb[4].mxu1 }
 0x358   : > { %3444 = vst [vmem:[%s20269_s11 + $0x18] sm:$0xff] %v3412_v9  ;;  %v3345_v15 = vmul.f32 %v16260_v13, %v20236_v40  ;;  %v3190_v17 = vpop.f32.mrb[5].mxu0  ;;  %14187 = vst [vmem:[%s20269_s11 + $0x118] sm:$0xff] %v6594_v11  ;;  %v6533_v19 = vmul.f32 %v16566_v16, %v20236_v40  ;;  %v6384_v21 = vpop.f32.mrb[5].mxu1 }
 0x359   : > { %3442 = vst [vmem:[%s20269_s11 + $0x8] sm:$0xff] %v3410_v12  ;;  %v3343_v20 = vmul.f32 %v20236_v40, %v3190_v17  ;;  %v16261_v22 = vpop.f32.mrb[6].mxu0  ;;  %14185 = vst [vmem:[%s20269_s11 + $0x108] sm:$0xff] %v6592_v14  ;;  %v6531_v26 = vmul.f32 %v20236_v40, %v6384_v21  ;;  %v16567_v28 = vpop.f32.mrb[6].mxu1 }
 0x35a   : > { %v3383_v25 = vadd.f32 %v20240_v41, %v3345_v15  ;;  %v3346_v27 = vmul.f32 %v16261_v22, %v20236_v40  ;;  %v3193_v29 = vpop.f32.mrb[7].mxu0  ;;  %v6565_v33 = vadd.f32 %v20240_v41, %v6533_v19  ;;  %v6534_v35 = vmul.f32 %v16567_v28, %v20236_v40  ;;  %v6387_v37 = vpop.f32.mrb[7].mxu1 }
 0x35b   : > { %v3381_v34 = vadd.f32 %v20240_v41, %v3343_v20  ;;  %v3344_v36 = vmul.f32 %v20236_v40, %v3193_v29  ;;  %v6563_v39 = vadd.f32 %v20240_v41, %v6531_v26  ;;  %v6532_v43 = vmul.f32 %v20236_v40, %v6387_v37  ;;  %v18717_v37 = vld [vmem:[%s19315_s23 + $0x228] sm:$0xff]  }
 0x35c   : > { %v3415_v38 = vmax.f32 %v3383_v25, 0.0  ;;  %v3384_v42 = vadd.f32 %v20240_v41, %v3346_v27  ;;  %16679 = vmatmul.mubr.msk.bf16.gmra.mrb[48].mxu0 %vm392_vm1, %v18708_v18  ;;  %v6597_v44 = vmax.f32 %v6565_v33, 0.0  ;;  %v6566_v46 = vadd.f32 %v20240_v41, %v6534_v35  ;;  %16985 = vmatmul.mubr.msk.bf16.gmra.mrb[48].mxu1 %vm392_vm1, %v18709_v23 }
 0x35d   : > { %v3413_v45 = vmax.f32 %v3381_v34, 0.0  ;;  %v3382_v47 = vadd.f32 %v20240_v41, %v3344_v36  ;;  %16682 = vmatprep.mubr.msk.bf16.mxu0 %vm392_vm1, %v18710_v24  ;;  %v6595_v48 = vmax.f32 %v6563_v39, 0.0  ;;  %v6564_v50 = vadd.f32 %v20240_v41, %v6532_v43  ;;  %16988 = vmatprep.mubr.msk.bf16.mxu1 %vm392_vm1, %v18711_v32  ;;  %v18716_v32 = vld [vmem:[%s19315_s23 + $0x198] sm:$0xff]  }
 0x35e   : > { %3447 = vst [vmem:[%s20269_s11 + $0x30] sm:$0xff] %v3415_v38  ;;  %v3416_v49 = vmax.f32 %v3384_v42, 0.0  ;;  %14190 = vst [vmem:[%s20269_s11 + $0x130] sm:$0xff] %v6597_v44  ;;  %v6598_v51 = vmax.f32 %v6566_v46, 0.0  ;;  %v18718_v38 = vld [vmem:[%s19315_s23 + $0x1a0] sm:$0xff]   ;;  %v18719_v46 = vld [vmem:[%s19315_s23 + $0x230] sm:$0xff]  }
 0x35f   : > { %3445 = vst [vmem:[%s20269_s11 + $0x20] sm:$0xff] %v3413_v45  ;;  %v3414_v52 = vmax.f32 %v3382_v47, 0.0  ;;  %v16264_v53 = vpop.f32.mrb[8].mxu0  ;;  %14188 = vst [vmem:[%s20269_s11 + $0x120] sm:$0xff] %v6595_v48  ;;  %v6596_v54 = vmax.f32 %v6564_v50, 0.0  ;;  %v16570_v56 = vpop.f32.mrb[8].mxu1 }
 0x360   : > { %3448 = vst [vmem:[%s20269_s11 + $0x38] sm:$0xff] %v3416_v49  ;;  %v3349_v55 = vmul.f32 %v16264_v53, %v20236_v40  ;;  %v3206_v57 = vpop.f32.mrb[9].mxu0  ;;  %14191 = vst [vmem:[%s20269_s11 + $0x138] sm:$0xff] %v6598_v51  ;;  %v6537_v59 = vmul.f32 %v16570_v56, %v20236_v40  ;;  %v6400_v61 = vpop.f32.mrb[9].mxu1 }
 0x361   : > { %3446 = vst [vmem:[%s20269_s11 + $0x28] sm:$0xff] %v3414_v52  ;;  %v3347_v60 = vmul.f32 %v20236_v40, %v3206_v57  ;;  %v16265_v62 = vpop.f32.mrb[10].mxu0  ;;  %14189 = vst [vmem:[%s20269_s11 + $0x128] sm:$0xff] %v6596_v54  ;;  %v6535_v2 = vmul.f32 %v20236_v40, %v6400_v61  ;;  %v16571_v4 = vpop.f32.mrb[10].mxu1 }
 0x362   : > { %v3387_v1 = vadd.f32 %v20240_v41, %v3349_v55  ;;  %v3350_v3 = vmul.f32 %v16265_v62, %v20236_v40  ;;  %v3209_v5 = vpop.f32.mrb[11].mxu0  ;;  %v6569_v7 = vadd.f32 %v20240_v41, %v6537_v59  ;;  %v6538_v9 = vmul.f32 %v16571_v4, %v20236_v40  ;;  %v6403_v11 = vpop.f32.mrb[11].mxu1 }
 0x363   : > { %v3385_v8 = vadd.f32 %v20240_v41, %v3347_v60  ;;  %v3348_v10 = vmul.f32 %v20236_v40, %v3209_v5  ;;  %v6567_v13 = vadd.f32 %v20240_v41, %v6535_v2  ;;  %v6536_v15 = vmul.f32 %v20236_v40, %v6403_v11  ;;  %v18721_v11 = vld [vmem:[%s19315_s23 + $0x238] sm:$0xff]  }
 0x364   : > { %v3419_v12 = vmax.f32 %v3387_v1, 0.0  ;;  %v3388_v14 = vadd.f32 %v20240_v41, %v3350_v3  ;;  %16683 = vmatmul.mubr.msk.bf16.gmra.mrb[52].mxu0 %vm392_vm1, %v18712_v58  ;;  %v6601_v16 = vmax.f32 %v6569_v7, 0.0  ;;  %v6570_v18 = vadd.f32 %v20240_v41, %v6538_v9  ;;  %16989 = vmatmul.mubr.msk.bf16.gmra.mrb[52].mxu1 %vm392_vm1, %v18713_v63 }
 0x365   : > { %v3417_v17 = vmax.f32 %v3385_v8, 0.0  ;;  %v3386_v19 = vadd.f32 %v20240_v41, %v3348_v10  ;;  %16686 = vmatprep.mubr.msk.bf16.mxu0 %vm392_vm1, %v18714_v0  ;;  %v6599_v20 = vmax.f32 %v6567_v13, 0.0  ;;  %v6568_v22 = vadd.f32 %v20240_v41, %v6536_v15  ;;  %16992 = vmatprep.mubr.msk.bf16.mxu1 %vm392_vm1, %v18715_v6  ;;  %v18720_v6 = vld [vmem:[%s19315_s23 + $0x1a8] sm:$0xff]  }
 0x366   : > { %3451 = vst [vmem:[%s20269_s11 + $0x50] sm:$0xff] %v3419_v12  ;;  %v3420_v21 = vmax.f32 %v3388_v14, 0.0  ;;  %14194 = vst [vmem:[%s20269_s11 + $0x150] sm:$0xff] %v6601_v16  ;;  %v6602_v23 = vmax.f32 %v6570_v18, 0.0  ;;  %v18722_v12 = vld [vmem:[%s19315_s23 + $0x1b0] sm:$0xff]   ;;  %v18723_v18 = vld [vmem:[%s19315_s23 + $0x240] sm:$0xff]  }
 0x367   : > { %3449 = vst [vmem:[%s20269_s11 + $0x40] sm:$0xff] %v3417_v17  ;;  %v3418_v24 = vmax.f32 %v3386_v19, 0.0  ;;  %v16268_v25 = vpop.f32.mrb[12].mxu0  ;;  %14192 = vst [vmem:[%s20269_s11 + $0x140] sm:$0xff] %v6599_v20  ;;  %v6600_v26 = vmax.f32 %v6568_v22, 0.0  ;;  %v16574_v28 = vpop.f32.mrb[12].mxu1 }
 0x368   : > { %3452 = vst [vmem:[%s20269_s11 + $0x58] sm:$0xff] %v3420_v21  ;;  %v3353_v27 = vmul.f32 %v16268_v25, %v20236_v40  ;;  %v3222_v29 = vpop.f32.mrb[13].mxu0  ;;  %14195 = vst [vmem:[%s20269_s11 + $0x158] sm:$0xff] %v6602_v23  ;;  %v6541_v33 = vmul.f32 %v16574_v28, %v20236_v40  ;;  %v6416_v35 = vpop.f32.mrb[13].mxu1 }
 0x369   : > { %3450 = vst [vmem:[%s20269_s11 + $0x48] sm:$0xff] %v3418_v24  ;;  %v3351_v34 = vmul.f32 %v20236_v40, %v3222_v29  ;;  %v16269_v36 = vpop.f32.mrb[14].mxu0  ;;  %14193 = vst [vmem:[%s20269_s11 + $0x148] sm:$0xff] %v6600_v26  ;;  %v6539_v42 = vmul.f32 %v20236_v40, %v6416_v35  ;;  %v16575_v44 = vpop.f32.mrb[14].mxu1 }
 0x36a   : > { %v3391_v39 = vadd.f32 %v20240_v41, %v3353_v27  ;;  %v3354_v43 = vmul.f32 %v16269_v36, %v20236_v40  ;;  %v3225_v45 = vpop.f32.mrb[15].mxu0  ;;  %v6573_v47 = vadd.f32 %v20240_v41, %v6541_v33  ;;  %v6542_v49 = vmul.f32 %v16575_v44, %v20236_v40  ;;  %v6419_v51 = vpop.f32.mrb[15].mxu1 }
 0x36b   : > { %v3389_v48 = vadd.f32 %v20240_v41, %v3351_v34  ;;  %v3352_v50 = vmul.f32 %v20236_v40, %v3225_v45  ;;  %v6571_v53 = vadd.f32 %v20240_v41, %v6539_v42  ;;  %v6540_v55 = vmul.f32 %v20236_v40, %v6419_v51  ;;  %v18726_v51 = vld [vmem:[%s19315_s23 + $0x248] sm:$0xff]  }
 0x36c   : > { %v3423_v52 = vmax.f32 %v3391_v39, 0.0  ;;  %v3392_v54 = vadd.f32 %v20240_v41, %v3354_v43  ;;  %16687 = vmatmul.mubr.msk.bf16.gmra.mrb[56].mxu0 %vm392_vm1, %v18716_v32  ;;  %v6605_v56 = vmax.f32 %v6573_v47, 0.0  ;;  %v6574_v58 = vadd.f32 %v20240_v41, %v6542_v49  ;;  %16993 = vmatmul.mubr.msk.bf16.gmra.mrb[56].mxu1 %vm392_vm1, %v18717_v37 }
 0x36d   : > { %v3421_v57 = vmax.f32 %v3389_v48, 0.0  ;;  %v3390_v59 = vadd.f32 %v20240_v41, %v3352_v50  ;;  %16690 = vmatprep.mubr.msk.bf16.mxu0 %vm392_vm1, %v18718_v38  ;;  %v6603_v60 = vmax.f32 %v6571_v53, 0.0  ;;  %v6572_v62 = vadd.f32 %v20240_v41, %v6540_v55  ;;  %16996 = vmatprep.mubr.msk.bf16.mxu1 %vm392_vm1, %v18719_v46  ;;  %v18724_v46 = vld [vmem:[%s19315_s23 + $0x1b8] sm:$0xff]  }
 0x36e   : > { %3455 = vst [vmem:[%s20269_s11 + $0x70] sm:$0xff] %v3423_v52  ;;  %v3424_v61 = vmax.f32 %v3392_v54, 0.0  ;;  %14198 = vst [vmem:[%s20269_s11 + $0x170] sm:$0xff] %v6605_v56  ;;  %v6606_v63 = vmax.f32 %v6574_v58, 0.0  ;;  %v8062_v52 = vsel %vm441_vm0, %v20209_v30, 0  ;;  %v11245_v58 = vsel %vm441_vm0, %v20212_v31, 0 }
 0x36f   : > { %3453 = vst [vmem:[%s20269_s11 + $0x60] sm:$0xff] %v3421_v57  ;;  %v3422_v0 = vmax.f32 %v3390_v59, 0.0  ;;  %v16272_v1 = vpop.f32.mrb[16].mxu0  ;;  %14196 = vst [vmem:[%s20269_s11 + $0x160] sm:$0xff] %v6603_v60  ;;  %v6604_v2 = vmax.f32 %v6572_v62, 0.0  ;;  %v16578_v4 = vpop.f32.mrb[16].mxu1 }
 0x370   : > { %3456 = vst [vmem:[%s20269_s11 + $0x78] sm:$0xff] %v3424_v61  ;;  %v3357_v3 = vmul.f32 %v16272_v1, %v20236_v40  ;;  %v3238_v5 = vpop.f32.mrb[17].mxu0  ;;  %14199 = vst [vmem:[%s20269_s11 + $0x178] sm:$0xff] %v6606_v63  ;;  %v6545_v7 = vmul.f32 %v16578_v4, %v20236_v40  ;;  %v6432_v9 = vpop.f32.mrb[17].mxu1  ;;  %v18728_v59 = vld [vmem:[%s19315_s23 + $0x1c0] sm:$0xff]  }
 0x371   : > { %3454 = vst [vmem:[%s20269_s11 + $0x68] sm:$0xff] %v3422_v0  ;;  %v3355_v8 = vmul.f32 %v20236_v40, %v3238_v5  ;;  %v16273_v10 = vpop.f32.mrb[18].mxu0  ;;  %14197 = vst [vmem:[%s20269_s11 + $0x168] sm:$0xff] %v6604_v2  ;;  %v6543_v14 = vmul.f32 %v20236_v40, %v6432_v9  ;;  %v16579_v16 = vpop.f32.mrb[18].mxu1  ;;  %v18729_v0 = vld [vmem:[%s19315_s23 + $0x250] sm:$0xff]  }
 0x372   : > { %v3395_v13 = vadd.f32 %v20240_v41, %v3357_v3  ;;  %v3358_v15 = vmul.f32 %v16273_v10, %v20236_v40  ;;  %v3241_v17 = vpop.f32.mrb[19].mxu0  ;;  %v6577_v19 = vadd.f32 %v20240_v41, %v6545_v7  ;;  %v6546_v21 = vmul.f32 %v16579_v16, %v20236_v40  ;;  %v6435_v23 = vpop.f32.mrb[19].mxu1  ;;  %v20427_v1 = vld [vmem:[#allocation2 + $0x28] sm:$0x3f]  }
 0x373   : > { %v3393_v20 = vadd.f32 %v20240_v41, %v3355_v8  ;;  %v3356_v22 = vmul.f32 %v20236_v40, %v3241_v17  ;;  %v6575_v25 = vadd.f32 %v20240_v41, %v6543_v14  ;;  %v6544_v27 = vmul.f32 %v20236_v40, %v6435_v23  ;;  %v20433_v5 = vld [vmem:[#allocation2 + $0x28] sm:$0x3f]  }
 0x374   : > { %v3427_v24 = vmax.f32 %v3395_v13, 0.0  ;;  %v3396_v26 = vadd.f32 %v20240_v41, %v3358_v15  ;;  %16691 = vmatmul.mubr.msk.bf16.gmra.mrb[60].mxu0 %vm392_vm1, %v18720_v6  ;;  %v6609_v28 = vmax.f32 %v6577_v19, 0.0  ;;  %v6578_v32 = vadd.f32 %v20240_v41, %v6546_v21  ;;  %16997 = vmatmul.mubr.msk.bf16.gmra.mrb[60].mxu1 %vm392_vm1, %v18721_v11 }
 0x375   : > { %v3425_v29 = vmax.f32 %v3393_v20, 0.0  ;;  %v3394_v33 = vadd.f32 %v20240_v41, %v3356_v22  ;;  %16696 = vmatprep.mubr.msk.bf16.mxu0 %vm392_vm1, %v18722_v12  ;;  %v6607_v34 = vmax.f32 %v6575_v25, 0.0  ;;  %v6576_v36 = vadd.f32 %v20240_v41, %v6544_v27  ;;  %17002 = vmatprep.mubr.msk.bf16.mxu1 %vm392_vm1, %v18723_v18  ;;  %v18730_v20 = vld [vmem:[%s19315_s23 + $0x1c8] sm:$0xff]   ;;  %v18731_v25 = vld [vmem:[%s19315_s23 + $0x258] sm:$0xff]  }
 0x376   : > { %3459 = vst [vmem:[%s20269_s11 + $0x90] sm:$0xff] %v3427_v24  ;;  %v3428_v35 = vmax.f32 %v3396_v26, 0.0  ;;  %14202 = vst [vmem:[%s20269_s11 + $0x190] sm:$0xff] %v6609_v28  ;;  %v6610_v37 = vmax.f32 %v6578_v32, 0.0  ;;  %v18732_v26 = vld [vmem:[%s19315_s23 + $0x1d0] sm:$0xff]  }
 0x377   : > { %3457 = vst [vmem:[%s20269_s11 + $0x80] sm:$0xff] %v3425_v29  ;;  %v3426_v38 = vmax.f32 %v3394_v33, 0.0  ;;  %v16276_v39 = vpop.f32.mrb[20].mxu0  ;;  %14200 = vst [vmem:[%s20269_s11 + $0x180] sm:$0xff] %v6607_v34  ;;  %v6608_v42 = vmax.f32 %v6576_v36, 0.0  ;;  %v16582_v44 = vpop.f32.mrb[20].mxu1 }
 0x378   : > { %3460 = vst [vmem:[%s20269_s11 + $0x98] sm:$0xff] %v3428_v35  ;;  %v3361_v43 = vmul.f32 %v16276_v39, %v20236_v40  ;;  %v3254_v45 = vpop.f32.mrb[21].mxu0  ;;  %14203 = vst [vmem:[%s20269_s11 + $0x198] sm:$0xff] %v6610_v37  ;;  %v6549_v47 = vmul.f32 %v16582_v44, %v20236_v40  ;;  %v6448_v49 = vpop.f32.mrb[21].mxu1  ;;  %v18733_v34 = vld [vmem:[%s19315_s23 + $0x260] sm:$0xff]  }
 0x379   : > { %3458 = vst [vmem:[%s20269_s11 + $0x88] sm:$0xff] %v3426_v38  ;;  %v3359_v48 = vmul.f32 %v20236_v40, %v3254_v45  ;;  %v16277_v50 = vpop.f32.mrb[22].mxu0  ;;  %14201 = vst [vmem:[%s20269_s11 + $0x188] sm:$0xff] %v6608_v42  ;;  %v6547_v54 = vmul.f32 %v20236_v40, %v6448_v49  ;;  %v16583_v56 = vpop.f32.mrb[22].mxu1 }
 0x37a   : > { %v3399_v53 = vadd.f32 %v20240_v41, %v3361_v43  ;;  %v3362_v55 = vmul.f32 %v16277_v50, %v20236_v40  ;;  %v3257_v57 = vpop.f32.mrb[23].mxu0  ;;  %v6581_v60 = vadd.f32 %v20240_v41, %v6549_v47  ;;  %v6550_v62 = vmul.f32 %v16583_v56, %v20236_v40  ;;  %v6451_v63 = vpop.f32.mrb[23].mxu1 }
 0x37b   : > { %v3397_v61 = vadd.f32 %v20240_v41, %v3359_v48  ;;  %v3360_v30 = vmul.f32 %v20236_v40, %v3257_v57  ;;  %v6579_v3 = vadd.f32 %v20240_v41, %v6547_v54  ;;  %v6548_v31 = vmul.f32 %v20236_v40, %v6451_v63 }
 0x37c   : > { %v3431_v2 = vmax.f32 %v3399_v53, 0.0  ;;  %v3400_v4 = vadd.f32 %v20240_v41, %v3362_v55  ;;  %16697 = vmatmul.mubr.msk.bf16.vlgmr.msra.gmra.mrb[32].mxu0 %vm392_vm1, %v18724_v46  ;;  %v6613_v6 = vmax.f32 %v6581_v60, 0.0  ;;  %v6582_v8 = vadd.f32 %v20240_v41, %v6550_v62  ;;  %17003 = vmatmul.mubr.msk.bf16.vlgmr.msra.gmra.mrb[32].mxu1 %vm392_vm1, %v18726_v51  ;;  %v18734_v60 = vld [vmem:[%s19315_s23 + $0x1d8] sm:$0xff]  }
 0x37d   : > { %v3429_v7 = vmax.f32 %v3397_v61, 0.0  ;;  %v3398_v9 = vadd.f32 %v20240_v41, %v3360_v30  ;;  %16729 = vmatpush3.bf16.msra.mxu0 %v8062_v52  ;;  %v6611_v10 = vmax.f32 %v6579_v3, 0.0  ;;  %v6580_v12 = vadd.f32 %v20240_v41, %v6548_v31  ;;  %17035 = vmatpush3.bf16.msra.mxu1 %v11245_v58 }
 0x37e   : > { %3463 = vst [vmem:[%s20269_s11 + $0xb0] sm:$0xff] %v3431_v2  ;;  %v3432_v11 = vmax.f32 %v3400_v4, 0.0  ;;  %16700 = vmatprep.mubr.msk.bf16.mxu0 %vm392_vm1, %v18728_v59  ;;  %14206 = vst [vmem:[%s20269_s11 + $0x1b0] sm:$0xff] %v6613_v6  ;;  %v6614_v13 = vmax.f32 %v6582_v8, 0.0  ;;  %17006 = vmatprep.mubr.msk.bf16.mxu1 %vm392_vm1, %v18729_v0  ;;  %v18735_v0 = vld [vmem:[%s19315_s23 + $0x268] sm:$0xff]   ;;  %v18736_v2 = vld [vmem:[%s19315_s23 + $0x1e0] sm:$0xff]  }
 0x37f   : > { %3461 = vst [vmem:[%s20269_s11 + $0xa0] sm:$0xff] %v3429_v7  ;;  %v3430_v14 = vmax.f32 %v3398_v9, 0.0  ;;  %v16280_v15 = vpop.f32.mrb[24].mxu0  ;;  %18251 = vmatprep.subr.msk.bf16.mxu0 %vm441_vm0, %v20427_v1  ;;  %14204 = vst [vmem:[%s20269_s11 + $0x1a0] sm:$0xff] %v6611_v10  ;;  %v6612_v16 = vmax.f32 %v6580_v12, 0.0  ;;  %v16586_v18 = vpop.f32.mrb[24].mxu1  ;;  %18260 = vmatprep.subr.msk.bf16.mxu1 %vm441_vm0, %v20433_v5 }
 0x380   : > { %3464 = vst [vmem:[%s20269_s11 + $0xb8] sm:$0xff] %v3432_v11  ;;  %v3365_v17 = vmul.f32 %v16280_v15, %v20236_v40  ;;  %v3270_v19 = vpop.f32.mrb[25].mxu0  ;;  %14207 = vst [vmem:[%s20269_s11 + $0x1b8] sm:$0xff] %v6614_v13  ;;  %v6553_v21 = vmul.f32 %v16586_v18, %v20236_v40  ;;  %v6464_v23 = vpop.f32.mrb[25].mxu1  ;;  %v18737_v8 = vld [vmem:[%s19315_s23 + $0x270] sm:$0xff]  }
 0x381   : > { %3462 = vst [vmem:[%s20269_s11 + $0xa8] sm:$0xff] %v3430_v14  ;;  %v3363_v22 = vmul.f32 %v20236_v40, %v3270_v19  ;;  %v16281_v24 = vpop.f32.mrb[26].mxu0  ;;  %14205 = vst [vmem:[%s20269_s11 + $0x1a8] sm:$0xff] %v6612_v16  ;;  %v6551_v28 = vmul.f32 %v20236_v40, %v6464_v23  ;;  %v16587_v32 = vpop.f32.mrb[26].mxu1 }
 0x382   : > { %v3403_v27 = vadd.f32 %v20240_v41, %v3365_v17  ;;  %v3366_v29 = vmul.f32 %v16281_v24, %v20236_v40  ;;  %v3273_v33 = vpop.f32.mrb[27].mxu0  ;;  %v6585_v35 = vadd.f32 %v20240_v41, %v6553_v21  ;;  %v6554_v37 = vmul.f32 %v16587_v32, %v20236_v40  ;;  %v6467_v39 = vpop.f32.mrb[27].mxu1  ;;  %v18742_v32 = vld [vmem:[%s19315_s23 + $0x1f8] sm:$0xff]  }
 0x383   : > { %v3401_v36 = vadd.f32 %v20240_v41, %v3363_v22  ;;  %v3364_v38 = vmul.f32 %v20236_v40, %v3273_v33  ;;  %v6583_v43 = vadd.f32 %v20240_v41, %v6551_v28  ;;  %v6552_v45 = vmul.f32 %v20236_v40, %v6467_v39  ;;  %v18739_v28 = vld [vmem:[%s19315_s23 + $0x278] sm:$0xff]   ;;  %v18743_v33 = vld [vmem:[%s19315_s23 + $0x288] sm:$0xff]   ;;  %v18749_v39 = vld [vmem:[%s19315_s23 + $0x2a0] sm:$0xff]  }
 0x384   : > { %v3435_v42 = vmax.f32 %v3403_v27, 0.0  ;;  %v3404_v44 = vadd.f32 %v20240_v41, %v3366_v29  ;;  %16701 = vmatmul.mubr.msk.bf16.gmra.mrb[36].mxu0 %vm392_vm1, %v18730_v20  ;;  %v6617_v46 = vmax.f32 %v6585_v35, 0.0  ;;  %v6586_v48 = vadd.f32 %v20240_v41, %v6554_v37  ;;  %17007 = vmatmul.mubr.msk.bf16.gmra.mrb[36].mxu1 %vm392_vm1, %v18731_v25  ;;  %v18738_v27 = vld [vmem:[%s19315_s23 + $0x1e8] sm:$0xff]   ;;  %v18740_v29 = vld [vmem:[%s19315_s23 + $0x1f0] sm:$0xff]   ;;  %v18747_v37 = vld [vmem:[%s19315_s23 + $0x298] sm:$0xff]  }
 0x385   : > { %v3433_v47 = vmax.f32 %v3401_v36, 0.0  ;;  %v3402_v49 = vadd.f32 %v20240_v41, %v3364_v38  ;;  %16704 = vmatprep.mubr.msk.bf16.mxu0 %vm392_vm1, %v18732_v26  ;;  %v6615_v50 = vmax.f32 %v6583_v43, 0.0  ;;  %v6584_v52 = vadd.f32 %v20240_v41, %v6552_v45  ;;  %17010 = vmatprep.mubr.msk.bf16.mxu1 %vm392_vm1, %v18733_v34  ;;  %v18744_v34 = vld [vmem:[%s19315_s23 + $0x200] sm:$0xff]   ;;  %v18745_v35 = vld [vmem:[%s19315_s23 + $0x290] sm:$0xff]   ;;  %v18746_v36 = vld [vmem:[%s19315_s23 + $0x208] sm:$0xff]  }
 0x386   : > { %3467 = vst [vmem:[%s20269_s11 + $0xd0] sm:$0xff] %v3435_v42  ;;  %v3436_v51 = vmax.f32 %v3404_v44, 0.0  ;;  %14210 = vst [vmem:[%s20269_s11 + $0x1d0] sm:$0xff] %v6617_v46  ;;  %v6618_v53 = vmax.f32 %v6586_v48, 0.0  ;;  %v18748_v38 = vld [vmem:[%s19315_s23 + $0x210] sm:$0xff]   ;;  %v18750_v42 = vld [vmem:[%s19315_s23 + $0x218] sm:$0xff]  }
 0x387   : > { %3465 = vst [vmem:[%s20269_s11 + $0xc0] sm:$0xff] %v3433_v47  ;;  %v3434_v54 = vmax.f32 %v3402_v49, 0.0  ;;  %v16284_v55 = vpop.f32.mrb[28].mxu0  ;;  %14208 = vst [vmem:[%s20269_s11 + $0x1c0] sm:$0xff] %v6615_v50  ;;  %v6616_v56 = vmax.f32 %v6584_v52, 0.0  ;;  %v16590_v58 = vpop.f32.mrb[28].mxu1 }
 0x388   : > { %3468 = vst [vmem:[%s20269_s11 + $0xd8] sm:$0xff] %v3436_v51  ;;  %v3369_v57 = vmul.f32 %v16284_v55, %v20236_v40  ;;  %v3286_v59 = vpop.f32.mrb[29].mxu0  ;;  %14211 = vst [vmem:[%s20269_s11 + $0x1d8] sm:$0xff] %v6618_v53  ;;  %v6557_v61 = vmul.f32 %v16590_v58, %v20236_v40  ;;  %v6480_v30 = vpop.f32.mrb[29].mxu1  ;;  %v18751_v43 = vld [vmem:[%s19315_s23 + $0x2a8] sm:$0xff]   ;;  %v18752_v44 = vld [vmem:[%s19315_s23 + $0x220] sm:$0xff]  }
 0x389   : > { %3466 = vst [vmem:[%s20269_s11 + $0xc8] sm:$0xff] %v3434_v54  ;;  %v3367_v62 = vmul.f32 %v20236_v40, %v3286_v59  ;;  %v16285_v63 = vpop.f32.mrb[30].mxu0  ;;  %14209 = vst [vmem:[%s20269_s11 + $0x1c8] sm:$0xff] %v6616_v56  ;;  %v6555_v4 = vmul.f32 %v20236_v40, %v6480_v30  ;;  %v16591_v6 = vpop.f32.mrb[30].mxu1  ;;  %v18753_v45 = vld [vmem:[%s19315_s23 + $0x2b0] sm:$0xff]   ;;  %v18754_v46 = vld [vmem:[%s19315_s23 + $0x228] sm:$0xff]  }
 0x38a   : > { %v3407_v3 = vadd.f32 %v20240_v41, %v3369_v57  ;;  %v3370_v31 = vmul.f32 %v16285_v63, %v20236_v40  ;;  %v3289_v7 = vpop.f32.mrb[31].mxu0  ;;  %v6589_v9 = vadd.f32 %v20240_v41, %v6557_v61  ;;  %v6558_v11 = vmul.f32 %v16591_v6, %v20236_v40  ;;  %v6483_v13 = vpop.f32.mrb[31].mxu1  ;;  %v18755_v47 = vld [vmem:[%s19315_s23 + $0x2b8] sm:$0xff]   ;;  %v18757_v49 = vld [vmem:[%s19315_s23 + $0x248] sm:$0xff]   ;;  %v18758_v50 = vld [vmem:[%s19315_s23 + $0x1c0] sm:$0xff]  }
 0x38b   : > { %v3405_v10 = vadd.f32 %v20240_v41, %v3367_v62  ;;  %v3368_v12 = vmul.f32 %v20236_v40, %v3289_v7  ;;  %v6587_v15 = vadd.f32 %v20240_v41, %v6555_v4  ;;  %v6556_v17 = vmul.f32 %v20236_v40, %v6483_v13  ;;  %v18756_v48 = vld [vmem:[%s19315_s23 + $0x1b8] sm:$0xff]   ;;  %v18760_v51 = vld [vmem:[%s19315_s23 + $0x250] sm:$0xff]   ;;  %v18762_v53 = vld [vmem:[%s19315_s23 + $0x1c8] sm:$0xff]  }
 0x38c   : > { %v3439_v14 = vmax.f32 %v3407_v3, 0.0  ;;  %v3408_v16 = vadd.f32 %v20240_v41, %v3370_v31  ;;  %16705 = vmatmul.mubr.msk.bf16.gmra.mrb[40].mxu0 %vm392_vm1, %v18734_v60  ;;  %v6621_v18 = vmax.f32 %v6589_v9, 0.0  ;;  %v6590_v20 = vadd.f32 %v20240_v41, %v6558_v11  ;;  %17011 = vmatmul.mubr.msk.bf16.gmra.mrb[40].mxu1 %vm392_vm1, %v18735_v0  ;;  %v18763_v55 = vld [vmem:[%s19315_s23 + $0x258] sm:$0xff]   ;;  %v20565_v56 = vld [vmem:[#allocation2 + $0x30] sm:$0x3f]   ;;  %v18767_v59 = vld [vmem:[%s19315_s23 + $0x268] sm:$0xff]  }
 0x38d   : > { %v3437_v19 = vmax.f32 %v3405_v10, 0.0  ;;  %v3406_v21 = vadd.f32 %v20240_v41, %v3368_v12  ;;  %16708 = vmatprep.mubr.msk.bf16.mxu0 %vm392_vm1, %v18736_v2  ;;  %v6619_v40 = vmax.f32 %v6587_v15, 0.0  ;;  %v6588_v23 = vadd.f32 %v20240_v41, %v6556_v17  ;;  %17014 = vmatprep.mubr.msk.bf16.mxu1 %vm392_vm1, %v18737_v8  ;;  %v18741_v41 = vld [vmem:[%s19315_s23 + $0x280] sm:$0xff]   ;;  %v20568_v57 = vld [vmem:[#allocation2 + $0x30] sm:$0x3f]   ;;  %v18766_v58 = vld [vmem:[%s19315_s23 + $0x1d8] sm:$0xff]  }
 0x38e   : > { %3471 = vst [vmem:[%s20269_s11 + $0xf0] sm:$0xff] %v3439_v14  ;;  %v3440_v22 = vmax.f32 %v3408_v16, 0.0  ;;  %14214 = vst [vmem:[%s20269_s11 + $0x1f0] sm:$0xff] %v6621_v18  ;;  %v6622_v24 = vmax.f32 %v6590_v20, 0.0  ;;  %v8425_v52 = vsel %vm441_vm0, %v20427_v1, 0  ;;  %v11608_v54 = vsel %vm441_vm0, %v20433_v5, 0 }
 0x38f   : > { %3469 = vst [vmem:[%s20269_s11 + $0xe0] sm:$0xff] %v3437_v19  ;;  %v3438_v25 = vmax.f32 %v3406_v21, 0.0  ;;  %14212 = vst [vmem:[%s20269_s11 + $0x1e0] sm:$0xff] %v6619_v40  ;;  %v6620_v26 = vmax.f32 %v6588_v23, 0.0  ;;  %v18764_v1 = vld [vmem:[%s19315_s23 + $0x1d0] sm:$0xff]   ;;  %v18765_v5 = vld [vmem:[%s19315_s23 + $0x260] sm:$0xff]  }
 0x390   : > { %3472 = vst [vmem:[%s20269_s11 + $0xf8] sm:$0xff] %v3440_v22  ;;  %14215 = vst [vmem:[%s20269_s11 + $0x1f8] sm:$0xff] %v6622_v24  ;;  %v18768_v60 = vld [vmem:[%s19315_s23 + $0x1e0] sm:$0xff]   ;;  %v18769_v61 = vld [vmem:[%s19315_s23 + $0x270] sm:$0xff]   ;;  %v8789_v40 = vsel %vm441_vm0, %v20565_v56, 0  ;;  %v11972_v23 = vsel %vm441_vm0, %v20568_v57, 0 }
 0x391   : > { %3470 = vst [vmem:[%s20269_s11 + $0xe8] sm:$0xff] %v3438_v25  ;;  %14213 = vst [vmem:[%s20269_s11 + $0x1e8] sm:$0xff] %v6620_v26  ;;  %v18770_v62 = vld [vmem:[%s19315_s23 + $0x1e8] sm:$0xff]   ;;  %v18771_v30 = vld [vmem:[%s19315_s23 + $0x278] sm:$0xff]  }
 0x392   : > { %v18772_v63 = vld [vmem:[%s19315_s23 + $0x1f0] sm:$0xff]   ;;  %v18773_v0 = vld [vmem:[%s19315_s23 + $0x280] sm:$0xff]   ;;  %v18774_v2 = vld [vmem:[%s19315_s23 + $0x1f8] sm:$0xff]  }
 0x393   : > { %v18775_v3 = vld [vmem:[%s19315_s23 + $0x288] sm:$0xff]   ;;  %v18776_v4 = vld [vmem:[%s19315_s23 + $0x200] sm:$0xff]   ;;  %v18777_v31 = vld [vmem:[%s19315_s23 + $0x290] sm:$0xff]  }
 0x394   : > { %16709 = vmatmul.mubr.msk.bf16.gmra.mrb[44].mxu0 %vm392_vm1, %v18738_v27  ;;  %17015 = vmatmul.mubr.msk.bf16.gmra.mrb[44].mxu1 %vm392_vm1, %v18739_v28  ;;  %v18778_v6 = vld [vmem:[%s19315_s23 + $0x208] sm:$0xff]   ;;  %v18779_v7 = vld [vmem:[%s19315_s23 + $0x298] sm:$0xff]   ;;  %v18780_v8 = vld [vmem:[%s19315_s23 + $0x210] sm:$0xff]  }
 0x395   : > { %16712 = vmatprep.mubr.msk.bf16.mxu0 %vm392_vm1, %v18740_v29  ;;  %17018 = vmatprep.mubr.msk.bf16.mxu1 %vm392_vm1, %v18741_v41  ;;  %v18781_v9 = vld [vmem:[%s19315_s23 + $0x2a0] sm:$0xff]   ;;  %v18782_v10 = vld [vmem:[%s19315_s23 + $0x218] sm:$0xff]   ;;  %v18783_v11 = vld [vmem:[%s19315_s23 + $0x2a8] sm:$0xff]  }
 0x396   : > { %v18784_v12 = vld [vmem:[%s19315_s23 + $0x220] sm:$0xff]   ;;  %v18785_v13 = vld [vmem:[%s19315_s23 + $0x2b0] sm:$0xff]   ;;  %v18786_v14 = vld [vmem:[%s19315_s23 + $0x228] sm:$0xff]  }
 0x397   : > { %v18787_v15 = vld [vmem:[%s19315_s23 + $0x2b8] sm:$0xff]   ;;  %v18788_v16 = vld [vmem:[%s19315_s23 + $0x230] sm:$0xff]   ;;  %v18789_v17 = vld [vmem:[%s19315_s23 + $0x2c0] sm:$0xff]  }
 0x398   : > { %v18790_v18 = vld [vmem:[%s19315_s23 + $0x1c0] sm:$0xff]   ;;  %v18791_v19 = vld [vmem:[%s19315_s23 + $0x250] sm:$0xff]   ;;  %v18792_v20 = vld [vmem:[%s19315_s23 + $0x1c8] sm:$0xff]  }
 0x399   : > { %v18794_v21 = vld [vmem:[%s19315_s23 + $0x258] sm:$0xff]   ;;  %v18796_v22 = vld [vmem:[%s19315_s23 + $0x1d0] sm:$0xff]   ;;  %v18797_v24 = vld [vmem:[%s19315_s23 + $0x260] sm:$0xff]  }
 0x39a   : > { %v20641_v25 = vld [vmem:[#allocation2 + $0x38] sm:$0x3f]   ;;  %v18799_v28 = vld [vmem:[%s19315_s23 + $0x268] sm:$0xff]   ;;  %v18800_v29 = vld [vmem:[%s19315_s23 + $0x1e0] sm:$0xff]  }
 0x39b   : > { %v20644_v26 = vld [vmem:[#allocation2 + $0x38] sm:$0x3f]   ;;  %v18801_v41 = vld [vmem:[%s19315_s23 + $0x270] sm:$0xff]  }
 0x39c   : > { %16713 = vmatmul.mubr.msk.bf16.gmra.mrb[48].mxu0 %vm392_vm1, %v18742_v32  ;;  %17019 = vmatmul.mubr.msk.bf16.gmra.mrb[48].mxu1 %vm392_vm1, %v18743_v33  ;;  %v18798_v27 = vld [vmem:[%s19315_s23 + $0x1d8] sm:$0xff]   ;;  %v18802_v32 = vld [vmem:[%s19315_s23 + $0x1e8] sm:$0xff]  }
 0x39d   : > { %16716 = vmatprep.mubr.msk.bf16.mxu0 %vm392_vm1, %v18744_v34  ;;  %17022 = vmatprep.mubr.msk.bf16.mxu1 %vm392_vm1, %v18745_v35  ;;  %v18803_v33 = vld [vmem:[%s19315_s23 + $0x278] sm:$0xff]   ;;  %v18804_v34 = vld [vmem:[%s19315_s23 + $0x1f0] sm:$0xff]   ;;  %v18805_v35 = vld [vmem:[%s19315_s23 + $0x280] sm:$0xff]  }
 0x3a4   : > { %16717 = vmatmul.mubr.msk.bf16.gmra.mrb[52].mxu0 %vm392_vm1, %v18746_v36  ;;  %17023 = vmatmul.mubr.msk.bf16.gmra.mrb[52].mxu1 %vm392_vm1, %v18747_v37  ;;  %v18806_v36 = vld [vmem:[%s19315_s23 + $0x1f8] sm:$0xff]   ;;  %v18807_v37 = vld [vmem:[%s19315_s23 + $0x288] sm:$0xff]  }
 0x3a5   : > { %16720 = vmatprep.mubr.msk.bf16.mxu0 %vm392_vm1, %v18748_v38  ;;  %17026 = vmatprep.mubr.msk.bf16.mxu1 %vm392_vm1, %v18749_v39  ;;  %v18808_v38 = vld [vmem:[%s19315_s23 + $0x200] sm:$0xff]   ;;  %v18809_v39 = vld [vmem:[%s19315_s23 + $0x290] sm:$0xff]  }
 0x3ac   : > { %16721 = vmatmul.mubr.msk.bf16.gmra.mrb[56].mxu0 %vm392_vm1, %v18750_v42  ;;  %17027 = vmatmul.mubr.msk.bf16.gmra.mrb[56].mxu1 %vm392_vm1, %v18751_v43  ;;  %v18810_v42 = vld [vmem:[%s19315_s23 + $0x208] sm:$0xff]   ;;  %v18811_v43 = vld [vmem:[%s19315_s23 + $0x298] sm:$0xff]  }
 0x3ad   : > { %16724 = vmatprep.mubr.msk.bf16.mxu0 %vm392_vm1, %v18752_v44  ;;  %17030 = vmatprep.mubr.msk.bf16.mxu1 %vm392_vm1, %v18753_v45  ;;  %v18812_v44 = vld [vmem:[%s19315_s23 + $0x210] sm:$0xff]   ;;  %v18813_v45 = vld [vmem:[%s19315_s23 + $0x2a0] sm:$0xff]  }
 0x3b4   : > { %16725 = vmatmul.mubr.msk.bf16.gmra.mrb[60].mxu0 %vm392_vm1, %v18754_v46  ;;  %17031 = vmatmul.mubr.msk.bf16.gmra.mrb[60].mxu1 %vm392_vm1, %v18755_v47  ;;  %v18814_v46 = vld [vmem:[%s19315_s23 + $0x218] sm:$0xff]   ;;  %v18815_v47 = vld [vmem:[%s19315_s23 + $0x2a8] sm:$0xff]  }
 0x3b5   : > { %16730 = vmatprep.mubr.msk.bf16.mxu0 %vm392_vm1, %v18756_v48  ;;  %17036 = vmatprep.mubr.msk.bf16.mxu1 %vm392_vm1, %v18757_v49  ;;  %v18816_v48 = vld [vmem:[%s19315_s23 + $0x220] sm:$0xff]   ;;  %v18817_v49 = vld [vmem:[%s19315_s23 + $0x2b0] sm:$0xff]  }
 0x3bc   : > { %16731 = vmatmul.mubr.msk.bf16.vlgmr.msra.gmra.mrb[32].mxu0 %vm392_vm1, %v18758_v50  ;;  %17037 = vmatmul.mubr.msk.bf16.vlgmr.msra.gmra.mrb[32].mxu1 %vm392_vm1, %v18760_v51  ;;  %v18818_v50 = vld [vmem:[%s19315_s23 + $0x228] sm:$0xff]   ;;  %v18819_v51 = vld [vmem:[%s19315_s23 + $0x2b8] sm:$0xff]  }
 0x3bd   : > { %16763 = vmatpush3.bf16.msra.mxu0 %v8425_v52  ;;  %17069 = vmatpush3.bf16.msra.mxu1 %v11608_v54  ;;  %v18820_v52 = vld [vmem:[%s19315_s23 + $0x230] sm:$0xff]   ;;  %v18822_v54 = vld [vmem:[%s19315_s23 + $0x238] sm:$0xff]  }
 0x3be   : > { %16734 = vmatprep.mubr.msk.bf16.mxu0 %vm392_vm1, %v18762_v53  ;;  %17040 = vmatprep.mubr.msk.bf16.mxu1 %vm392_vm1, %v18763_v55  ;;  %v18821_v53 = vld [vmem:[%s19315_s23 + $0x2c0] sm:$0xff]   ;;  %v18823_v55 = vld [vmem:[%s19315_s23 + $0x2c8] sm:$0xff]  }
 0x3bf   : > { %18252 = vmatprep.subr.msk.bf16.mxu0 %vm441_vm0, %v20565_v56  ;;  %18261 = vmatprep.subr.msk.bf16.mxu1 %vm441_vm0, %v20568_v57  ;;  %v18824_v56 = vld [vmem:[%s19315_s23 + $0x240] sm:$0xff]   ;;  %v18825_v57 = vld [vmem:[%s19315_s23 + $0x2d0] sm:$0xff]  }
 0x3c4   : > { %16735 = vmatmul.mubr.msk.bf16.gmra.mrb[36].mxu0 %vm392_vm1, %v18764_v1  ;;  %17041 = vmatmul.mubr.msk.bf16.gmra.mrb[36].mxu1 %vm392_vm1, %v18765_v5  ;;  %v18826_v1 = vld [vmem:[%s19315_s23 + $0x248] sm:$0xff]   ;;  %v18828_v5 = vld [vmem:[%s19315_s23 + $0x2d8] sm:$0xff]  }
 0x3c5   : > { %16738 = vmatprep.mubr.msk.bf16.mxu0 %vm392_vm1, %v18766_v58  ;;  %17044 = vmatprep.mubr.msk.bf16.mxu1 %vm392_vm1, %v18767_v59  ;;  %v9152_v58 = vsel %vm441_vm0, %v20641_v25, 0  ;;  %v18830_v59 = vld [vmem:[%s19315_s23 + $0x250] sm:$0xff]  }
 0x3cc   : > { %16739 = vmatmul.mubr.msk.bf16.gmra.mrb[40].mxu0 %vm392_vm1, %v18768_v60  ;;  %17045 = vmatmul.mubr.msk.bf16.gmra.mrb[40].mxu1 %vm392_vm1, %v18769_v61  ;;  %v12335_v60 = vsel %vm441_vm0, %v20644_v26, 0  ;;  %v18831_v61 = vld [vmem:[%s19315_s23 + $0x2e0] sm:$0xff]  }
 0x3cd   : > { %16742 = vmatprep.mubr.msk.bf16.mxu0 %vm392_vm1, %v18770_v62  ;;  %17048 = vmatprep.mubr.msk.bf16.mxu1 %vm392_vm1, %v18771_v30  ;;  %v20717_v62 = vld [vmem:[#allocation2 + $0x40] sm:$0x3f]  }
 0x3ce   : > { %v20720_v30 = vld [vmem:[#allocation2 + $0x40] sm:$0x3f]  }
 0x3d4   : > { %16743 = vmatmul.mubr.msk.bf16.gmra.mrb[44].mxu0 %vm392_vm1, %v18772_v63  ;;  %17049 = vmatmul.mubr.msk.bf16.gmra.mrb[44].mxu1 %vm392_vm1, %v18773_v0  ;;  %v18832_v63 = vld [vmem:[%s19315_s23 + $0x258] sm:$0xff]   ;;  %v18833_v0 = vld [vmem:[%s19315_s23 + $0x2e8] sm:$0xff]  }
 0x3d5   : > { %16746 = vmatprep.mubr.msk.bf16.mxu0 %vm392_vm1, %v18774_v2  ;;  %17052 = vmatprep.mubr.msk.bf16.mxu1 %vm392_vm1, %v18775_v3  ;;  %v18834_v2 = vld [vmem:[%s19315_s23 + $0x260] sm:$0xff]   ;;  %v18835_v3 = vld [vmem:[%s19315_s23 + $0x2f0] sm:$0xff]  }
 0x3dc   : > { %16747 = vmatmul.mubr.msk.bf16.gmra.mrb[48].mxu0 %vm392_vm1, %v18776_v4  ;;  %17053 = vmatmul.mubr.msk.bf16.gmra.mrb[48].mxu1 %vm392_vm1, %v18777_v31  ;;  %v18836_v4 = vld [vmem:[%s19315_s23 + $0x268] sm:$0xff]   ;;  %v18837_v31 = vld [vmem:[%s19315_s23 + $0x2f8] sm:$0xff]  }
 0x3dd   : > { %16750 = vmatprep.mubr.msk.bf16.mxu0 %vm392_vm1, %v18778_v6  ;;  %17056 = vmatprep.mubr.msk.bf16.mxu1 %vm392_vm1, %v18779_v7  ;;  %v18838_v6 = vld [vmem:[%s19315_s23 + $0x270] sm:$0xff]   ;;  %v18839_v7 = vld [vmem:[%s19315_s23 + $0x300] sm:$0xff]  }
 0x3e4   : > { %16751 = vmatmul.mubr.msk.bf16.gmra.mrb[52].mxu0 %vm392_vm1, %v18780_v8  ;;  %17057 = vmatmul.mubr.msk.bf16.gmra.mrb[52].mxu1 %vm392_vm1, %v18781_v9  ;;  %v18840_v8 = vld [vmem:[%s19315_s23 + $0x278] sm:$0xff]   ;;  %v18841_v9 = vld [vmem:[%s19315_s23 + $0x308] sm:$0xff]  }
 0x3e5   : > { %16754 = vmatprep.mubr.msk.bf16.mxu0 %vm392_vm1, %v18782_v10  ;;  %17060 = vmatprep.mubr.msk.bf16.mxu1 %vm392_vm1, %v18783_v11  ;;  %v18842_v10 = vld [vmem:[%s19315_s23 + $0x280] sm:$0xff]   ;;  %v18843_v11 = vld [vmem:[%s19315_s23 + $0x310] sm:$0xff]  }
 0x3ec   : > { %16755 = vmatmul.mubr.msk.bf16.gmra.mrb[56].mxu0 %vm392_vm1, %v18784_v12  ;;  %17061 = vmatmul.mubr.msk.bf16.gmra.mrb[56].mxu1 %vm392_vm1, %v18785_v13  ;;  %v18844_v12 = vld [vmem:[%s19315_s23 + $0x288] sm:$0xff]   ;;  %v18845_v13 = vld [vmem:[%s19315_s23 + $0x318] sm:$0xff]  }
 0x3ed   : > { %16758 = vmatprep.mubr.msk.bf16.mxu0 %vm392_vm1, %v18786_v14  ;;  %17064 = vmatprep.mubr.msk.bf16.mxu1 %vm392_vm1, %v18787_v15  ;;  %v18846_v14 = vld [vmem:[%s19315_s23 + $0x290] sm:$0xff]   ;;  %v18847_v15 = vld [vmem:[%s19315_s23 + $0x320] sm:$0xff]  }
 0x3f4   : > { %16759 = vmatmul.mubr.msk.bf16.gmra.mrb[60].mxu0 %vm392_vm1, %v18788_v16  ;;  %17065 = vmatmul.mubr.msk.bf16.gmra.mrb[60].mxu1 %vm392_vm1, %v18789_v17  ;;  %v18848_v16 = vld [vmem:[%s19315_s23 + $0x298] sm:$0xff]   ;;  %v18849_v17 = vld [vmem:[%s19315_s23 + $0x328] sm:$0xff]  }
 0x3f5   : > { %16764 = vmatprep.mubr.msk.bf16.mxu0 %vm392_vm1, %v18790_v18  ;;  %17070 = vmatprep.mubr.msk.bf16.mxu1 %vm392_vm1, %v18791_v19  ;;  %v18850_v18 = vld [vmem:[%s19315_s23 + $0x2a0] sm:$0xff]   ;;  %v18851_v19 = vld [vmem:[%s19315_s23 + $0x330] sm:$0xff]  }
 0x3fc   : > { %16765 = vmatmul.mubr.msk.bf16.vlgmr.msra.gmra.mrb[32].mxu0 %vm392_vm1, %v18792_v20  ;;  %17071 = vmatmul.mubr.msk.bf16.vlgmr.msra.gmra.mrb[32].mxu1 %vm392_vm1, %v18794_v21  ;;  %v18852_v20 = vld [vmem:[%s19315_s23 + $0x2a8] sm:$0xff]   ;;  %v18853_v21 = vld [vmem:[%s19315_s23 + $0x338] sm:$0xff]  }
 0x3fd   : > { %16797 = vmatpush3.bf16.msra.mxu0 %v8789_v40  ;;  %17103 = vmatpush3.bf16.msra.mxu1 %v11972_v23  ;;  %v18854_v40 = vld [vmem:[%s19315_s23 + $0x2b0] sm:$0xff]   ;;  %v18856_v23 = vld [vmem:[%s19315_s23 + $0x2b8] sm:$0xff]  }
 0x3fe   : > { %16768 = vmatprep.mubr.msk.bf16.mxu0 %vm392_vm1, %v18796_v22  ;;  %17074 = vmatprep.mubr.msk.bf16.mxu1 %vm392_vm1, %v18797_v24  ;;  %v18855_v22 = vld [vmem:[%s19315_s23 + $0x340] sm:$0xff]   ;;  %v18857_v24 = vld [vmem:[%s19315_s23 + $0x348] sm:$0xff]  }
 0x3ff   : > { %18253 = vmatprep.subr.msk.bf16.mxu0 %vm441_vm0, %v20641_v25  ;;  %18262 = vmatprep.subr.msk.bf16.mxu1 %vm441_vm0, %v20644_v26  ;;  %v18858_v25 = vld [vmem:[%s19315_s23 + $0x248] sm:$0xff]   ;;  %v18859_v26 = vld [vmem:[%s19315_s23 + $0x2d8] sm:$0xff]  }
 0x404   : > { %16769 = vmatmul.mubr.msk.bf16.gmra.mrb[36].mxu0 %vm392_vm1, %v18798_v27  ;;  %17075 = vmatmul.mubr.msk.bf16.gmra.mrb[36].mxu1 %vm392_vm1, %v18799_v28  ;;  %v18860_v27 = vld [vmem:[%s19315_s23 + $0x250] sm:$0xff]   ;;  %v18862_v28 = vld [vmem:[%s19315_s23 + $0x2e0] sm:$0xff]  }
 0x405   : > { %16772 = vmatprep.mubr.msk.bf16.mxu0 %vm392_vm1, %v18800_v29  ;;  %17078 = vmatprep.mubr.msk.bf16.mxu1 %vm392_vm1, %v18801_v41  ;;  %v9515_v29 = vsel %vm441_vm0, %v20717_v62, 0  ;;  %v18864_v41 = vld [vmem:[%s19315_s23 + $0x258] sm:$0xff]  }
 0x40c   : > { %16773 = vmatmul.mubr.msk.bf16.gmra.mrb[40].mxu0 %vm392_vm1, %v18802_v32  ;;  %17079 = vmatmul.mubr.msk.bf16.gmra.mrb[40].mxu1 %vm392_vm1, %v18803_v33  ;;  %v12698_v32 = vsel %vm441_vm0, %v20720_v30, 0  ;;  %v18865_v33 = vld [vmem:[%s19315_s23 + $0x2e8] sm:$0xff]  }
 0x40d   : > { %16776 = vmatprep.mubr.msk.bf16.mxu0 %vm392_vm1, %v18804_v34  ;;  %17082 = vmatprep.mubr.msk.bf16.mxu1 %vm392_vm1, %v18805_v35  ;;  %v18866_v34 = vld [vmem:[%s19315_s23 + $0x260] sm:$0xff]   ;;  %v18867_v35 = vld [vmem:[%s19315_s23 + $0x2f0] sm:$0xff]  }
 0x414   : > { %16777 = vmatmul.mubr.msk.bf16.gmra.mrb[44].mxu0 %vm392_vm1, %v18806_v36  ;;  %17083 = vmatmul.mubr.msk.bf16.gmra.mrb[44].mxu1 %vm392_vm1, %v18807_v37  ;;  %v18868_v36 = vld [vmem:[%s19315_s23 + $0x268] sm:$0xff]   ;;  %v18869_v37 = vld [vmem:[%s19315_s23 + $0x2f8] sm:$0xff]  }
 0x415   : > { %16780 = vmatprep.mubr.msk.bf16.mxu0 %vm392_vm1, %v18808_v38  ;;  %17086 = vmatprep.mubr.msk.bf16.mxu1 %vm392_vm1, %v18809_v39  ;;  %v18870_v38 = vld [vmem:[%s19315_s23 + $0x270] sm:$0xff]   ;;  %v18871_v39 = vld [vmem:[%s19315_s23 + $0x300] sm:$0xff]  }
 0x41c   : > { %16781 = vmatmul.mubr.msk.bf16.gmra.mrb[48].mxu0 %vm392_vm1, %v18810_v42  ;;  %17087 = vmatmul.mubr.msk.bf16.gmra.mrb[48].mxu1 %vm392_vm1, %v18811_v43  ;;  %v18872_v42 = vld [vmem:[%s19315_s23 + $0x278] sm:$0xff]   ;;  %v18873_v43 = vld [vmem:[%s19315_s23 + $0x308] sm:$0xff]  }
 0x41d   : > { %16784 = vmatprep.mubr.msk.bf16.mxu0 %vm392_vm1, %v18812_v44  ;;  %17090 = vmatprep.mubr.msk.bf16.mxu1 %vm392_vm1, %v18813_v45  ;;  %v18874_v44 = vld [vmem:[%s19315_s23 + $0x280] sm:$0xff]   ;;  %v18875_v45 = vld [vmem:[%s19315_s23 + $0x310] sm:$0xff]  }
 0x424   : > { %16785 = vmatmul.mubr.msk.bf16.gmra.mrb[52].mxu0 %vm392_vm1, %v18814_v46  ;;  %17091 = vmatmul.mubr.msk.bf16.gmra.mrb[52].mxu1 %vm392_vm1, %v18815_v47  ;;  %v18876_v46 = vld [vmem:[%s19315_s23 + $0x288] sm:$0xff]   ;;  %v18877_v47 = vld [vmem:[%s19315_s23 + $0x318] sm:$0xff]  }
 0x425   : > { %16788 = vmatprep.mubr.msk.bf16.mxu0 %vm392_vm1, %v18816_v48  ;;  %17094 = vmatprep.mubr.msk.bf16.mxu1 %vm392_vm1, %v18817_v49  ;;  %v18878_v48 = vld [vmem:[%s19315_s23 + $0x290] sm:$0xff]   ;;  %v18879_v49 = vld [vmem:[%s19315_s23 + $0x320] sm:$0xff]  }
 0x42c   : > { %16789 = vmatmul.mubr.msk.bf16.gmra.mrb[56].mxu0 %vm392_vm1, %v18818_v50  ;;  %17095 = vmatmul.mubr.msk.bf16.gmra.mrb[56].mxu1 %vm392_vm1, %v18819_v51  ;;  %v18880_v50 = vld [vmem:[%s19315_s23 + $0x298] sm:$0xff]   ;;  %v18881_v51 = vld [vmem:[%s19315_s23 + $0x328] sm:$0xff]  }
 0x42d   : > { %16792 = vmatprep.mubr.msk.bf16.mxu0 %vm392_vm1, %v18820_v52  ;;  %17098 = vmatprep.mubr.msk.bf16.mxu1 %vm392_vm1, %v18821_v53  ;;  %v18882_v52 = vld [vmem:[%s19315_s23 + $0x2a0] sm:$0xff]   ;;  %v18883_v53 = vld [vmem:[%s19315_s23 + $0x330] sm:$0xff]  }
 0x434   : > { %16793 = vmatmul.mubr.msk.bf16.gmra.mrb[60].mxu0 %vm392_vm1, %v18822_v54  ;;  %17099 = vmatmul.mubr.msk.bf16.gmra.mrb[60].mxu1 %vm392_vm1, %v18823_v55  ;;  %v18884_v54 = vld [vmem:[%s19315_s23 + $0x2a8] sm:$0xff]   ;;  %v18885_v55 = vld [vmem:[%s19315_s23 + $0x338] sm:$0xff]  }
 0x435   : > { %16798 = vmatprep.mubr.msk.bf16.mxu0 %vm392_vm1, %v18824_v56  ;;  %17104 = vmatprep.mubr.msk.bf16.mxu1 %vm392_vm1, %v18825_v57  ;;  %v18886_v56 = vld [vmem:[%s19315_s23 + $0x2b0] sm:$0xff]   ;;  %v18887_v57 = vld [vmem:[%s19315_s23 + $0x340] sm:$0xff]  }
 0x43c   : > { %16799 = vmatmul.mubr.msk.bf16.vlgmr.msra.gmra.mrb[32].mxu0 %vm392_vm1, %v18826_v1  ;;  %17105 = vmatmul.mubr.msk.bf16.vlgmr.msra.gmra.mrb[32].mxu1 %vm392_vm1, %v18828_v5  ;;  %v18888_v1 = vld [vmem:[%s19315_s23 + $0x2b8] sm:$0xff]   ;;  %v18889_v5 = vld [vmem:[%s19315_s23 + $0x348] sm:$0xff]  }
 0x43d   : > { %16831 = vmatpush3.bf16.msra.mxu0 %v9152_v58  ;;  %17137 = vmatpush3.bf16.msra.mxu1 %v12335_v60  ;;  %v18890_v58 = vld [vmem:[%s19315_s23 + $0x2c0] sm:$0xff]   ;;  %v18892_v60 = vld [vmem:[%s19315_s23 + $0x250] sm:$0xff]  }
 0x43e   : > { %16802 = vmatprep.mubr.msk.bf16.mxu0 %vm392_vm1, %v18830_v59  ;;  %17108 = vmatprep.mubr.msk.bf16.mxu1 %vm392_vm1, %v18831_v61  ;;  %v18891_v59 = vld [vmem:[%s19315_s23 + $0x350] sm:$0xff]   ;;  %v18893_v61 = vld [vmem:[%s19315_s23 + $0x2e0] sm:$0xff]  }
 0x43f   : > { %18254 = vmatprep.subr.msk.bf16.mxu0 %vm441_vm0, %v20717_v62  ;;  %18263 = vmatprep.subr.msk.bf16.mxu1 %vm441_vm0, %v20720_v30  ;;  %v18894_v62 = vld [vmem:[%s19315_s23 + $0x258] sm:$0xff]   ;;  %v18895_v30 = vld [vmem:[%s19315_s23 + $0x2e8] sm:$0xff]  }
 0x444   : > { %16803 = vmatmul.mubr.msk.bf16.gmra.mrb[36].mxu0 %vm392_vm1, %v18832_v63  ;;  %17109 = vmatmul.mubr.msk.bf16.gmra.mrb[36].mxu1 %vm392_vm1, %v18833_v0  ;;  %v18896_v63 = vld [vmem:[%s19315_s23 + $0x260] sm:$0xff]   ;;  %v18897_v0 = vld [vmem:[%s19315_s23 + $0x2f0] sm:$0xff]  }
 0x445   : > { %16806 = vmatprep.mubr.msk.bf16.mxu0 %vm392_vm1, %v18834_v2  ;;  %17112 = vmatprep.mubr.msk.bf16.mxu1 %vm392_vm1, %v18835_v3  ;;  %v18898_v2 = vld [vmem:[%s19315_s23 + $0x268] sm:$0xff]   ;;  %v18899_v3 = vld [vmem:[%s19315_s23 + $0x2f8] sm:$0xff]  }
 0x44c   : > { %16807 = vmatmul.mubr.msk.bf16.gmra.mrb[40].mxu0 %vm392_vm1, %v18836_v4  ;;  %17113 = vmatmul.mubr.msk.bf16.gmra.mrb[40].mxu1 %vm392_vm1, %v18837_v31  ;;  %v18900_v4 = vld [vmem:[%s19315_s23 + $0x270] sm:$0xff]   ;;  %v18901_v31 = vld [vmem:[%s19315_s23 + $0x300] sm:$0xff]  }
 0x44d   : > { %16810 = vmatprep.mubr.msk.bf16.mxu0 %vm392_vm1, %v18838_v6  ;;  %17116 = vmatprep.mubr.msk.bf16.mxu1 %vm392_vm1, %v18839_v7  ;;  %v18902_v6 = vld [vmem:[%s19315_s23 + $0x278] sm:$0xff]   ;;  %v18903_v7 = vld [vmem:[%s19315_s23 + $0x308] sm:$0xff]  }
 0x454   : > { %16811 = vmatmul.mubr.msk.bf16.gmra.mrb[44].mxu0 %vm392_vm1, %v18840_v8  ;;  %17117 = vmatmul.mubr.msk.bf16.gmra.mrb[44].mxu1 %vm392_vm1, %v18841_v9  ;;  %v18904_v8 = vld [vmem:[%s19315_s23 + $0x280] sm:$0xff]   ;;  %v18905_v9 = vld [vmem:[%s19315_s23 + $0x310] sm:$0xff]  }
 0x455   : > { %16814 = vmatprep.mubr.msk.bf16.mxu0 %vm392_vm1, %v18842_v10  ;;  %17120 = vmatprep.mubr.msk.bf16.mxu1 %vm392_vm1, %v18843_v11  ;;  %v18906_v10 = vld [vmem:[%s19315_s23 + $0x288] sm:$0xff]   ;;  %v18907_v11 = vld [vmem:[%s19315_s23 + $0x318] sm:$0xff]  }
 0x45c   : > { %16815 = vmatmul.mubr.msk.bf16.gmra.mrb[48].mxu0 %vm392_vm1, %v18844_v12  ;;  %17121 = vmatmul.mubr.msk.bf16.gmra.mrb[48].mxu1 %vm392_vm1, %v18845_v13  ;;  %v18908_v12 = vld [vmem:[%s19315_s23 + $0x290] sm:$0xff]   ;;  %v18909_v13 = vld [vmem:[%s19315_s23 + $0x320] sm:$0xff]  }
 0x45d   : > { %16818 = vmatprep.mubr.msk.bf16.mxu0 %vm392_vm1, %v18846_v14  ;;  %17124 = vmatprep.mubr.msk.bf16.mxu1 %vm392_vm1, %v18847_v15  ;;  %v18910_v14 = vld [vmem:[%s19315_s23 + $0x298] sm:$0xff]   ;;  %v18911_v15 = vld [vmem:[%s19315_s23 + $0x328] sm:$0xff]  }
 0x464   : > { %16819 = vmatmul.mubr.msk.bf16.gmra.mrb[52].mxu0 %vm392_vm1, %v18848_v16  ;;  %17125 = vmatmul.mubr.msk.bf16.gmra.mrb[52].mxu1 %vm392_vm1, %v18849_v17  ;;  %v18912_v16 = vld [vmem:[%s19315_s23 + $0x2a0] sm:$0xff]   ;;  %v18913_v17 = vld [vmem:[%s19315_s23 + $0x330] sm:$0xff]  }
 0x465   : > { %16822 = vmatprep.mubr.msk.bf16.mxu0 %vm392_vm1, %v18850_v18  ;;  %17128 = vmatprep.mubr.msk.bf16.mxu1 %vm392_vm1, %v18851_v19  ;;  %v18914_v18 = vld [vmem:[%s19315_s23 + $0x2a8] sm:$0xff]   ;;  %v18915_v19 = vld [vmem:[%s19315_s23 + $0x338] sm:$0xff]  }
 0x46c   : > { %16823 = vmatmul.mubr.msk.bf16.gmra.mrb[56].mxu0 %vm392_vm1, %v18852_v20  ;;  %17129 = vmatmul.mubr.msk.bf16.gmra.mrb[56].mxu1 %vm392_vm1, %v18853_v21  ;;  %v18916_v20 = vld [vmem:[%s19315_s23 + $0x2b0] sm:$0xff]   ;;  %v18917_v21 = vld [vmem:[%s19315_s23 + $0x340] sm:$0xff]  }
 0x46d   : > { %16826 = vmatprep.mubr.msk.bf16.mxu0 %vm392_vm1, %v18854_v40  ;;  %17132 = vmatprep.mubr.msk.bf16.mxu1 %vm392_vm1, %v18855_v22  ;;  %v18918_v40 = vld [vmem:[%s19315_s23 + $0x2b8] sm:$0xff]   ;;  %v18919_v22 = vld [vmem:[%s19315_s23 + $0x348] sm:$0xff]  }
 0x474   : > { %16827 = vmatmul.mubr.msk.bf16.gmra.mrb[60].mxu0 %vm392_vm1, %v18856_v23  ;;  %17133 = vmatmul.mubr.msk.bf16.gmra.mrb[60].mxu1 %vm392_vm1, %v18857_v24  ;;  %v18920_v23 = vld [vmem:[%s19315_s23 + $0x2c0] sm:$0xff]   ;;  %v18921_v24 = vld [vmem:[%s19315_s23 + $0x350] sm:$0xff]  }
 0x475   : > { %16832 = vmatprep.mubr.msk.bf16.mxu0 %vm392_vm1, %v18858_v25  ;;  %17138 = vmatprep.mubr.msk.bf16.mxu1 %vm392_vm1, %v18859_v26  ;;  %v18922_v25 = vld [vmem:[%s19315_s23 + $0x2c8] sm:$0xff]   ;;  %v18923_v26 = vld [vmem:[%s19315_s23 + $0x358] sm:$0xff]  }
 0x47c   : > { %16833 = vmatmul.mubr.msk.bf16.vlgmr.msra.gmra.mrb[32].mxu0 %vm392_vm1, %v18860_v27  ;;  %17139 = vmatmul.mubr.msk.bf16.vlgmr.msra.gmra.mrb[32].mxu1 %vm392_vm1, %v18862_v28  ;;  %v20913_v28 = vld [vmem:[#allocation5] ss:$0 sm:$0xff] }
 0x47d   : > { %16865 = vmatpush3.bf16.msra.mxu0 %v9515_v29  ;;  %17171 = vmatpush3.bf16.msra.mxu1 %v12698_v32 }
 0x47e   : > { %16836 = vmatprep.mubr.msk.bf16.mxu0 %vm392_vm1, %v18864_v41  ;;  %17142 = vmatprep.mubr.msk.bf16.mxu1 %vm392_vm1, %v18865_v33 }
 0x484   : > { %16837 = vmatmul.mubr.msk.bf16.gmra.mrb[36].mxu0 %vm392_vm1, %v18866_v34  ;;  %17143 = vmatmul.mubr.msk.bf16.gmra.mrb[36].mxu1 %vm392_vm1, %v18867_v35 }
 0x485   : > { %16840 = vmatprep.mubr.msk.bf16.mxu0 %vm392_vm1, %v18868_v36  ;;  %17146 = vmatprep.mubr.msk.bf16.mxu1 %vm392_vm1, %v18869_v37  ;;  %v20918_v37 = vld [vmem:[#allocation7] ss:$0 sm:$0xff] }
 0x48c   : > { %16841 = vmatmul.mubr.msk.bf16.gmra.mrb[40].mxu0 %vm392_vm1, %v18870_v38  ;;  %17147 = vmatmul.mubr.msk.bf16.gmra.mrb[40].mxu1 %vm392_vm1, %v18871_v39 }
 0x48d   : > { %16844 = vmatprep.mubr.msk.bf16.mxu0 %vm392_vm1, %v18872_v42  ;;  %17150 = vmatprep.mubr.msk.bf16.mxu1 %vm392_vm1, %v18873_v43 }
 0x494   : > { %16845 = vmatmul.mubr.msk.bf16.gmra.mrb[44].mxu0 %vm392_vm1, %v18874_v44  ;;  %17151 = vmatmul.mubr.msk.bf16.gmra.mrb[44].mxu1 %vm392_vm1, %v18875_v45 }
 0x495   : > { %16848 = vmatprep.mubr.msk.bf16.mxu0 %vm392_vm1, %v18876_v46  ;;  %17154 = vmatprep.mubr.msk.bf16.mxu1 %vm392_vm1, %v18877_v47 }
 0x49c   : > { %16849 = vmatmul.mubr.msk.bf16.gmra.mrb[48].mxu0 %vm392_vm1, %v18878_v48  ;;  %17155 = vmatmul.mubr.msk.bf16.gmra.mrb[48].mxu1 %vm392_vm1, %v18879_v49 }
 0x49d   : > { %16852 = vmatprep.mubr.msk.bf16.mxu0 %vm392_vm1, %v18880_v50  ;;  %17158 = vmatprep.mubr.msk.bf16.mxu1 %vm392_vm1, %v18881_v51 }
 0x4a4   : > { %16853 = vmatmul.mubr.msk.bf16.gmra.mrb[52].mxu0 %vm392_vm1, %v18882_v52  ;;  %17159 = vmatmul.mubr.msk.bf16.gmra.mrb[52].mxu1 %vm392_vm1, %v18883_v53 }
 0x4a5   : > { %16856 = vmatprep.mubr.msk.bf16.mxu0 %vm392_vm1, %v18884_v54  ;;  %17162 = vmatprep.mubr.msk.bf16.mxu1 %vm392_vm1, %v18885_v55 }
 0x4ac   : > { %16857 = vmatmul.mubr.msk.bf16.gmra.mrb[56].mxu0 %vm392_vm1, %v18886_v56  ;;  %17163 = vmatmul.mubr.msk.bf16.gmra.mrb[56].mxu1 %vm392_vm1, %v18887_v57 }
 0x4ad   : > { %16860 = vmatprep.mubr.msk.bf16.mxu0 %vm392_vm1, %v18888_v1  ;;  %17166 = vmatprep.mubr.msk.bf16.mxu1 %vm392_vm1, %v18889_v5 }
 0x4b4   : > { %16861 = vmatmul.mubr.msk.bf16.gmra.mrb[60].mxu0 %vm392_vm1, %v18890_v58  ;;  %17167 = vmatmul.mubr.msk.bf16.gmra.mrb[60].mxu1 %vm392_vm1, %v18891_v59 }
 0x4b5   : > { %16866 = vmatprep.mubr.msk.bf16.mxu0 %vm392_vm1, %v18892_v60  ;;  %17172 = vmatprep.mubr.msk.bf16.mxu1 %vm392_vm1, %v18893_v61 }
 0x4bc   : > { %16867 = vmatmul.mubr.msk.bf16.vlgmr.msra.gmra.mrb[32].mxu0 %vm392_vm1, %v18894_v62  ;;  %17173 = vmatmul.mubr.msk.bf16.vlgmr.msra.gmra.mrb[32].mxu1 %vm392_vm1, %v18895_v30 }
 0x4bd   : > { %16870 = vmatprep.mubr.msk.bf16.mxu0 %vm392_vm1, %v18896_v63  ;;  %17176 = vmatprep.mubr.msk.bf16.mxu1 %vm392_vm1, %v18897_v0 }
 0x4c4   : > { %16871 = vmatmul.mubr.msk.bf16.gmra.mrb[36].mxu0 %vm392_vm1, %v18898_v2  ;;  %17177 = vmatmul.mubr.msk.bf16.gmra.mrb[36].mxu1 %vm392_vm1, %v18899_v3 }
 0x4c5   : > { %16874 = vmatprep.mubr.msk.bf16.mxu0 %vm392_vm1, %v18900_v4  ;;  %17180 = vmatprep.mubr.msk.bf16.mxu1 %vm392_vm1, %v18901_v31 }
 0x4cc   : > { %16875 = vmatmul.mubr.msk.bf16.gmra.mrb[40].mxu0 %vm392_vm1, %v18902_v6  ;;  %17181 = vmatmul.mubr.msk.bf16.gmra.mrb[40].mxu1 %vm392_vm1, %v18903_v7 }
 0x4cd   : > { %16878 = vmatprep.mubr.msk.bf16.mxu0 %vm392_vm1, %v18904_v8  ;;  %17184 = vmatprep.mubr.msk.bf16.mxu1 %vm392_vm1, %v18905_v9 }
 0x4d4   : > { %16879 = vmatmul.mubr.msk.bf16.gmra.mrb[44].mxu0 %vm392_vm1, %v18906_v10  ;;  %17185 = vmatmul.mubr.msk.bf16.gmra.mrb[44].mxu1 %vm392_vm1, %v18907_v11 }
 0x4d5   : > { %16882 = vmatprep.mubr.msk.bf16.mxu0 %vm392_vm1, %v18908_v12  ;;  %17188 = vmatprep.mubr.msk.bf16.mxu1 %vm392_vm1, %v18909_v13 }
 0x4dc   : > { %16883 = vmatmul.mubr.msk.bf16.gmra.mrb[48].mxu0 %vm392_vm1, %v18910_v14  ;;  %17189 = vmatmul.mubr.msk.bf16.gmra.mrb[48].mxu1 %vm392_vm1, %v18911_v15 }
 0x4dd   : > { %16886 = vmatprep.mubr.msk.bf16.mxu0 %vm392_vm1, %v18912_v16  ;;  %17192 = vmatprep.mubr.msk.bf16.mxu1 %vm392_vm1, %v18913_v17 }
 0x4e4   : > { %16887 = vmatmul.mubr.msk.bf16.gmra.mrb[52].mxu0 %vm392_vm1, %v18914_v18  ;;  %17193 = vmatmul.mubr.msk.bf16.gmra.mrb[52].mxu1 %vm392_vm1, %v18915_v19 }
 0x4e5   : > { %16890 = vmatprep.mubr.msk.bf16.mxu0 %vm392_vm1, %v18916_v20  ;;  %17196 = vmatprep.mubr.msk.bf16.mxu1 %vm392_vm1, %v18917_v21 }
 0x4ec   : > { %16891 = vmatmul.mubr.msk.bf16.gmra.mrb[56].mxu0 %vm392_vm1, %v18918_v40  ;;  %17197 = vmatmul.mubr.msk.bf16.gmra.mrb[56].mxu1 %vm392_vm1, %v18919_v22 }
 0x4ed   : > { %16894 = vmatprep.mubr.msk.bf16.mxu0 %vm392_vm1, %v18920_v23  ;;  %17200 = vmatprep.mubr.msk.bf16.mxu1 %vm392_vm1, %v18921_v24 }
 0x4f4   : > { %16895 = vmatmul.mubr.msk.bf16.gmra.mrb[60].mxu0 %vm392_vm1, %v18922_v25  ;;  %17201 = vmatmul.mubr.msk.bf16.gmra.mrb[60].mxu1 %vm392_vm1, %v18923_v26 }
 0x58f   : > { %v16868_v27 = vpop.f32.mrb[32].mxu0  ;;  %v17174_v41 = vpop.f32.mrb[32].mxu1 }
 0x590   : > { %v9712_v29 = vmul.f32 %v20913_v28, %v16868_v27  ;;  %v9551_v32 = vpop.f32.mrb[33].mxu0  ;;  %v12895_v33 = vmul.f32 %v20913_v28, %v17174_v41  ;;  %v12734_v35 = vpop.f32.mrb[33].mxu1 }
 0x591   : > { %v9710_v34 = vmul.f32 %v20913_v28, %v9551_v32  ;;  %v16869_v36 = vpop.f32.mrb[34].mxu0  ;;  %v12893_v39 = vmul.f32 %v20913_v28, %v12734_v35  ;;  %v17175_v43 = vpop.f32.mrb[34].mxu1 }
 0x592   : > { %v9744_v38 = vadd.f32 %v20918_v37, %v9712_v29  ;;  %v9713_v42 = vmul.f32 %v20913_v28, %v16869_v36  ;;  %v9554_v44 = vpop.f32.mrb[35].mxu0  ;;  %v12927_v45 = vadd.f32 %v20918_v37, %v12895_v33  ;;  %v12896_v47 = vmul.f32 %v20913_v28, %v17175_v43  ;;  %v12737_v49 = vpop.f32.mrb[35].mxu1 }
 0x593   : > { %v9742_v46 = vadd.f32 %v20918_v37, %v9710_v34  ;;  %v9711_v48 = vmul.f32 %v20913_v28, %v9554_v44  ;;  %v12925_v51 = vadd.f32 %v20918_v37, %v12893_v39  ;;  %v12894_v53 = vmul.f32 %v20913_v28, %v12737_v49 }
 0x594   : > { %v9776_v50 = vmax.f32 %v9744_v38, 0.0  ;;  %v9745_v52 = vadd.f32 %v20918_v37, %v9713_v42  ;;  %v12959_v54 = vmax.f32 %v12927_v45, 0.0  ;;  %v12928_v56 = vadd.f32 %v20918_v37, %v12896_v47 }
 0x595   : > { %v9774_v55 = vmax.f32 %v9742_v46, 0.0  ;;  %v9743_v57 = vadd.f32 %v20918_v37, %v9711_v48  ;;  %v12957_v1 = vmax.f32 %v12925_v51, 0.0  ;;  %v12926_v58 = vadd.f32 %v20918_v37, %v12894_v53 }
 0x596   : > { %14758 = vst [vmem:[%s20269_s11 + $0x210] sm:$0xff] %v9776_v50  ;;  %v9777_v5 = vmax.f32 %v9745_v52, 0.0  ;;  %15330 = vst [vmem:[%s20269_s11 + $0x310] sm:$0xff] %v12959_v54  ;;  %v12960_v59 = vmax.f32 %v12928_v56, 0.0 }
 0x597   : > { %14756 = vst [vmem:[%s20269_s11 + $0x200] sm:$0xff] %v9774_v55  ;;  %v9775_v60 = vmax.f32 %v9743_v57, 0.0  ;;  %v16872_v61 = vpop.f32.mrb[36].mxu0  ;;  %15328 = vst [vmem:[%s20269_s11 + $0x300] sm:$0xff] %v12957_v1  ;;  %v12958_v62 = vmax.f32 %v12926_v58, 0.0  ;;  %v17178_v63 = vpop.f32.mrb[36].mxu1 }
 0x598   : > { %14759 = vst [vmem:[%s20269_s11 + $0x218] sm:$0xff] %v9777_v5  ;;  %v9716_v30 = vmul.f32 %v20913_v28, %v16872_v61  ;;  %v9567_v0 = vpop.f32.mrb[37].mxu0  ;;  %15331 = vst [vmem:[%s20269_s11 + $0x318] sm:$0xff] %v12960_v59  ;;  %v12899_v2 = vmul.f32 %v20913_v28, %v17178_v63  ;;  %v12750_v4 = vpop.f32.mrb[37].mxu1 }
 0x599   : > { %14757 = vst [vmem:[%s20269_s11 + $0x208] sm:$0xff] %v9775_v60  ;;  %v9714_v3 = vmul.f32 %v20913_v28, %v9567_v0  ;;  %v16873_v31 = vpop.f32.mrb[38].mxu0  ;;  %15329 = vst [vmem:[%s20269_s11 + $0x308] sm:$0xff] %v12958_v62  ;;  %v12897_v7 = vmul.f32 %v20913_v28, %v12750_v4  ;;  %v17179_v9 = vpop.f32.mrb[38].mxu1 }
 0x59a   : > { %v9748_v6 = vadd.f32 %v20918_v37, %v9716_v30  ;;  %v9717_v8 = vmul.f32 %v20913_v28, %v16873_v31  ;;  %v9570_v10 = vpop.f32.mrb[39].mxu0  ;;  %v12931_v11 = vadd.f32 %v20918_v37, %v12899_v2  ;;  %v12900_v13 = vmul.f32 %v20913_v28, %v17179_v9  ;;  %v12753_v15 = vpop.f32.mrb[39].mxu1 }
 0x59b   : > { %v9746_v12 = vadd.f32 %v20918_v37, %v9714_v3  ;;  %v9715_v14 = vmul.f32 %v20913_v28, %v9570_v10  ;;  %v12929_v17 = vadd.f32 %v20918_v37, %v12897_v7  ;;  %v12898_v19 = vmul.f32 %v20913_v28, %v12753_v15 }
 0x59c   : > { %v9780_v16 = vmax.f32 %v9748_v6, 0.0  ;;  %v9749_v18 = vadd.f32 %v20918_v37, %v9717_v8  ;;  %v12963_v20 = vmax.f32 %v12931_v11, 0.0  ;;  %v12932_v40 = vadd.f32 %v20918_v37, %v12900_v13 }
 0x59d   : > { %v9778_v21 = vmax.f32 %v9746_v12, 0.0  ;;  %v9747_v22 = vadd.f32 %v20918_v37, %v9715_v14  ;;  %v12961_v23 = vmax.f32 %v12929_v17, 0.0  ;;  %v12930_v25 = vadd.f32 %v20918_v37, %v12898_v19 }
 0x59e   : > { %14762 = vst [vmem:[%s20269_s11 + $0x230] sm:$0xff] %v9780_v16  ;;  %v9781_v24 = vmax.f32 %v9749_v18, 0.0  ;;  %15334 = vst [vmem:[%s20269_s11 + $0x330] sm:$0xff] %v12963_v20  ;;  %v12964_v26 = vmax.f32 %v12932_v40, 0.0 }
 0x59f   : > { %14760 = vst [vmem:[%s20269_s11 + $0x220] sm:$0xff] %v9778_v21  ;;  %v9779_v27 = vmax.f32 %v9747_v22, 0.0  ;;  %v16876_v29 = vpop.f32.mrb[40].mxu0  ;;  %15332 = vst [vmem:[%s20269_s11 + $0x320] sm:$0xff] %v12961_v23  ;;  %v12962_v41 = vmax.f32 %v12930_v25, 0.0  ;;  %v17182_v33 = vpop.f32.mrb[40].mxu1 }
 0x5a0   : > { %14763 = vst [vmem:[%s20269_s11 + $0x238] sm:$0xff] %v9781_v24  ;;  %v9720_v32 = vmul.f32 %v20913_v28, %v16876_v29  ;;  %v9583_v34 = vpop.f32.mrb[41].mxu0  ;;  %15335 = vst [vmem:[%s20269_s11 + $0x338] sm:$0xff] %v12964_v26  ;;  %v12903_v35 = vmul.f32 %v20913_v28, %v17182_v33  ;;  %v12766_v38 = vpop.f32.mrb[41].mxu1 }
 0x5a1   : > { %14761 = vst [vmem:[%s20269_s11 + $0x228] sm:$0xff] %v9779_v27  ;;  %v9718_v36 = vmul.f32 %v20913_v28, %v9583_v34  ;;  %v16877_v39 = vpop.f32.mrb[42].mxu0  ;;  %15333 = vst [vmem:[%s20269_s11 + $0x328] sm:$0xff] %v12962_v41  ;;  %v12901_v43 = vmul.f32 %v20913_v28, %v12766_v38  ;;  %v17183_v45 = vpop.f32.mrb[42].mxu1 }
 0x5a2   : > { %v9752_v42 = vadd.f32 %v20918_v37, %v9720_v32  ;;  %v9721_v44 = vmul.f32 %v20913_v28, %v16877_v39  ;;  %v9586_v46 = vpop.f32.mrb[43].mxu0  ;;  %v12935_v47 = vadd.f32 %v20918_v37, %v12903_v35  ;;  %v12904_v49 = vmul.f32 %v20913_v28, %v17183_v45  ;;  %v12769_v51 = vpop.f32.mrb[43].mxu1 }
 0x5a3   : > { %v9750_v48 = vadd.f32 %v20918_v37, %v9718_v36  ;;  %v9719_v50 = vmul.f32 %v20913_v28, %v9586_v46  ;;  %v12933_v53 = vadd.f32 %v20918_v37, %v12901_v43  ;;  %v12902_v55 = vmul.f32 %v20913_v28, %v12769_v51 }
 0x5a4   : > { %v9784_v52 = vmax.f32 %v9752_v42, 0.0  ;;  %v9753_v54 = vadd.f32 %v20918_v37, %v9721_v44  ;;  %v12967_v56 = vmax.f32 %v12935_v47, 0.0  ;;  %v12936_v1 = vadd.f32 %v20918_v37, %v12904_v49 }
 0x5a5   : > { %v9782_v57 = vmax.f32 %v9750_v48, 0.0  ;;  %v9751_v5 = vadd.f32 %v20918_v37, %v9719_v50  ;;  %v12965_v58 = vmax.f32 %v12933_v53, 0.0  ;;  %v12934_v60 = vadd.f32 %v20918_v37, %v12902_v55 }
 0x5a6   : > { %14766 = vst [vmem:[%s20269_s11 + $0x250] sm:$0xff] %v9784_v52  ;;  %v9785_v59 = vmax.f32 %v9753_v54, 0.0  ;;  %15338 = vst [vmem:[%s20269_s11 + $0x350] sm:$0xff] %v12967_v56  ;;  %v12968_v61 = vmax.f32 %v12936_v1, 0.0 }
 0x5a7   : > { %14764 = vst [vmem:[%s20269_s11 + $0x240] sm:$0xff] %v9782_v57  ;;  %v9783_v62 = vmax.f32 %v9751_v5, 0.0  ;;  %v16880_v30 = vpop.f32.mrb[44].mxu0  ;;  %15336 = vst [vmem:[%s20269_s11 + $0x340] sm:$0xff] %v12965_v58  ;;  %v12966_v63 = vmax.f32 %v12934_v60, 0.0  ;;  %v17186_v2 = vpop.f32.mrb[44].mxu1 }
 0x5a8   : > { %14767 = vst [vmem:[%s20269_s11 + $0x258] sm:$0xff] %v9785_v59  ;;  %v9724_v0 = vmul.f32 %v20913_v28, %v16880_v30  ;;  %v9599_v3 = vpop.f32.mrb[45].mxu0  ;;  %15339 = vst [vmem:[%s20269_s11 + $0x358] sm:$0xff] %v12968_v61  ;;  %v12907_v4 = vmul.f32 %v20913_v28, %v17186_v2  ;;  %v12782_v6 = vpop.f32.mrb[45].mxu1 }
 0x5a9   : > { %14765 = vst [vmem:[%s20269_s11 + $0x248] sm:$0xff] %v9783_v62  ;;  %v9722_v31 = vmul.f32 %v20913_v28, %v9599_v3  ;;  %v16881_v7 = vpop.f32.mrb[46].mxu0  ;;  %15337 = vst [vmem:[%s20269_s11 + $0x348] sm:$0xff] %v12966_v63  ;;  %v12905_v9 = vmul.f32 %v20913_v28, %v12782_v6  ;;  %v17187_v11 = vpop.f32.mrb[46].mxu1 }
 0x5aa   : > { %v9756_v8 = vadd.f32 %v20918_v37, %v9724_v0  ;;  %v9725_v10 = vmul.f32 %v20913_v28, %v16881_v7  ;;  %v9602_v12 = vpop.f32.mrb[47].mxu0  ;;  %v12939_v13 = vadd.f32 %v20918_v37, %v12907_v4  ;;  %v12908_v15 = vmul.f32 %v20913_v28, %v17187_v11  ;;  %v12785_v17 = vpop.f32.mrb[47].mxu1 }
 0x5ab   : > { %v9754_v14 = vadd.f32 %v20918_v37, %v9722_v31  ;;  %v9723_v16 = vmul.f32 %v20913_v28, %v9602_v12  ;;  %v12937_v19 = vadd.f32 %v20918_v37, %v12905_v9  ;;  %v12906_v21 = vmul.f32 %v20913_v28, %v12785_v17 }
 0x5ac   : > { %v9788_v18 = vmax.f32 %v9756_v8, 0.0  ;;  %v9757_v20 = vadd.f32 %v20918_v37, %v9725_v10  ;;  %v12971_v40 = vmax.f32 %v12939_v13, 0.0  ;;  %v12940_v23 = vadd.f32 %v20918_v37, %v12908_v15 }
 0x5ad   : > { %v9786_v22 = vmax.f32 %v9754_v14, 0.0  ;;  %v9755_v24 = vadd.f32 %v20918_v37, %v9723_v16  ;;  %v12969_v25 = vmax.f32 %v12937_v19, 0.0  ;;  %v12938_v27 = vadd.f32 %v20918_v37, %v12906_v21 }
 0x5ae   : > { %14770 = vst [vmem:[%s20269_s11 + $0x270] sm:$0xff] %v9788_v18  ;;  %v9789_v26 = vmax.f32 %v9757_v20, 0.0  ;;  %15342 = vst [vmem:[%s20269_s11 + $0x370] sm:$0xff] %v12971_v40  ;;  %v12972_v29 = vmax.f32 %v12940_v23, 0.0 }
 0x5af   : > { %14768 = vst [vmem:[%s20269_s11 + $0x260] sm:$0xff] %v9786_v22  ;;  %v9787_v41 = vmax.f32 %v9755_v24, 0.0  ;;  %v16884_v32 = vpop.f32.mrb[48].mxu0  ;;  %15340 = vst [vmem:[%s20269_s11 + $0x360] sm:$0xff] %v12969_v25  ;;  %v12970_v33 = vmax.f32 %v12938_v27, 0.0  ;;  %v17190_v35 = vpop.f32.mrb[48].mxu1 }
 0x5b0   : > { %14771 = vst [vmem:[%s20269_s11 + $0x278] sm:$0xff] %v9789_v26  ;;  %v9728_v34 = vmul.f32 %v20913_v28, %v16884_v32  ;;  %v9615_v36 = vpop.f32.mrb[49].mxu0  ;;  %15343 = vst [vmem:[%s20269_s11 + $0x378] sm:$0xff] %v12972_v29  ;;  %v12911_v38 = vmul.f32 %v20913_v28, %v17190_v35  ;;  %v12798_v42 = vpop.f32.mrb[49].mxu1 }
 0x5b1   : > { %14769 = vst [vmem:[%s20269_s11 + $0x268] sm:$0xff] %v9787_v41  ;;  %v9726_v39 = vmul.f32 %v20913_v28, %v9615_v36  ;;  %v16885_v43 = vpop.f32.mrb[50].mxu0  ;;  %15341 = vst [vmem:[%s20269_s11 + $0x368] sm:$0xff] %v12970_v33  ;;  %v12909_v45 = vmul.f32 %v20913_v28, %v12798_v42  ;;  %v17191_v47 = vpop.f32.mrb[50].mxu1 }
 0x5b2   : > { %v9760_v44 = vadd.f32 %v20918_v37, %v9728_v34  ;;  %v9729_v46 = vmul.f32 %v20913_v28, %v16885_v43  ;;  %v9618_v48 = vpop.f32.mrb[51].mxu0  ;;  %v12943_v49 = vadd.f32 %v20918_v37, %v12911_v38  ;;  %v12912_v51 = vmul.f32 %v20913_v28, %v17191_v47  ;;  %v12801_v53 = vpop.f32.mrb[51].mxu1 }
 0x5b3   : > { %v9758_v50 = vadd.f32 %v20918_v37, %v9726_v39  ;;  %v9727_v52 = vmul.f32 %v20913_v28, %v9618_v48  ;;  %v12941_v55 = vadd.f32 %v20918_v37, %v12909_v45  ;;  %v12910_v57 = vmul.f32 %v20913_v28, %v12801_v53 }
 0x5b4   : > { %v9792_v54 = vmax.f32 %v9760_v44, 0.0  ;;  %v9761_v56 = vadd.f32 %v20918_v37, %v9729_v46  ;;  %v12975_v1 = vmax.f32 %v12943_v49, 0.0  ;;  %v12944_v58 = vadd.f32 %v20918_v37, %v12912_v51 }
 0x5b5   : > { %v9790_v5 = vmax.f32 %v9758_v50, 0.0  ;;  %v9759_v59 = vadd.f32 %v20918_v37, %v9727_v52  ;;  %v12973_v60 = vmax.f32 %v12941_v55, 0.0  ;;  %v12942_v62 = vadd.f32 %v20918_v37, %v12910_v57 }
 0x5b6   : > { %14774 = vst [vmem:[%s20269_s11 + $0x290] sm:$0xff] %v9792_v54  ;;  %v9793_v61 = vmax.f32 %v9761_v56, 0.0  ;;  %15346 = vst [vmem:[%s20269_s11 + $0x390] sm:$0xff] %v12975_v1  ;;  %v12976_v30 = vmax.f32 %v12944_v58, 0.0 }
 0x5b7   : > { %14772 = vst [vmem:[%s20269_s11 + $0x280] sm:$0xff] %v9790_v5  ;;  %v9791_v63 = vmax.f32 %v9759_v59, 0.0  ;;  %v16888_v0 = vpop.f32.mrb[52].mxu0  ;;  %15344 = vst [vmem:[%s20269_s11 + $0x380] sm:$0xff] %v12973_v60  ;;  %v12974_v2 = vmax.f32 %v12942_v62, 0.0  ;;  %v17194_v4 = vpop.f32.mrb[52].mxu1 }
 0x5b8   : > { %14775 = vst [vmem:[%s20269_s11 + $0x298] sm:$0xff] %v9793_v61  ;;  %v9732_v3 = vmul.f32 %v20913_v28, %v16888_v0  ;;  %v9631_v31 = vpop.f32.mrb[53].mxu0  ;;  %15347 = vst [vmem:[%s20269_s11 + $0x398] sm:$0xff] %v12976_v30  ;;  %v12915_v6 = vmul.f32 %v20913_v28, %v17194_v4  ;;  %v12814_v8 = vpop.f32.mrb[53].mxu1 }
 0x5b9   : > { %14773 = vst [vmem:[%s20269_s11 + $0x288] sm:$0xff] %v9791_v63  ;;  %v9730_v7 = vmul.f32 %v20913_v28, %v9631_v31  ;;  %v16889_v9 = vpop.f32.mrb[54].mxu0  ;;  %15345 = vst [vmem:[%s20269_s11 + $0x388] sm:$0xff] %v12974_v2  ;;  %v12913_v11 = vmul.f32 %v20913_v28, %v12814_v8  ;;  %v17195_v13 = vpop.f32.mrb[54].mxu1 }
 0x5ba   : > { %v9764_v10 = vadd.f32 %v20918_v37, %v9732_v3  ;;  %v9733_v12 = vmul.f32 %v20913_v28, %v16889_v9  ;;  %v9634_v14 = vpop.f32.mrb[55].mxu0  ;;  %v12947_v15 = vadd.f32 %v20918_v37, %v12915_v6  ;;  %v12916_v17 = vmul.f32 %v20913_v28, %v17195_v13  ;;  %v12817_v19 = vpop.f32.mrb[55].mxu1 }
 0x5bb   : > { %v9762_v16 = vadd.f32 %v20918_v37, %v9730_v7  ;;  %v9731_v18 = vmul.f32 %v20913_v28, %v9634_v14  ;;  %v12945_v21 = vadd.f32 %v20918_v37, %v12913_v11  ;;  %v12914_v22 = vmul.f32 %v20913_v28, %v12817_v19 }
 0x5bc   : > { %v9796_v20 = vmax.f32 %v9764_v10, 0.0  ;;  %v9765_v40 = vadd.f32 %v20918_v37, %v9733_v12  ;;  %v12979_v23 = vmax.f32 %v12947_v15, 0.0  ;;  %v12948_v25 = vadd.f32 %v20918_v37, %v12916_v17 }
 0x5bd   : > { %v9794_v24 = vmax.f32 %v9762_v16, 0.0  ;;  %v9763_v26 = vadd.f32 %v20918_v37, %v9731_v18  ;;  %v12977_v27 = vmax.f32 %v12945_v21, 0.0  ;;  %v12946_v41 = vadd.f32 %v20918_v37, %v12914_v22 }
 0x5be   : > { %14778 = vst [vmem:[%s20269_s11 + $0x2b0] sm:$0xff] %v9796_v20  ;;  %v9797_v29 = vmax.f32 %v9765_v40, 0.0  ;;  %15350 = vst [vmem:[%s20269_s11 + $0x3b0] sm:$0xff] %v12979_v23  ;;  %v12980_v32 = vmax.f32 %v12948_v25, 0.0 }
 0x5bf   : > { %14776 = vst [vmem:[%s20269_s11 + $0x2a0] sm:$0xff] %v9794_v24  ;;  %v9795_v33 = vmax.f32 %v9763_v26, 0.0  ;;  %v16892_v34 = vpop.f32.mrb[56].mxu0  ;;  %15348 = vst [vmem:[%s20269_s11 + $0x3a0] sm:$0xff] %v12977_v27  ;;  %v12978_v35 = vmax.f32 %v12946_v41, 0.0  ;;  %v17198_v38 = vpop.f32.mrb[56].mxu1 }
 0x5c0   : > { %14779 = vst [vmem:[%s20269_s11 + $0x2b8] sm:$0xff] %v9797_v29  ;;  %v9736_v36 = vmul.f32 %v20913_v28, %v16892_v34  ;;  %v9647_v39 = vpop.f32.mrb[57].mxu0  ;;  %15351 = vst [vmem:[%s20269_s11 + $0x3b8] sm:$0xff] %v12980_v32  ;;  %v12919_v42 = vmul.f32 %v20913_v28, %v17198_v38  ;;  %v12830_v44 = vpop.f32.mrb[57].mxu1 }
 0x5c1   : > { %14777 = vst [vmem:[%s20269_s11 + $0x2a8] sm:$0xff] %v9795_v33  ;;  %v9734_v43 = vmul.f32 %v20913_v28, %v9647_v39  ;;  %v16893_v45 = vpop.f32.mrb[58].mxu0  ;;  %15349 = vst [vmem:[%s20269_s11 + $0x3a8] sm:$0xff] %v12978_v35  ;;  %v12917_v47 = vmul.f32 %v20913_v28, %v12830_v44  ;;  %v17199_v49 = vpop.f32.mrb[58].mxu1 }
 0x5c2   : > { %v9768_v46 = vadd.f32 %v20918_v37, %v9736_v36  ;;  %v9737_v48 = vmul.f32 %v20913_v28, %v16893_v45  ;;  %v9650_v50 = vpop.f32.mrb[59].mxu0  ;;  %v12951_v51 = vadd.f32 %v20918_v37, %v12919_v42  ;;  %v12920_v53 = vmul.f32 %v20913_v28, %v17199_v49  ;;  %v12833_v55 = vpop.f32.mrb[59].mxu1 }
 0x5c3   : > { %v9766_v52 = vadd.f32 %v20918_v37, %v9734_v43  ;;  %v9735_v54 = vmul.f32 %v20913_v28, %v9650_v50  ;;  %v12949_v57 = vadd.f32 %v20918_v37, %v12917_v47  ;;  %v12918_v5 = vmul.f32 %v20913_v28, %v12833_v55 }
 0x5c4   : > { %v9800_v56 = vmax.f32 %v9768_v46, 0.0  ;;  %v9769_v1 = vadd.f32 %v20918_v37, %v9737_v48  ;;  %v12983_v58 = vmax.f32 %v12951_v51, 0.0  ;;  %v12952_v60 = vadd.f32 %v20918_v37, %v12920_v53 }
 0x5c5   : > { %v9798_v59 = vmax.f32 %v9766_v52, 0.0  ;;  %v9767_v61 = vadd.f32 %v20918_v37, %v9735_v54  ;;  %v12981_v62 = vmax.f32 %v12949_v57, 0.0  ;;  %v12950_v63 = vadd.f32 %v20918_v37, %v12918_v5 }
 0x5c6   : > { %14782 = vst [vmem:[%s20269_s11 + $0x2d0] sm:$0xff] %v9800_v56  ;;  %v9801_v30 = vmax.f32 %v9769_v1, 0.0  ;;  %15354 = vst [vmem:[%s20269_s11 + $0x3d0] sm:$0xff] %v12983_v58  ;;  %v12984_v0 = vmax.f32 %v12952_v60, 0.0 }
 0x5c7   : > { %14780 = vst [vmem:[%s20269_s11 + $0x2c0] sm:$0xff] %v9798_v59  ;;  %v9799_v2 = vmax.f32 %v9767_v61, 0.0  ;;  %v16896_v3 = vpop.f32.mrb[60].mxu0  ;;  %15352 = vst [vmem:[%s20269_s11 + $0x3c0] sm:$0xff] %v12981_v62  ;;  %v12982_v4 = vmax.f32 %v12950_v63, 0.0  ;;  %v17202_v6 = vpop.f32.mrb[60].mxu1 }
 0x5c8   : > { %14783 = vst [vmem:[%s20269_s11 + $0x2d8] sm:$0xff] %v9801_v30  ;;  %v9740_v31 = vmul.f32 %v20913_v28, %v16896_v3  ;;  %v9663_v7 = vpop.f32.mrb[61].mxu0  ;;  %15355 = vst [vmem:[%s20269_s11 + $0x3d8] sm:$0xff] %v12984_v0  ;;  %v12923_v8 = vmul.f32 %v20913_v28, %v17202_v6  ;;  %v12846_v10 = vpop.f32.mrb[61].mxu1 }
 0x5c9   : > { %14781 = vst [vmem:[%s20269_s11 + $0x2c8] sm:$0xff] %v9799_v2  ;;  %v9738_v9 = vmul.f32 %v20913_v28, %v9663_v7  ;;  %v16897_v11 = vpop.f32.mrb[62].mxu0  ;;  %15353 = vst [vmem:[%s20269_s11 + $0x3c8] sm:$0xff] %v12982_v4  ;;  %v12921_v13 = vmul.f32 %v20913_v28, %v12846_v10  ;;  %v17203_v15 = vpop.f32.mrb[62].mxu1 }
 0x5ca   : > { %v9772_v12 = vadd.f32 %v20918_v37, %v9740_v31  ;;  %v9741_v14 = vmul.f32 %v20913_v28, %v16897_v11  ;;  %v9666_v16 = vpop.f32.mrb[63].mxu0  ;;  %v12955_v17 = vadd.f32 %v20918_v37, %v12923_v8  ;;  %v12924_v19 = vmul.f32 %v20913_v28, %v17203_v15  ;;  %v12849_v21 = vpop.f32.mrb[63].mxu1 }
 0x5cb   : > { %v9770_v18 = vadd.f32 %v20918_v37, %v9738_v9  ;;  %v9739_v20 = vmul.f32 %v20913_v28, %v9666_v16  ;;  %v12953_v22 = vadd.f32 %v20918_v37, %v12921_v13  ;;  %v12922_v24 = vmul.f32 %v20913_v28, %v12849_v21 }
 0x5cc   : > { %v9804_v40 = vmax.f32 %v9772_v12, 0.0  ;;  %v9773_v23 = vadd.f32 %v20918_v37, %v9741_v14  ;;  %v12987_v25 = vmax.f32 %v12955_v17, 0.0  ;;  %v12956_v27 = vadd.f32 %v20918_v37, %v12924_v19 }
 0x5cd   : > { %v9802_v26 = vmax.f32 %v9770_v18, 0.0  ;;  %v9771_v29 = vadd.f32 %v20918_v37, %v9739_v20  ;;  %v12985_v41 = vmax.f32 %v12953_v22, 0.0  ;;  %v12954_v33 = vadd.f32 %v20918_v37, %v12922_v24 }
 0x5ce   : > { %14786 = vst [vmem:[%s20269_s11 + $0x2f0] sm:$0xff] %v9804_v40  ;;  %v9805_v32 = vmax.f32 %v9773_v23, 0.0  ;;  %15358 = vst [vmem:[%s20269_s11 + $0x3f0] sm:$0xff] %v12987_v25  ;;  %v12988_v28 = vmax.f32 %v12956_v27, 0.0 }
 0x5cf   : > { %14784 = vst [vmem:[%s20269_s11 + $0x2e0] sm:$0xff] %v9802_v26  ;;  %v9803_v34 = vmax.f32 %v9771_v29, 0.0  ;;  %15356 = vst [vmem:[%s20269_s11 + $0x3e0] sm:$0xff] %v12985_v41  ;;  %v12986_v35 = vmax.f32 %v12954_v33, 0.0 }
 0x5d0   : > { %14787 = vst [vmem:[%s20269_s11 + $0x2f8] sm:$0xff] %v9805_v32  ;;  %15359 = vst [vmem:[%s20269_s11 + $0x3f8] sm:$0xff] %v12988_v28 }
 0x5d1   : > { %14785 = vst [vmem:[%s20269_s11 + $0x2e8] sm:$0xff] %v9803_v34  ;;  %15357 = vst [vmem:[%s20269_s11 + $0x3e8] sm:$0xff] %v12986_v35 }
 0x5d2   : > { %19023 = shalt.err (!%p19020_p9)
}
 0x5d3   : > { %s19024_s8 = scalar_lea.hbm %s21113_s14, 16384  ;;  %s19028_s23 = scalar_lea.hbm %s21180_s4, 65536 }
 0x5d4   : > { %p19025_p11 = scmp.ne.s32.totalorder %s21113_s14, %s19024_s8  ;;  %p19029_p8 = scmp.lt.u32.totalorder %s21113_s14, %s21180_s4 }
 0x5d5   : > { %p19030_p0 = scmp.lt.u32.totalorder %s19028_s23, %s19024_s8  ;;  %p19032_p10 = scmp.lt.u32.totalorder %s19024_s8, %s21113_s14 }
 0x5d6   : > { %p19026_p13 = pnand %p19025_p11, %p21203_p12 }
 0x5d7   : > { %p19031_p2 = por %p19030_p0, %p19029_p8 }
 0x5d8   : > { %p19027_p3 = pneg %p19026_p13 }
 0x5d9   : > { %p19033_p1 = por %p19032_p10, %p19031_p2 }
 0x5db   : > { %p19034_p4 = pnand %p19033_p1, %p19027_p3 }
 0x5dd   : > { %19037 = shalt.err (!%p19034_p4)
}
 0x5de   : > { %s19120_s11 = smov 128   ;;  %s19121_s13 = smov 8  }
 0x5df   : > { %18278 = dma.vmem_to_hbm [thread:$0]  (%p21203_p12), %s21115_s28, 16384, %s21113_s14, %s21124_s2, %s19120_s11, %s19120_s11, %s19121_s13  }
 0x5e0 PF: > { %p18300_p5 = scmp.ge.s32.totalorder %s19112_s22, 2  ;;  %s13054_s12 = sand.u32 1, %s19084_s15  }
 0x5e1   : > { %p21204_p6 = scmp.ne.s32.totalorder %s21195_s30, 0  ;;  %s13055_s18 = scalar_lea.sflag [#allocation4], %s13054_s12 }
 0x5e3   : > { %p18291_p7 = pnand %p18300_p5, %p21204_p6 }
 0x5e5   : > { %19079 = dma.done.wait (!%p18291_p7), %s13055_s18, 16384  }
 0x5e6   : > { %19081 = vsyncadd (!%p18291_p7), %s13055_s18, 4294950912  ;;  %s19_s22 = sadd.s32 1, %s19112_s22   ;;  %s21205_s18 = sld [smem:[#allocation12_spill]] }
 0x5e7   : > { %p16_p9 = scmp.ge.s32.totalorder %s19_s22, 6   ;;  %s21206_s19 = sld [smem:[#allocation13_spill]] }
 0x5e8   : > { %s21207_s20 = sld [smem:[#allocation14_spill]]  ;;  %s21208_s21 = sld [smem:[#allocation15_spill]] }
 0x5e9   : > { %s21209_s15 = smov %s19088_s16  ;;  %s21210_s16 = smov %s19092_s17 }
 0x5ea   : > { %s21211_s17 = smov %s19226_s9  ;;  %18 = sbr.rel (!%p16_p9) target bundleno = 9 (0x9), region = 100 }
 0x5f1   :  { %13060 = vsyncpa [#allocation3], 1 }
 0x5f2   :  { %13062 = vsyncpa [#allocation3 + $0x1], 1 }
 0x5f3   :  { %13063 = vsyncpa [#allocation6], 1 }
 0x5f4   :  { %13064 = vsyncpa [#allocation4], 1 }
 0x5f5   :  { %13066 = vsyncpa [#allocation4 + $0x1], 1 }

</bundles_post_ra>
